<compile_context>
chip_gen: v5e
topology: v5e:2x2
jax: 0.10.0
libtpu: 0.0.40
codegen_flags: <defaults>
</compile_context>

<pallas_src>
import jax
import jax.numpy as jnp
import numpy as np
from jax import lax
from jax.experimental import pallas as pl
from jax.experimental.pallas import tpu as pltpu

DILATIONS = (1, 2, 4)


def _build_pad_masks(H, W, K, dilations):
    """(n_conv*K*K, H*W) f32 border masks that emulate zero padding per tap."""
    HW = H * W
    h = np.arange(HW) // W
    w = np.arange(HW) % W
    rows = []
    for d in dilations:
        for kh in range(K):
            for kw in range(K):
                dh, dw = (kh - 1) * d, (kw - 1) * d
                valid = ((h + dh >= 0) & (h + dh < H) &
                         (w + dw >= 0) & (w + dw < W))
                rows.append(valid.astype(np.float32))
    return jnp.asarray(np.stack(rows))


def _prep_weight_cols(weights, C, K):
    """OIHW conv weights -> stacked (n_conv*K*K*C_in, C_out, 1) f32 columns.

    Row t*C + ci (t = conv*K*K + kh*K + kw) holds W_conv[:, ci, kh, kw]: the
    per-output-channel column multiplying input channel ci of tap (kh, kw).
    """
    cols = []
    for w in weights:
        # OIHW -> (K, K, C_in, C_out) -> (K*K*C_in, C_out)
        cols.append(jnp.transpose(w, (2, 3, 1, 0)).reshape(K * K * C, C))
    w_all = jnp.concatenate(cols, axis=0).astype(jnp.float32)
    return w_all[:, :, None]                               # (3*K*K*C, C, 1)


def _pick_batch_block(N, bytes_per_image, target_bytes=512 * 1024):
    """Images per grid step: keep >=2 steps (v7x megacore) and a decent DMA slab."""
    nb = max(1, min(max(1, N // 2), max(1, target_bytes // max(bytes_per_image, 1))))
    while N % nb:
        nb -= 1
    return nb


def _make_dblock_kernel(W, C, K, HW, dilations, nb):
    KK = K * K

    def kernel(x_ref, w_ref, m_ref, o_ref):
        # x_ref : (nb, C, HW)      f32  lane-dense activations (flattened NCHW)
        # w_ref : (3*KK*C, C, 1)   f32  per-tap / per-input-channel weight columns
        # m_ref : (3*KK, HW)       f32  zero-padding border masks
        # o_ref : (nb, C, HW)      f32

        def one_image(b, carry):
            x = x_ref[b]                                    # (C, HW) f32
            out = x                                         # residual: + x
            cur = x
            for conv_i, d in enumerate(dilations):
                acc = jnp.zeros((C, HW), jnp.float32)
                for kh in range(K):
                    for kw in range(K):
                        t = conv_i * KK + kh * K + kw
                        s = (kh - 1) * d * W + (kw - 1) * d
                        if s == 0:
                            tap = cur                       # center tap: no shift/mask
                        else:
                            rolled = pltpu.roll(cur, (-s) % HW, axis=1)   # XLU shift
                            tap = rolled * m_ref[t:t + 1, :]              # zero-pad mask
                        for ci in range(C):
                            # (C_out,1) column x (1,HW) row -> (C,HW) VPU broadcast-FMA
                            acc = acc + w_ref[t * C + ci] * tap[ci:ci + 1, :]
                cur = jnp.maximum(acc, 0.0)                 # ReLU (f32, VPU)
                out = out + cur
            o_ref[b] = out.astype(o_ref.dtype)
            return carry

        lax.fori_loop(0, nb, one_image, 0)

    return kernel


def dblock_forward(x_nchw, weights, dilations=DILATIONS):
    """DBlock forward. x_nchw: (N, C, H, W) f32; weights: 3 OIHW (C, C, 3, 3) tensors."""
    N, C, H, W = x_nchw.shape
    K = weights[0].shape[-1]
    HW = H * W

    # Host-side layout plumbing only (free XLA reshapes / tiny transposes).
    x_flat = x_nchw.reshape(N, C, HW).astype(jnp.float32)
    w_cols = _prep_weight_cols(weights, C, K)               # (3*K*K*C, C, 1) f32
    masks = _build_pad_masks(H, W, K, dilations)            # (3*K*K, HW) f32

    nb = _pick_batch_block(N, C * HW * 4)
    grid = (N // nb,)

    kernel = _make_dblock_kernel(W, C, K, HW, dilations, nb)

    act_spec = pl.BlockSpec((nb, C, HW), lambda n: (n, 0, 0))

    out_flat = pl.pallas_call(
        kernel,
        out_shape=jax.ShapeDtypeStruct((N, C, HW), x_nchw.dtype),
        grid=grid,
        in_specs=[
            act_spec,
            pl.BlockSpec(w_cols.shape, lambda n: (0, 0, 0)),
            pl.BlockSpec(masks.shape, lambda n: (0, 0)),
        ],
        out_specs=act_spec,
        compiler_params=pltpu.CompilerParams(
            dimension_semantics=("parallel",),
            vmem_limit_bytes=32 * 1024 * 1024),
    )(x_flat, w_cols, masks)

    # TODO(synk): if C is ever scaled up (C >= 32), switch the channel mix back to the
    # MXU with a lane-dense im2col (9C-deep contraction); at C=4 the VPU path is faster.
    return out_flat.reshape(N, C, H, W)


def dblock_reference(x_nchw, weights):
    """Pure-JAX reference of the PyTorch DBlock forward (full f32 precision)."""
    w1, w2, w3 = weights
    x = jnp.transpose(x_nchw, (0, 2, 3, 1))                 # NHWC

    def conv(t, w, d):
        w_hwio = jnp.transpose(w, (2, 3, 1, 0))
        return lax.conv_general_dilated(
            t, w_hwio, window_strides=(1, 1),
            padding=[(d, d), (d, d)], rhs_dilation=(d, d),
            dimension_numbers=('NHWC', 'HWIO', 'NHWC'),
            precision=lax.Precision.HIGHEST)

    d1 = jax.nn.relu(conv(x, w1, 1))
    d2 = jax.nn.relu(conv(d1, w2, 2))
    d3 = jax.nn.relu(conv(d2, w3, 4))
    out = x + d1 + d2 + d3
    return jnp.transpose(out, (0, 3, 1, 2))


if __name__ == "__main__":
    N, C, H, W, K = 2, 4, 16, 16, 3

    key = jax.random.PRNGKey(0)
    k1, k2, k3, kx = jax.random.split(key, 4)

    # Deterministic synthetic params (PyTorch Conv2d OIHW init range, bias=False).
    fan_in = C * K * K
    bound = 1.0 / (fan_in ** 0.5)
    w1 = jax.random.uniform(k1, (C, C, K, K), jnp.float32, -bound, bound)
    w2 = jax.random.uniform(k2, (C, C, K, K), jnp.float32, -bound, bound)
    w3 = jax.random.uniform(k3, (C, C, K, K), jnp.float32, -bound, bound)
    weights = (w1, w2, w3)

    x = jax.random.normal(kx, (N, C, H, W), jnp.float32)

    out = dblock_forward(x, weights)
    out = jax.block_until_ready(out)

    ref = dblock_reference(x, weights)
    assert out.shape == x.shape
    max_err = float(jnp.max(jnp.abs(out - ref)))
    # All-f32 VPU math (no bf16 MXU operands) -> tight tolerance.
    assert max_err < 1e-3, f"mismatch vs reference: max abs err = {max_err}"

    print("KERNEL_OK")
</pallas_src>

<mosaic_0001>
module attributes {stable_mosaic.version = 11 : i64} {
  func.func @kernel(%arg0: i32, %arg1: memref<1x4x256xf32, #tpu.memory_space<vmem>>, %arg2: memref<108x4x1xf32, #tpu.memory_space<vmem>>, %arg3: memref<27x256xf32, #tpu.memory_space<vmem>>, %arg4: memref<1x4x256xf32, #tpu.memory_space<vmem>>) attributes {dimension_semantics = [#tpu.dimension_semantics<parallel>], iteration_bounds = array<i64: 2>, scalar_prefetch = 0 : i64, scratch_operands = 0 : i64, tpu.core_type = #tpu.core_type<tc>, window_params = [{transform_indices = @transform_0, window_bounds = array<i64: 1, 4, 256>}, {pipeline_mode = #tpu.pipeline_mode<synchronous>, transform_indices = @transform_1, window_bounds = array<i64: 108, 4, 1>}, {pipeline_mode = #tpu.pipeline_mode<synchronous>, transform_indices = @transform_2, window_bounds = array<i64: 27, 256>}, {transform_indices = @transform_3, window_bounds = array<i64: 1, 4, 256>}]} {
    %c0_i32 = arith.constant 0 : i32
    %0 = arith.index_cast %c0_i32 : i32 to index
    %c0 = arith.constant 0 : index
    %c0_0 = arith.constant 0 : index
    %1 = vector.load %arg1[%0, %c0, %c0_0] : memref<1x4x256xf32, #tpu.memory_space<vmem>>, vector<1x4x256xf32>
    %2 = vector.shape_cast %1 : vector<1x4x256xf32> to vector<4x256xf32>
    %cst = arith.constant 0.000000e+00 : f32
    %3 = vector.broadcast %cst : f32 to vector<4x256xf32>
    %c17_i32 = arith.constant 17 : i32
    %4 = tpu.dynamic_rotate %2 by %c17_i32 dim 1 : vector<4x256xf32>, i32 -> vector<4x256xf32>
    %c0_1 = arith.constant 0 : index
    %c0_2 = arith.constant 0 : index
    %5 = vector.load %arg3[%c0_1, %c0_2] : memref<27x256xf32, #tpu.memory_space<vmem>>, vector<1x256xf32>
    %6 = vector.broadcast %5 : vector<1x256xf32> to vector<4x256xf32>
    %7 = arith.mulf %4, %6 : vector<4x256xf32>
    %c0_3 = arith.constant 0 : index
    %c0_4 = arith.constant 0 : index
    %c0_5 = arith.constant 0 : index
    %8 = vector.load %arg2[%c0_3, %c0_4, %c0_5] : memref<108x4x1xf32, #tpu.memory_space<vmem>>, vector<1x4x1xf32>
    %9 = vector.shape_cast %8 : vector<1x4x1xf32> to vector<4x1xf32>
    %10 = vector.extract_strided_slice %7 {offsets = [0, 0], sizes = [1, 256], strides = [1, 1]} : vector<4x256xf32> to vector<1x256xf32>
    %11 = vector.broadcast %9 : vector<4x1xf32> to vector<4x256xf32>
    %12 = vector.broadcast %10 : vector<1x256xf32> to vector<4x256xf32>
    %13 = arith.mulf %11, %12 : vector<4x256xf32>
    %14 = arith.addf %3, %13 : vector<4x256xf32>
    %c1 = arith.constant 1 : index
    %c0_6 = arith.constant 0 : index
    %c0_7 = arith.constant 0 : index
    %15 = vector.load %arg2[%c1, %c0_6, %c0_7] : memref<108x4x1xf32, #tpu.memory_space<vmem>>, vector<1x4x1xf32>
    %16 = vector.shape_cast %15 : vector<1x4x1xf32> to vector<4x1xf32>
    %17 = vector.extract_strided_slice %7 {offsets = [1, 0], sizes = [1, 256], strides = [1, 1]} : vector<4x256xf32> to vector<1x256xf32>
    %18 = vector.broadcast %16 : vector<4x1xf32> to vector<4x256xf32>
    %19 = vector.broadcast %17 : vector<1x256xf32> to vector<4x256xf32>
    %20 = arith.mulf %18, %19 : vector<4x256xf32>
    %21 = arith.addf %14, %20 : vector<4x256xf32>
    %c2 = arith.constant 2 : index
    %c0_8 = arith.constant 0 : index
    %c0_9 = arith.constant 0 : index
    %22 = vector.load %arg2[%c2, %c0_8, %c0_9] : memref<108x4x1xf32, #tpu.memory_space<vmem>>, vector<1x4x1xf32>
    %23 = vector.shape_cast %22 : vector<1x4x1xf32> to vector<4x1xf32>
    %24 = vector.extract_strided_slice %7 {offsets = [2, 0], sizes = [1, 256], strides = [1, 1]} : vector<4x256xf32> to vector<1x256xf32>
    %25 = vector.broadcast %23 : vector<4x1xf32> to vector<4x256xf32>
    %26 = vector.broadcast %24 : vector<1x256xf32> to vector<4x256xf32>
    %27 = arith.mulf %25, %26 : vector<4x256xf32>
    %28 = arith.addf %21, %27 : vector<4x256xf32>
    %c3 = arith.constant 3 : index
    %c0_10 = arith.constant 0 : index
    %c0_11 = arith.constant 0 : index
    %29 = vector.load %arg2[%c3, %c0_10, %c0_11] : memref<108x4x1xf32, #tpu.memory_space<vmem>>, vector<1x4x1xf32>
    %30 = vector.shape_cast %29 : vector<1x4x1xf32> to vector<4x1xf32>
    %31 = vector.extract_strided_slice %7 {offsets = [3, 0], sizes = [1, 256], strides = [1, 1]} : vector<4x256xf32> to vector<1x256xf32>
    %32 = vector.broadcast %30 : vector<4x1xf32> to vector<4x256xf32>
    %33 = vector.broadcast %31 : vector<1x256xf32> to vector<4x256xf32>
    %34 = arith.mulf %32, %33 : vector<4x256xf32>
    %35 = arith.addf %28, %34 : vector<4x256xf32>
    %c16_i32 = arith.constant 16 : i32
    %36 = tpu.dynamic_rotate %2 by %c16_i32 dim 1 : vector<4x256xf32>, i32 -> vector<4x256xf32>
    %c1_12 = arith.constant 1 : index
    %c0_13 = arith.constant 0 : index
    %37 = vector.load %arg3[%c1_12, %c0_13] : memref<27x256xf32, #tpu.memory_space<vmem>>, vector<1x256xf32>
    %38 = vector.broadcast %37 : vector<1x256xf32> to vector<4x256xf32>
    %39 = arith.mulf %36, %38 : vector<4x256xf32>
    %c4 = arith.constant 4 : index
    %c0_14 = arith.constant 0 : index
    %c0_15 = arith.constant 0 : index
    %40 = vector.load %arg2[%c4, %c0_14, %c0_15] : memref<108x4x1xf32, #tpu.memory_space<vmem>>, vector<1x4x1xf32>
    %41 = vector.shape_cast %40 : vector<1x4x1xf32> to vector<4x1xf32>
    %42 = vector.extract_strided_slice %39 {offsets = [0, 0], sizes = [1, 256], strides = [1, 1]} : vector<4x256xf32> to vector<1x256xf32>
    %43 = vector.broadcast %41 : vector<4x1xf32> to vector<4x256xf32>
    %44 = vector.broadcast %42 : vector<1x256xf32> to vector<4x256xf32>
    %45 = arith.mulf %43, %44 : vector<4x256xf32>
    %46 = arith.addf %35, %45 : vector<4x256xf32>
    %c5 = arith.constant 5 : index
    %c0_16 = arith.constant 0 : index
    %c0_17 = arith.constant 0 : index
    %47 = vector.load %arg2[%c5, %c0_16, %c0_17] : memref<108x4x1xf32, #tpu.memory_space<vmem>>, vector<1x4x1xf32>
    %48 = vector.shape_cast %47 : vector<1x4x1xf32> to vector<4x1xf32>
    %49 = vector.extract_strided_slice %39 {offsets = [1, 0], sizes = [1, 256], strides = [1, 1]} : vector<4x256xf32> to vector<1x256xf32>
    %50 = vector.broadcast %48 : vector<4x1xf32> to vector<4x256xf32>
    %51 = vector.broadcast %49 : vector<1x256xf32> to vector<4x256xf32>
    %52 = arith.mulf %50, %51 : vector<4x256xf32>
    %53 = arith.addf %46, %52 : vector<4x256xf32>
    %c6 = arith.constant 6 : index
    %c0_18 = arith.constant 0 : index
    %c0_19 = arith.constant 0 : index
    %54 = vector.load %arg2[%c6, %c0_18, %c0_19] : memref<108x4x1xf32, #tpu.memory_space<vmem>>, vector<1x4x1xf32>
    %55 = vector.shape_cast %54 : vector<1x4x1xf32> to vector<4x1xf32>
    %56 = vector.extract_strided_slice %39 {offsets = [2, 0], sizes = [1, 256], strides = [1, 1]} : vector<4x256xf32> to vector<1x256xf32>
    %57 = vector.broadcast %55 : vector<4x1xf32> to vector<4x256xf32>
    %58 = vector.broadcast %56 : vector<1x256xf32> to vector<4x256xf32>
    %59 = arith.mulf %57, %58 : vector<4x256xf32>
    %60 = arith.addf %53, %59 : vector<4x256xf32>
    %c7 = arith.constant 7 : index
    %c0_20 = arith.constant 0 : index
    %c0_21 = arith.constant 0 : index
    %61 = vector.load %arg2[%c7, %c0_20, %c0_21] : memref<108x4x1xf32, #tpu.memory_space<vmem>>, vector<1x4x1xf32>
    %62 = vector.shape_cast %61 : vector<1x4x1xf32> to vector<4x1xf32>
    %63 = vector.extract_strided_slice %39 {offsets = [3, 0], sizes = [1, 256], strides = [1, 1]} : vector<4x256xf32> to vector<1x256xf32>
    %64 = vector.broadcast %62 : vector<4x1xf32> to vector<4x256xf32>
    %65 = vector.broadcast %63 : vector<1x256xf32> to vector<4x256xf32>
    %66 = arith.mulf %64, %65 : vector<4x256xf32>
    %67 = arith.addf %60, %66 : vector<4x256xf32>
    %c15_i32 = arith.constant 15 : i32
    %68 = tpu.dynamic_rotate %2 by %c15_i32 dim 1 : vector<4x256xf32>, i32 -> vector<4x256xf32>
    %c2_22 = arith.constant 2 : index
    %c0_23 = arith.constant 0 : index
    %69 = vector.load %arg3[%c2_22, %c0_23] : memref<27x256xf32, #tpu.memory_space<vmem>>, vector<1x256xf32>
    %70 = vector.broadcast %69 : vector<1x256xf32> to vector<4x256xf32>
    %71 = arith.mulf %68, %70 : vector<4x256xf32>
    %c8 = arith.constant 8 : index
    %c0_24 = arith.constant 0 : index
    %c0_25 = arith.constant 0 : index
    %72 = vector.load %arg2[%c8, %c0_24, %c0_25] : memref<108x4x1xf32, #tpu.memory_space<vmem>>, vector<1x4x1xf32>
    %73 = vector.shape_cast %72 : vector<1x4x1xf32> to vector<4x1xf32>
    %74 = vector.extract_strided_slice %71 {offsets = [0, 0], sizes = [1, 256], strides = [1, 1]} : vector<4x256xf32> to vector<1x256xf32>
    %75 = vector.broadcast %73 : vector<4x1xf32> to vector<4x256xf32>
    %76 = vector.broadcast %74 : vector<1x256xf32> to vector<4x256xf32>
    %77 = arith.mulf %75, %76 : vector<4x256xf32>
    %78 = arith.addf %67, %77 : vector<4x256xf32>
    %c9 = arith.constant 9 : index
    %c0_26 = arith.constant 0 : index
    %c0_27 = arith.constant 0 : index
    %79 = vector.load %arg2[%c9, %c0_26, %c0_27] : memref<108x4x1xf32, #tpu.memory_space<vmem>>, vector<1x4x1xf32>
    %80 = vector.shape_cast %79 : vector<1x4x1xf32> to vector<4x1xf32>
    %81 = vector.extract_strided_slice %71 {offsets = [1, 0], sizes = [1, 256], strides = [1, 1]} : vector<4x256xf32> to vector<1x256xf32>
    %82 = vector.broadcast %80 : vector<4x1xf32> to vector<4x256xf32>
    %83 = vector.broadcast %81 : vector<1x256xf32> to vector<4x256xf32>
    %84 = arith.mulf %82, %83 : vector<4x256xf32>
    %85 = arith.addf %78, %84 : vector<4x256xf32>
    %c10 = arith.constant 10 : index
    %c0_28 = arith.constant 0 : index
    %c0_29 = arith.constant 0 : index
    %86 = vector.load %arg2[%c10, %c0_28, %c0_29] : memref<108x4x1xf32, #tpu.memory_space<vmem>>, vector<1x4x1xf32>
    %87 = vector.shape_cast %86 : vector<1x4x1xf32> to vector<4x1xf32>
    %88 = vector.extract_strided_slice %71 {offsets = [2, 0], sizes = [1, 256], strides = [1, 1]} : vector<4x256xf32> to vector<1x256xf32>
    %89 = vector.broadcast %87 : vector<4x1xf32> to vector<4x256xf32>
    %90 = vector.broadcast %88 : vector<1x256xf32> to vector<4x256xf32>
    %91 = arith.mulf %89, %90 : vector<4x256xf32>
    %92 = arith.addf %85, %91 : vector<4x256xf32>
    %c11 = arith.constant 11 : index
    %c0_30 = arith.constant 0 : index
    %c0_31 = arith.constant 0 : index
    %93 = vector.load %arg2[%c11, %c0_30, %c0_31] : memref<108x4x1xf32, #tpu.memory_space<vmem>>, vector<1x4x1xf32>
    %94 = vector.shape_cast %93 : vector<1x4x1xf32> to vector<4x1xf32>
    %95 = vector.extract_strided_slice %71 {offsets = [3, 0], sizes = [1, 256], strides = [1, 1]} : vector<4x256xf32> to vector<1x256xf32>
    %96 = vector.broadcast %94 : vector<4x1xf32> to vector<4x256xf32>
    %97 = vector.broadcast %95 : vector<1x256xf32> to vector<4x256xf32>
    %98 = arith.mulf %96, %97 : vector<4x256xf32>
    %99 = arith.addf %92, %98 : vector<4x256xf32>
    %c1_i32 = arith.constant 1 : i32
    %100 = tpu.dynamic_rotate %2 by %c1_i32 dim 1 : vector<4x256xf32>, i32 -> vector<4x256xf32>
    %c3_32 = arith.constant 3 : index
    %c0_33 = arith.constant 0 : index
    %101 = vector.load %arg3[%c3_32, %c0_33] : memref<27x256xf32, #tpu.memory_space<vmem>>, vector<1x256xf32>
    %102 = vector.broadcast %101 : vector<1x256xf32> to vector<4x256xf32>
    %103 = arith.mulf %100, %102 : vector<4x256xf32>
    %c12 = arith.constant 12 : index
    %c0_34 = arith.constant 0 : index
    %c0_35 = arith.constant 0 : index
    %104 = vector.load %arg2[%c12, %c0_34, %c0_35] : memref<108x4x1xf32, #tpu.memory_space<vmem>>, vector<1x4x1xf32>
    %105 = vector.shape_cast %104 : vector<1x4x1xf32> to vector<4x1xf32>
    %106 = vector.extract_strided_slice %103 {offsets = [0, 0], sizes = [1, 256], strides = [1, 1]} : vector<4x256xf32> to vector<1x256xf32>
    %107 = vector.broadcast %105 : vector<4x1xf32> to vector<4x256xf32>
    %108 = vector.broadcast %106 : vector<1x256xf32> to vector<4x256xf32>
    %109 = arith.mulf %107, %108 : vector<4x256xf32>
    %110 = arith.addf %99, %109 : vector<4x256xf32>
    %c13 = arith.constant 13 : index
    %c0_36 = arith.constant 0 : index
    %c0_37 = arith.constant 0 : index
    %111 = vector.load %arg2[%c13, %c0_36, %c0_37] : memref<108x4x1xf32, #tpu.memory_space<vmem>>, vector<1x4x1xf32>
    %112 = vector.shape_cast %111 : vector<1x4x1xf32> to vector<4x1xf32>
    %113 = vector.extract_strided_slice %103 {offsets = [1, 0], sizes = [1, 256], strides = [1, 1]} : vector<4x256xf32> to vector<1x256xf32>
    %114 = vector.broadcast %112 : vector<4x1xf32> to vector<4x256xf32>
    %115 = vector.broadcast %113 : vector<1x256xf32> to vector<4x256xf32>
    %116 = arith.mulf %114, %115 : vector<4x256xf32>
    %117 = arith.addf %110, %116 : vector<4x256xf32>
    %c14 = arith.constant 14 : index
    %c0_38 = arith.constant 0 : index
    %c0_39 = arith.constant 0 : index
    %118 = vector.load %arg2[%c14, %c0_38, %c0_39] : memref<108x4x1xf32, #tpu.memory_space<vmem>>, vector<1x4x1xf32>
    %119 = vector.shape_cast %118 : vector<1x4x1xf32> to vector<4x1xf32>
    %120 = vector.extract_strided_slice %103 {offsets = [2, 0], sizes = [1, 256], strides = [1, 1]} : vector<4x256xf32> to vector<1x256xf32>
    %121 = vector.broadcast %119 : vector<4x1xf32> to vector<4x256xf32>
    %122 = vector.broadcast %120 : vector<1x256xf32> to vector<4x256xf32>
    %123 = arith.mulf %121, %122 : vector<4x256xf32>
    %124 = arith.addf %117, %123 : vector<4x256xf32>
    %c15 = arith.constant 15 : index
    %c0_40 = arith.constant 0 : index
    %c0_41 = arith.constant 0 : index
    %125 = vector.load %arg2[%c15, %c0_40, %c0_41] : memref<108x4x1xf32, #tpu.memory_space<vmem>>, vector<1x4x1xf32>
    %126 = vector.shape_cast %125 : vector<1x4x1xf32> to vector<4x1xf32>
    %127 = vector.extract_strided_slice %103 {offsets = [3, 0], sizes = [1, 256], strides = [1, 1]} : vector<4x256xf32> to vector<1x256xf32>
    %128 = vector.broadcast %126 : vector<4x1xf32> to vector<4x256xf32>
    %129 = vector.broadcast %127 : vector<1x256xf32> to vector<4x256xf32>
    %130 = arith.mulf %128, %129 : vector<4x256xf32>
    %131 = arith.addf %124, %130 : vector<4x256xf32>
    %c16 = arith.constant 16 : index
    %c0_42 = arith.constant 0 : index
    %c0_43 = arith.constant 0 : index
    %132 = vector.load %arg2[%c16, %c0_42, %c0_43] : memref<108x4x1xf32, #tpu.memory_space<vmem>>, vector<1x4x1xf32>
    %133 = vector.shape_cast %132 : vector<1x4x1xf32> to vector<4x1xf32>
    %134 = vector.extract_strided_slice %2 {offsets = [0, 0], sizes = [1, 256], strides = [1, 1]} : vector<4x256xf32> to vector<1x256xf32>
    %135 = vector.broadcast %133 : vector<4x1xf32> to vector<4x256xf32>
    %136 = vector.broadcast %134 : vector<1x256xf32> to vector<4x256xf32>
    %137 = arith.mulf %135, %136 : vector<4x256xf32>
    %138 = arith.addf %131, %137 : vector<4x256xf32>
    %c17 = arith.constant 17 : index
    %c0_44 = arith.constant 0 : index
    %c0_45 = arith.constant 0 : index
    %139 = vector.load %arg2[%c17, %c0_44, %c0_45] : memref<108x4x1xf32, #tpu.memory_space<vmem>>, vector<1x4x1xf32>
    %140 = vector.shape_cast %139 : vector<1x4x1xf32> to vector<4x1xf32>
    %141 = vector.extract_strided_slice %2 {offsets = [1, 0], sizes = [1, 256], strides = [1, 1]} : vector<4x256xf32> to vector<1x256xf32>
    %142 = vector.broadcast %140 : vector<4x1xf32> to vector<4x256xf32>
    %143 = vector.broadcast %141 : vector<1x256xf32> to vector<4x256xf32>
    %144 = arith.mulf %142, %143 : vector<4x256xf32>
    %145 = arith.addf %138, %144 : vector<4x256xf32>
    %c18 = arith.constant 18 : index
    %c0_46 = arith.constant 0 : index
    %c0_47 = arith.constant 0 : index
    %146 = vector.load %arg2[%c18, %c0_46, %c0_47] : memref<108x4x1xf32, #tpu.memory_space<vmem>>, vector<1x4x1xf32>
    %147 = vector.shape_cast %146 : vector<1x4x1xf32> to vector<4x1xf32>
    %148 = vector.extract_strided_slice %2 {offsets = [2, 0], sizes = [1, 256], strides = [1, 1]} : vector<4x256xf32> to vector<1x256xf32>
    %149 = vector.broadcast %147 : vector<4x1xf32> to vector<4x256xf32>
    %150 = vector.broadcast %148 : vector<1x256xf32> to vector<4x256xf32>
    %151 = arith.mulf %149, %150 : vector<4x256xf32>
    %152 = arith.addf %145, %151 : vector<4x256xf32>
    %c19 = arith.constant 19 : index
    %c0_48 = arith.constant 0 : index
    %c0_49 = arith.constant 0 : index
    %153 = vector.load %arg2[%c19, %c0_48, %c0_49] : memref<108x4x1xf32, #tpu.memory_space<vmem>>, vector<1x4x1xf32>
    %154 = vector.shape_cast %153 : vector<1x4x1xf32> to vector<4x1xf32>
    %155 = vector.extract_strided_slice %2 {offsets = [3, 0], sizes = [1, 256], strides = [1, 1]} : vector<4x256xf32> to vector<1x256xf32>
    %156 = vector.broadcast %154 : vector<4x1xf32> to vector<4x256xf32>
    %157 = vector.broadcast %155 : vector<1x256xf32> to vector<4x256xf32>
    %158 = arith.mulf %156, %157 : vector<4x256xf32>
    %159 = arith.addf %152, %158 : vector<4x256xf32>
    %c255_i32 = arith.constant 255 : i32
    %160 = tpu.dynamic_rotate %2 by %c255_i32 dim 1 : vector<4x256xf32>, i32 -> vector<4x256xf32>
    %c5_50 = arith.constant 5 : index
    %c0_51 = arith.constant 0 : index
    %161 = vector.load %arg3[%c5_50, %c0_51] : memref<27x256xf32, #tpu.memory_space<vmem>>, vector<1x256xf32>
    %162 = vector.broadcast %161 : vector<1x256xf32> to vector<4x256xf32>
    %163 = arith.mulf %160, %162 : vector<4x256xf32>
    %c20 = arith.constant 20 : index
    %c0_52 = arith.constant 0 : index
    %c0_53 = arith.constant 0 : index
    %164 = vector.load %arg2[%c20, %c0_52, %c0_53] : memref<108x4x1xf32, #tpu.memory_space<vmem>>, vector<1x4x1xf32>
    %165 = vector.shape_cast %164 : vector<1x4x1xf32> to vector<4x1xf32>
    %166 = vector.extract_strided_slice %163 {offsets = [0, 0], sizes = [1, 256], strides = [1, 1]} : vector<4x256xf32> to vector<1x256xf32>
    %167 = vector.broadcast %165 : vector<4x1xf32> to vector<4x256xf32>
    %168 = vector.broadcast %166 : vector<1x256xf32> to vector<4x256xf32>
    %169 = arith.mulf %167, %168 : vector<4x256xf32>
    %170 = arith.addf %159, %169 : vector<4x256xf32>
    %c21 = arith.constant 21 : index
    %c0_54 = arith.constant 0 : index
    %c0_55 = arith.constant 0 : index
    %171 = vector.load %arg2[%c21, %c0_54, %c0_55] : memref<108x4x1xf32, #tpu.memory_space<vmem>>, vector<1x4x1xf32>
    %172 = vector.shape_cast %171 : vector<1x4x1xf32> to vector<4x1xf32>
    %173 = vector.extract_strided_slice %163 {offsets = [1, 0], sizes = [1, 256], strides = [1, 1]} : vector<4x256xf32> to vector<1x256xf32>
    %174 = vector.broadcast %172 : vector<4x1xf32> to vector<4x256xf32>
    %175 = vector.broadcast %173 : vector<1x256xf32> to vector<4x256xf32>
    %176 = arith.mulf %174, %175 : vector<4x256xf32>
    %177 = arith.addf %170, %176 : vector<4x256xf32>
    %c22 = arith.constant 22 : index
    %c0_56 = arith.constant 0 : index
    %c0_57 = arith.constant 0 : index
    %178 = vector.load %arg2[%c22, %c0_56, %c0_57] : memref<108x4x1xf32, #tpu.memory_space<vmem>>, vector<1x4x1xf32>
    %179 = vector.shape_cast %178 : vector<1x4x1xf32> to vector<4x1xf32>
    %180 = vector.extract_strided_slice %163 {offsets = [2, 0], sizes = [1, 256], strides = [1, 1]} : vector<4x256xf32> to vector<1x256xf32>
    %181 = vector.broadcast %179 : vector<4x1xf32> to vector<4x256xf32>
    %182 = vector.broadcast %180 : vector<1x256xf32> to vector<4x256xf32>
    %183 = arith.mulf %181, %182 : vector<4x256xf32>
    %184 = arith.addf %177, %183 : vector<4x256xf32>
    %c23 = arith.constant 23 : index
    %c0_58 = arith.constant 0 : index
    %c0_59 = arith.constant 0 : index
    %185 = vector.load %arg2[%c23, %c0_58, %c0_59] : memref<108x4x1xf32, #tpu.memory_space<vmem>>, vector<1x4x1xf32>
    %186 = vector.shape_cast %185 : vector<1x4x1xf32> to vector<4x1xf32>
    %187 = vector.extract_strided_slice %163 {offsets = [3, 0], sizes = [1, 256], strides = [1, 1]} : vector<4x256xf32> to vector<1x256xf32>
    %188 = vector.broadcast %186 : vector<4x1xf32> to vector<4x256xf32>
    %189 = vector.broadcast %187 : vector<1x256xf32> to vector<4x256xf32>
    %190 = arith.mulf %188, %189 : vector<4x256xf32>
    %191 = arith.addf %184, %190 : vector<4x256xf32>
    %c241_i32 = arith.constant 241 : i32
    %192 = tpu.dynamic_rotate %2 by %c241_i32 dim 1 : vector<4x256xf32>, i32 -> vector<4x256xf32>
    %c6_60 = arith.constant 6 : index
    %c0_61 = arith.constant 0 : index
    %193 = vector.load %arg3[%c6_60, %c0_61] : memref<27x256xf32, #tpu.memory_space<vmem>>, vector<1x256xf32>
    %194 = vector.broadcast %193 : vector<1x256xf32> to vector<4x256xf32>
    %195 = arith.mulf %192, %194 : vector<4x256xf32>
    %c24 = arith.constant 24 : index
    %c0_62 = arith.constant 0 : index
    %c0_63 = arith.constant 0 : index
    %196 = vector.load %arg2[%c24, %c0_62, %c0_63] : memref<108x4x1xf32, #tpu.memory_space<vmem>>, vector<1x4x1xf32>
    %197 = vector.shape_cast %196 : vector<1x4x1xf32> to vector<4x1xf32>
    %198 = vector.extract_strided_slice %195 {offsets = [0, 0], sizes = [1, 256], strides = [1, 1]} : vector<4x256xf32> to vector<1x256xf32>
    %199 = vector.broadcast %197 : vector<4x1xf32> to vector<4x256xf32>
    %200 = vector.broadcast %198 : vector<1x256xf32> to vector<4x256xf32>
    %201 = arith.mulf %199, %200 : vector<4x256xf32>
    %202 = arith.addf %191, %201 : vector<4x256xf32>
    %c25 = arith.constant 25 : index
    %c0_64 = arith.constant 0 : index
    %c0_65 = arith.constant 0 : index
    %203 = vector.load %arg2[%c25, %c0_64, %c0_65] : memref<108x4x1xf32, #tpu.memory_space<vmem>>, vector<1x4x1xf32>
    %204 = vector.shape_cast %203 : vector<1x4x1xf32> to vector<4x1xf32>
    %205 = vector.extract_strided_slice %195 {offsets = [1, 0], sizes = [1, 256], strides = [1, 1]} : vector<4x256xf32> to vector<1x256xf32>
    %206 = vector.broadcast %204 : vector<4x1xf32> to vector<4x256xf32>
    %207 = vector.broadcast %205 : vector<1x256xf32> to vector<4x256xf32>
    %208 = arith.mulf %206, %207 : vector<4x256xf32>
    %209 = arith.addf %202, %208 : vector<4x256xf32>
    %c26 = arith.constant 26 : index
    %c0_66 = arith.constant 0 : index
    %c0_67 = arith.constant 0 : index
    %210 = vector.load %arg2[%c26, %c0_66, %c0_67] : memref<108x4x1xf32, #tpu.memory_space<vmem>>, vector<1x4x1xf32>
    %211 = vector.shape_cast %210 : vector<1x4x1xf32> to vector<4x1xf32>
    %212 = vector.extract_strided_slice %195 {offsets = [2, 0], sizes = [1, 256], strides = [1, 1]} : vector<4x256xf32> to vector<1x256xf32>
    %213 = vector.broadcast %211 : vector<4x1xf32> to vector<4x256xf32>
    %214 = vector.broadcast %212 : vector<1x256xf32> to vector<4x256xf32>
    %215 = arith.mulf %213, %214 : vector<4x256xf32>
    %216 = arith.addf %209, %215 : vector<4x256xf32>
    %c27 = arith.constant 27 : index
    %c0_68 = arith.constant 0 : index
    %c0_69 = arith.constant 0 : index
    %217 = vector.load %arg2[%c27, %c0_68, %c0_69] : memref<108x4x1xf32, #tpu.memory_space<vmem>>, vector<1x4x1xf32>
    %218 = vector.shape_cast %217 : vector<1x4x1xf32> to vector<4x1xf32>
    %219 = vector.extract_strided_slice %195 {offsets = [3, 0], sizes = [1, 256], strides = [1, 1]} : vector<4x256xf32> to vector<1x256xf32>
    %220 = vector.broadcast %218 : vector<4x1xf32> to vector<4x256xf32>
    %221 = vector.broadcast %219 : vector<1x256xf32> to vector<4x256xf32>
    %222 = arith.mulf %220, %221 : vector<4x256xf32>
    %223 = arith.addf %216, %222 : vector<4x256xf32>
    %c240_i32 = arith.constant 240 : i32
    %224 = tpu.dynamic_rotate %2 by %c240_i32 dim 1 : vector<4x256xf32>, i32 -> vector<4x256xf32>
    %c7_70 = arith.constant 7 : index
    %c0_71 = arith.constant 0 : index
    %225 = vector.load %arg3[%c7_70, %c0_71] : memref<27x256xf32, #tpu.memory_space<vmem>>, vector<1x256xf32>
    %226 = vector.broadcast %225 : vector<1x256xf32> to vector<4x256xf32>
    %227 = arith.mulf %224, %226 : vector<4x256xf32>
    %c28 = arith.constant 28 : index
    %c0_72 = arith.constant 0 : index
    %c0_73 = arith.constant 0 : index
    %228 = vector.load %arg2[%c28, %c0_72, %c0_73] : memref<108x4x1xf32, #tpu.memory_space<vmem>>, vector<1x4x1xf32>
    %229 = vector.shape_cast %228 : vector<1x4x1xf32> to vector<4x1xf32>
    %230 = vector.extract_strided_slice %227 {offsets = [0, 0], sizes = [1, 256], strides = [1, 1]} : vector<4x256xf32> to vector<1x256xf32>
    %231 = vector.broadcast %229 : vector<4x1xf32> to vector<4x256xf32>
    %232 = vector.broadcast %230 : vector<1x256xf32> to vector<4x256xf32>
    %233 = arith.mulf %231, %232 : vector<4x256xf32>
    %234 = arith.addf %223, %233 : vector<4x256xf32>
    %c29 = arith.constant 29 : index
    %c0_74 = arith.constant 0 : index
    %c0_75 = arith.constant 0 : index
    %235 = vector.load %arg2[%c29, %c0_74, %c0_75] : memref<108x4x1xf32, #tpu.memory_space<vmem>>, vector<1x4x1xf32>
    %236 = vector.shape_cast %235 : vector<1x4x1xf32> to vector<4x1xf32>
    %237 = vector.extract_strided_slice %227 {offsets = [1, 0], sizes = [1, 256], strides = [1, 1]} : vector<4x256xf32> to vector<1x256xf32>
    %238 = vector.broadcast %236 : vector<4x1xf32> to vector<4x256xf32>
    %239 = vector.broadcast %237 : vector<1x256xf32> to vector<4x256xf32>
    %240 = arith.mulf %238, %239 : vector<4x256xf32>
    %241 = arith.addf %234, %240 : vector<4x256xf32>
    %c30 = arith.constant 30 : index
    %c0_76 = arith.constant 0 : index
    %c0_77 = arith.constant 0 : index
    %242 = vector.load %arg2[%c30, %c0_76, %c0_77] : memref<108x4x1xf32, #tpu.memory_space<vmem>>, vector<1x4x1xf32>
    %243 = vector.shape_cast %242 : vector<1x4x1xf32> to vector<4x1xf32>
    %244 = vector.extract_strided_slice %227 {offsets = [2, 0], sizes = [1, 256], strides = [1, 1]} : vector<4x256xf32> to vector<1x256xf32>
    %245 = vector.broadcast %243 : vector<4x1xf32> to vector<4x256xf32>
    %246 = vector.broadcast %244 : vector<1x256xf32> to vector<4x256xf32>
    %247 = arith.mulf %245, %246 : vector<4x256xf32>
    %248 = arith.addf %241, %247 : vector<4x256xf32>
    %c31 = arith.constant 31 : index
    %c0_78 = arith.constant 0 : index
    %c0_79 = arith.constant 0 : index
    %249 = vector.load %arg2[%c31, %c0_78, %c0_79] : memref<108x4x1xf32, #tpu.memory_space<vmem>>, vector<1x4x1xf32>
    %250 = vector.shape_cast %249 : vector<1x4x1xf32> to vector<4x1xf32>
    %251 = vector.extract_strided_slice %227 {offsets = [3, 0], sizes = [1, 256], strides = [1, 1]} : vector<4x256xf32> to vector<1x256xf32>
    %252 = vector.broadcast %250 : vector<4x1xf32> to vector<4x256xf32>
    %253 = vector.broadcast %251 : vector<1x256xf32> to vector<4x256xf32>
    %254 = arith.mulf %252, %253 : vector<4x256xf32>
    %255 = arith.addf %248, %254 : vector<4x256xf32>
    %c239_i32 = arith.constant 239 : i32
    %256 = tpu.dynamic_rotate %2 by %c239_i32 dim 1 : vector<4x256xf32>, i32 -> vector<4x256xf32>
    %c8_80 = arith.constant 8 : index
    %c0_81 = arith.constant 0 : index
    %257 = vector.load %arg3[%c8_80, %c0_81] : memref<27x256xf32, #tpu.memory_space<vmem>>, vector<1x256xf32>
    %258 = vector.broadcast %257 : vector<1x256xf32> to vector<4x256xf32>
    %259 = arith.mulf %256, %258 : vector<4x256xf32>
    %c32 = arith.constant 32 : index
    %c0_82 = arith.constant 0 : index
    %c0_83 = arith.constant 0 : index
    %260 = vector.load %arg2[%c32, %c0_82, %c0_83] : memref<108x4x1xf32, #tpu.memory_space<vmem>>, vector<1x4x1xf32>
    %261 = vector.shape_cast %260 : vector<1x4x1xf32> to vector<4x1xf32>
    %262 = vector.extract_strided_slice %259 {offsets = [0, 0], sizes = [1, 256], strides = [1, 1]} : vector<4x256xf32> to vector<1x256xf32>
    %263 = vector.broadcast %261 : vector<4x1xf32> to vector<4x256xf32>
    %264 = vector.broadcast %262 : vector<1x256xf32> to vector<4x256xf32>
    %265 = arith.mulf %263, %264 : vector<4x256xf32>
    %266 = arith.addf %255, %265 : vector<4x256xf32>
    %c33 = arith.constant 33 : index
    %c0_84 = arith.constant 0 : index
    %c0_85 = arith.constant 0 : index
    %267 = vector.load %arg2[%c33, %c0_84, %c0_85] : memref<108x4x1xf32, #tpu.memory_space<vmem>>, vector<1x4x1xf32>
    %268 = vector.shape_cast %267 : vector<1x4x1xf32> to vector<4x1xf32>
    %269 = vector.extract_strided_slice %259 {offsets = [1, 0], sizes = [1, 256], strides = [1, 1]} : vector<4x256xf32> to vector<1x256xf32>
    %270 = vector.broadcast %268 : vector<4x1xf32> to vector<4x256xf32>
    %271 = vector.broadcast %269 : vector<1x256xf32> to vector<4x256xf32>
    %272 = arith.mulf %270, %271 : vector<4x256xf32>
    %273 = arith.addf %266, %272 : vector<4x256xf32>
    %c34 = arith.constant 34 : index
    %c0_86 = arith.constant 0 : index
    %c0_87 = arith.constant 0 : index
    %274 = vector.load %arg2[%c34, %c0_86, %c0_87] : memref<108x4x1xf32, #tpu.memory_space<vmem>>, vector<1x4x1xf32>
    %275 = vector.shape_cast %274 : vector<1x4x1xf32> to vector<4x1xf32>
    %276 = vector.extract_strided_slice %259 {offsets = [2, 0], sizes = [1, 256], strides = [1, 1]} : vector<4x256xf32> to vector<1x256xf32>
    %277 = vector.broadcast %275 : vector<4x1xf32> to vector<4x256xf32>
    %278 = vector.broadcast %276 : vector<1x256xf32> to vector<4x256xf32>
    %279 = arith.mulf %277, %278 : vector<4x256xf32>
    %280 = arith.addf %273, %279 : vector<4x256xf32>
    %c35 = arith.constant 35 : index
    %c0_88 = arith.constant 0 : index
    %c0_89 = arith.constant 0 : index
    %281 = vector.load %arg2[%c35, %c0_88, %c0_89] : memref<108x4x1xf32, #tpu.memory_space<vmem>>, vector<1x4x1xf32>
    %282 = vector.shape_cast %281 : vector<1x4x1xf32> to vector<4x1xf32>
    %283 = vector.extract_strided_slice %259 {offsets = [3, 0], sizes = [1, 256], strides = [1, 1]} : vector<4x256xf32> to vector<1x256xf32>
    %284 = vector.broadcast %282 : vector<4x1xf32> to vector<4x256xf32>
    %285 = vector.broadcast %283 : vector<1x256xf32> to vector<4x256xf32>
    %286 = arith.mulf %284, %285 : vector<4x256xf32>
    %287 = arith.addf %280, %286 : vector<4x256xf32>
    %cst_90 = arith.constant 0.000000e+00 : f32
    %288 = vector.broadcast %cst_90 : f32 to vector<4x256xf32>
    %289 = arith.maximumf %287, %288 : vector<4x256xf32>
    %290 = arith.addf %2, %289 : vector<4x256xf32>
    %cst_91 = arith.constant 0.000000e+00 : f32
    %291 = vector.broadcast %cst_91 : f32 to vector<4x256xf32>
    %c34_i32 = arith.constant 34 : i32
    %292 = tpu.dynamic_rotate %289 by %c34_i32 dim 1 : vector<4x256xf32>, i32 -> vector<4x256xf32>
    %c9_92 = arith.constant 9 : index
    %c0_93 = arith.constant 0 : index
    %293 = vector.load %arg3[%c9_92, %c0_93] : memref<27x256xf32, #tpu.memory_space<vmem>>, vector<1x256xf32>
    %294 = vector.broadcast %293 : vector<1x256xf32> to vector<4x256xf32>
    %295 = arith.mulf %292, %294 : vector<4x256xf32>
    %c36 = arith.constant 36 : index
    %c0_94 = arith.constant 0 : index
    %c0_95 = arith.constant 0 : index
    %296 = vector.load %arg2[%c36, %c0_94, %c0_95] : memref<108x4x1xf32, #tpu.memory_space<vmem>>, vector<1x4x1xf32>
    %297 = vector.shape_cast %296 : vector<1x4x1xf32> to vector<4x1xf32>
    %298 = vector.extract_strided_slice %295 {offsets = [0, 0], sizes = [1, 256], strides = [1, 1]} : vector<4x256xf32> to vector<1x256xf32>
    %299 = vector.broadcast %297 : vector<4x1xf32> to vector<4x256xf32>
    %300 = vector.broadcast %298 : vector<1x256xf32> to vector<4x256xf32>
    %301 = arith.mulf %299, %300 : vector<4x256xf32>
    %302 = arith.addf %291, %301 : vector<4x256xf32>
    %c37 = arith.constant 37 : index
    %c0_96 = arith.constant 0 : index
    %c0_97 = arith.constant 0 : index
    %303 = vector.load %arg2[%c37, %c0_96, %c0_97] : memref<108x4x1xf32, #tpu.memory_space<vmem>>, vector<1x4x1xf32>
    %304 = vector.shape_cast %303 : vector<1x4x1xf32> to vector<4x1xf32>
    %305 = vector.extract_strided_slice %295 {offsets = [1, 0], sizes = [1, 256], strides = [1, 1]} : vector<4x256xf32> to vector<1x256xf32>
    %306 = vector.broadcast %304 : vector<4x1xf32> to vector<4x256xf32>
    %307 = vector.broadcast %305 : vector<1x256xf32> to vector<4x256xf32>
    %308 = arith.mulf %306, %307 : vector<4x256xf32>
    %309 = arith.addf %302, %308 : vector<4x256xf32>
    %c38 = arith.constant 38 : index
    %c0_98 = arith.constant 0 : index
    %c0_99 = arith.constant 0 : index
    %310 = vector.load %arg2[%c38, %c0_98, %c0_99] : memref<108x4x1xf32, #tpu.memory_space<vmem>>, vector<1x4x1xf32>
    %311 = vector.shape_cast %310 : vector<1x4x1xf32> to vector<4x1xf32>
    %312 = vector.extract_strided_slice %295 {offsets = [2, 0], sizes = [1, 256], strides = [1, 1]} : vector<4x256xf32> to vector<1x256xf32>
    %313 = vector.broadcast %311 : vector<4x1xf32> to vector<4x256xf32>
    %314 = vector.broadcast %312 : vector<1x256xf32> to vector<4x256xf32>
    %315 = arith.mulf %313, %314 : vector<4x256xf32>
    %316 = arith.addf %309, %315 : vector<4x256xf32>
    %c39 = arith.constant 39 : index
    %c0_100 = arith.constant 0 : index
    %c0_101 = arith.constant 0 : index
    %317 = vector.load %arg2[%c39, %c0_100, %c0_101] : memref<108x4x1xf32, #tpu.memory_space<vmem>>, vector<1x4x1xf32>
    %318 = vector.shape_cast %317 : vector<1x4x1xf32> to vector<4x1xf32>
    %319 = vector.extract_strided_slice %295 {offsets = [3, 0], sizes = [1, 256], strides = [1, 1]} : vector<4x256xf32> to vector<1x256xf32>
    %320 = vector.broadcast %318 : vector<4x1xf32> to vector<4x256xf32>
    %321 = vector.broadcast %319 : vector<1x256xf32> to vector<4x256xf32>
    %322 = arith.mulf %320, %321 : vector<4x256xf32>
    %323 = arith.addf %316, %322 : vector<4x256xf32>
    %c32_i32 = arith.constant 32 : i32
    %324 = tpu.dynamic_rotate %289 by %c32_i32 dim 1 : vector<4x256xf32>, i32 -> vector<4x256xf32>
    %c10_102 = arith.constant 10 : index
    %c0_103 = arith.constant 0 : index
    %325 = vector.load %arg3[%c10_102, %c0_103] : memref<27x256xf32, #tpu.memory_space<vmem>>, vector<1x256xf32>
    %326 = vector.broadcast %325 : vector<1x256xf32> to vector<4x256xf32>
    %327 = arith.mulf %324, %326 : vector<4x256xf32>
    %c40 = arith.constant 40 : index
    %c0_104 = arith.constant 0 : index
    %c0_105 = arith.constant 0 : index
    %328 = vector.load %arg2[%c40, %c0_104, %c0_105] : memref<108x4x1xf32, #tpu.memory_space<vmem>>, vector<1x4x1xf32>
    %329 = vector.shape_cast %328 : vector<1x4x1xf32> to vector<4x1xf32>
    %330 = vector.extract_strided_slice %327 {offsets = [0, 0], sizes = [1, 256], strides = [1, 1]} : vector<4x256xf32> to vector<1x256xf32>
    %331 = vector.broadcast %329 : vector<4x1xf32> to vector<4x256xf32>
    %332 = vector.broadcast %330 : vector<1x256xf32> to vector<4x256xf32>
    %333 = arith.mulf %331, %332 : vector<4x256xf32>
    %334 = arith.addf %323, %333 : vector<4x256xf32>
    %c41 = arith.constant 41 : index
    %c0_106 = arith.constant 0 : index
    %c0_107 = arith.constant 0 : index
    %335 = vector.load %arg2[%c41, %c0_106, %c0_107] : memref<108x4x1xf32, #tpu.memory_space<vmem>>, vector<1x4x1xf32>
    %336 = vector.shape_cast %335 : vector<1x4x1xf32> to vector<4x1xf32>
    %337 = vector.extract_strided_slice %327 {offsets = [1, 0], sizes = [1, 256], strides = [1, 1]} : vector<4x256xf32> to vector<1x256xf32>
    %338 = vector.broadcast %336 : vector<4x1xf32> to vector<4x256xf32>
    %339 = vector.broadcast %337 : vector<1x256xf32> to vector<4x256xf32>
    %340 = arith.mulf %338, %339 : vector<4x256xf32>
    %341 = arith.addf %334, %340 : vector<4x256xf32>
    %c42 = arith.constant 42 : index
    %c0_108 = arith.constant 0 : index
    %c0_109 = arith.constant 0 : index
    %342 = vector.load %arg2[%c42, %c0_108, %c0_109] : memref<108x4x1xf32, #tpu.memory_space<vmem>>, vector<1x4x1xf32>
    %343 = vector.shape_cast %342 : vector<1x4x1xf32> to vector<4x1xf32>
    %344 = vector.extract_strided_slice %327 {offsets = [2, 0], sizes = [1, 256], strides = [1, 1]} : vector<4x256xf32> to vector<1x256xf32>
    %345 = vector.broadcast %343 : vector<4x1xf32> to vector<4x256xf32>
    %346 = vector.broadcast %344 : vector<1x256xf32> to vector<4x256xf32>
    %347 = arith.mulf %345, %346 : vector<4x256xf32>
    %348 = arith.addf %341, %347 : vector<4x256xf32>
    %c43 = arith.constant 43 : index
    %c0_110 = arith.constant 0 : index
    %c0_111 = arith.constant 0 : index
    %349 = vector.load %arg2[%c43, %c0_110, %c0_111] : memref<108x4x1xf32, #tpu.memory_space<vmem>>, vector<1x4x1xf32>
    %350 = vector.shape_cast %349 : vector<1x4x1xf32> to vector<4x1xf32>
    %351 = vector.extract_strided_slice %327 {offsets = [3, 0], sizes = [1, 256], strides = [1, 1]} : vector<4x256xf32> to vector<1x256xf32>
    %352 = vector.broadcast %350 : vector<4x1xf32> to vector<4x256xf32>
    %353 = vector.broadcast %351 : vector<1x256xf32> to vector<4x256xf32>
    %354 = arith.mulf %352, %353 : vector<4x256xf32>
    %355 = arith.addf %348, %354 : vector<4x256xf32>
    %c30_i32 = arith.constant 30 : i32
    %356 = tpu.dynamic_rotate %289 by %c30_i32 dim 1 : vector<4x256xf32>, i32 -> vector<4x256xf32>
    %c11_112 = arith.constant 11 : index
    %c0_113 = arith.constant 0 : index
    %357 = vector.load %arg3[%c11_112, %c0_113] : memref<27x256xf32, #tpu.memory_space<vmem>>, vector<1x256xf32>
    %358 = vector.broadcast %357 : vector<1x256xf32> to vector<4x256xf32>
    %359 = arith.mulf %356, %358 : vector<4x256xf32>
    %c44 = arith.constant 44 : index
    %c0_114 = arith.constant 0 : index
    %c0_115 = arith.constant 0 : index
    %360 = vector.load %arg2[%c44, %c0_114, %c0_115] : memref<108x4x1xf32, #tpu.memory_space<vmem>>, vector<1x4x1xf32>
    %361 = vector.shape_cast %360 : vector<1x4x1xf32> to vector<4x1xf32>
    %362 = vector.extract_strided_slice %359 {offsets = [0, 0], sizes = [1, 256], strides = [1, 1]} : vector<4x256xf32> to vector<1x256xf32>
    %363 = vector.broadcast %361 : vector<4x1xf32> to vector<4x256xf32>
    %364 = vector.broadcast %362 : vector<1x256xf32> to vector<4x256xf32>
    %365 = arith.mulf %363, %364 : vector<4x256xf32>
    %366 = arith.addf %355, %365 : vector<4x256xf32>
    %c45 = arith.constant 45 : index
    %c0_116 = arith.constant 0 : index
    %c0_117 = arith.constant 0 : index
    %367 = vector.load %arg2[%c45, %c0_116, %c0_117] : memref<108x4x1xf32, #tpu.memory_space<vmem>>, vector<1x4x1xf32>
    %368 = vector.shape_cast %367 : vector<1x4x1xf32> to vector<4x1xf32>
    %369 = vector.extract_strided_slice %359 {offsets = [1, 0], sizes = [1, 256], strides = [1, 1]} : vector<4x256xf32> to vector<1x256xf32>
    %370 = vector.broadcast %368 : vector<4x1xf32> to vector<4x256xf32>
    %371 = vector.broadcast %369 : vector<1x256xf32> to vector<4x256xf32>
    %372 = arith.mulf %370, %371 : vector<4x256xf32>
    %373 = arith.addf %366, %372 : vector<4x256xf32>
    %c46 = arith.constant 46 : index
    %c0_118 = arith.constant 0 : index
    %c0_119 = arith.constant 0 : index
    %374 = vector.load %arg2[%c46, %c0_118, %c0_119] : memref<108x4x1xf32, #tpu.memory_space<vmem>>, vector<1x4x1xf32>
    %375 = vector.shape_cast %374 : vector<1x4x1xf32> to vector<4x1xf32>
    %376 = vector.extract_strided_slice %359 {offsets = [2, 0], sizes = [1, 256], strides = [1, 1]} : vector<4x256xf32> to vector<1x256xf32>
    %377 = vector.broadcast %375 : vector<4x1xf32> to vector<4x256xf32>
    %378 = vector.broadcast %376 : vector<1x256xf32> to vector<4x256xf32>
    %379 = arith.mulf %377, %378 : vector<4x256xf32>
    %380 = arith.addf %373, %379 : vector<4x256xf32>
    %c47 = arith.constant 47 : index
    %c0_120 = arith.constant 0 : index
    %c0_121 = arith.constant 0 : index
    %381 = vector.load %arg2[%c47, %c0_120, %c0_121] : memref<108x4x1xf32, #tpu.memory_space<vmem>>, vector<1x4x1xf32>
    %382 = vector.shape_cast %381 : vector<1x4x1xf32> to vector<4x1xf32>
    %383 = vector.extract_strided_slice %359 {offsets = [3, 0], sizes = [1, 256], strides = [1, 1]} : vector<4x256xf32> to vector<1x256xf32>
    %384 = vector.broadcast %382 : vector<4x1xf32> to vector<4x256xf32>
    %385 = vector.broadcast %383 : vector<1x256xf32> to vector<4x256xf32>
    %386 = arith.mulf %384, %385 : vector<4x256xf32>
    %387 = arith.addf %380, %386 : vector<4x256xf32>
    %c2_i32 = arith.constant 2 : i32
    %388 = tpu.dynamic_rotate %289 by %c2_i32 dim 1 : vector<4x256xf32>, i32 -> vector<4x256xf32>
    %c12_122 = arith.constant 12 : index
    %c0_123 = arith.constant 0 : index
    %389 = vector.load %arg3[%c12_122, %c0_123] : memref<27x256xf32, #tpu.memory_space<vmem>>, vector<1x256xf32>
    %390 = vector.broadcast %389 : vector<1x256xf32> to vector<4x256xf32>
    %391 = arith.mulf %388, %390 : vector<4x256xf32>
    %c48 = arith.constant 48 : index
    %c0_124 = arith.constant 0 : index
    %c0_125 = arith.constant 0 : index
    %392 = vector.load %arg2[%c48, %c0_124, %c0_125] : memref<108x4x1xf32, #tpu.memory_space<vmem>>, vector<1x4x1xf32>
    %393 = vector.shape_cast %392 : vector<1x4x1xf32> to vector<4x1xf32>
    %394 = vector.extract_strided_slice %391 {offsets = [0, 0], sizes = [1, 256], strides = [1, 1]} : vector<4x256xf32> to vector<1x256xf32>
    %395 = vector.broadcast %393 : vector<4x1xf32> to vector<4x256xf32>
    %396 = vector.broadcast %394 : vector<1x256xf32> to vector<4x256xf32>
    %397 = arith.mulf %395, %396 : vector<4x256xf32>
    %398 = arith.addf %387, %397 : vector<4x256xf32>
    %c49 = arith.constant 49 : index
    %c0_126 = arith.constant 0 : index
    %c0_127 = arith.constant 0 : index
    %399 = vector.load %arg2[%c49, %c0_126, %c0_127] : memref<108x4x1xf32, #tpu.memory_space<vmem>>, vector<1x4x1xf32>
    %400 = vector.shape_cast %399 : vector<1x4x1xf32> to vector<4x1xf32>
    %401 = vector.extract_strided_slice %391 {offsets = [1, 0], sizes = [1, 256], strides = [1, 1]} : vector<4x256xf32> to vector<1x256xf32>
    %402 = vector.broadcast %400 : vector<4x1xf32> to vector<4x256xf32>
    %403 = vector.broadcast %401 : vector<1x256xf32> to vector<4x256xf32>
    %404 = arith.mulf %402, %403 : vector<4x256xf32>
    %405 = arith.addf %398, %404 : vector<4x256xf32>
    %c50 = arith.constant 50 : index
    %c0_128 = arith.constant 0 : index
    %c0_129 = arith.constant 0 : index
    %406 = vector.load %arg2[%c50, %c0_128, %c0_129] : memref<108x4x1xf32, #tpu.memory_space<vmem>>, vector<1x4x1xf32>
    %407 = vector.shape_cast %406 : vector<1x4x1xf32> to vector<4x1xf32>
    %408 = vector.extract_strided_slice %391 {offsets = [2, 0], sizes = [1, 256], strides = [1, 1]} : vector<4x256xf32> to vector<1x256xf32>
    %409 = vector.broadcast %407 : vector<4x1xf32> to vector<4x256xf32>
    %410 = vector.broadcast %408 : vector<1x256xf32> to vector<4x256xf32>
    %411 = arith.mulf %409, %410 : vector<4x256xf32>
    %412 = arith.addf %405, %411 : vector<4x256xf32>
    %c51 = arith.constant 51 : index
    %c0_130 = arith.constant 0 : index
    %c0_131 = arith.constant 0 : index
    %413 = vector.load %arg2[%c51, %c0_130, %c0_131] : memref<108x4x1xf32, #tpu.memory_space<vmem>>, vector<1x4x1xf32>
    %414 = vector.shape_cast %413 : vector<1x4x1xf32> to vector<4x1xf32>
    %415 = vector.extract_strided_slice %391 {offsets = [3, 0], sizes = [1, 256], strides = [1, 1]} : vector<4x256xf32> to vector<1x256xf32>
    %416 = vector.broadcast %414 : vector<4x1xf32> to vector<4x256xf32>
    %417 = vector.broadcast %415 : vector<1x256xf32> to vector<4x256xf32>
    %418 = arith.mulf %416, %417 : vector<4x256xf32>
    %419 = arith.addf %412, %418 : vector<4x256xf32>
    %c52 = arith.constant 52 : index
    %c0_132 = arith.constant 0 : index
    %c0_133 = arith.constant 0 : index
    %420 = vector.load %arg2[%c52, %c0_132, %c0_133] : memref<108x4x1xf32, #tpu.memory_space<vmem>>, vector<1x4x1xf32>
    %421 = vector.shape_cast %420 : vector<1x4x1xf32> to vector<4x1xf32>
    %422 = vector.extract_strided_slice %289 {offsets = [0, 0], sizes = [1, 256], strides = [1, 1]} : vector<4x256xf32> to vector<1x256xf32>
    %423 = vector.broadcast %421 : vector<4x1xf32> to vector<4x256xf32>
    %424 = vector.broadcast %422 : vector<1x256xf32> to vector<4x256xf32>
    %425 = arith.mulf %423, %424 : vector<4x256xf32>
    %426 = arith.addf %419, %425 : vector<4x256xf32>
    %c53 = arith.constant 53 : index
    %c0_134 = arith.constant 0 : index
    %c0_135 = arith.constant 0 : index
    %427 = vector.load %arg2[%c53, %c0_134, %c0_135] : memref<108x4x1xf32, #tpu.memory_space<vmem>>, vector<1x4x1xf32>
    %428 = vector.shape_cast %427 : vector<1x4x1xf32> to vector<4x1xf32>
    %429 = vector.extract_strided_slice %289 {offsets = [1, 0], sizes = [1, 256], strides = [1, 1]} : vector<4x256xf32> to vector<1x256xf32>
    %430 = vector.broadcast %428 : vector<4x1xf32> to vector<4x256xf32>
    %431 = vector.broadcast %429 : vector<1x256xf32> to vector<4x256xf32>
    %432 = arith.mulf %430, %431 : vector<4x256xf32>
    %433 = arith.addf %426, %432 : vector<4x256xf32>
    %c54 = arith.constant 54 : index
    %c0_136 = arith.constant 0 : index
    %c0_137 = arith.constant 0 : index
    %434 = vector.load %arg2[%c54, %c0_136, %c0_137] : memref<108x4x1xf32, #tpu.memory_space<vmem>>, vector<1x4x1xf32>
    %435 = vector.shape_cast %434 : vector<1x4x1xf32> to vector<4x1xf32>
    %436 = vector.extract_strided_slice %289 {offsets = [2, 0], sizes = [1, 256], strides = [1, 1]} : vector<4x256xf32> to vector<1x256xf32>
    %437 = vector.broadcast %435 : vector<4x1xf32> to vector<4x256xf32>
    %438 = vector.broadcast %436 : vector<1x256xf32> to vector<4x256xf32>
    %439 = arith.mulf %437, %438 : vector<4x256xf32>
    %440 = arith.addf %433, %439 : vector<4x256xf32>
    %c55 = arith.constant 55 : index
    %c0_138 = arith.constant 0 : index
    %c0_139 = arith.constant 0 : index
    %441 = vector.load %arg2[%c55, %c0_138, %c0_139] : memref<108x4x1xf32, #tpu.memory_space<vmem>>, vector<1x4x1xf32>
    %442 = vector.shape_cast %441 : vector<1x4x1xf32> to vector<4x1xf32>
    %443 = vector.extract_strided_slice %289 {offsets = [3, 0], sizes = [1, 256], strides = [1, 1]} : vector<4x256xf32> to vector<1x256xf32>
    %444 = vector.broadcast %442 : vector<4x1xf32> to vector<4x256xf32>
    %445 = vector.broadcast %443 : vector<1x256xf32> to vector<4x256xf32>
    %446 = arith.mulf %444, %445 : vector<4x256xf32>
    %447 = arith.addf %440, %446 : vector<4x256xf32>
    %c254_i32 = arith.constant 254 : i32
    %448 = tpu.dynamic_rotate %289 by %c254_i32 dim 1 : vector<4x256xf32>, i32 -> vector<4x256xf32>
    %c14_140 = arith.constant 14 : index
    %c0_141 = arith.constant 0 : index
    %449 = vector.load %arg3[%c14_140, %c0_141] : memref<27x256xf32, #tpu.memory_space<vmem>>, vector<1x256xf32>
    %450 = vector.broadcast %449 : vector<1x256xf32> to vector<4x256xf32>
    %451 = arith.mulf %448, %450 : vector<4x256xf32>
    %c56 = arith.constant 56 : index
    %c0_142 = arith.constant 0 : index
    %c0_143 = arith.constant 0 : index
    %452 = vector.load %arg2[%c56, %c0_142, %c0_143] : memref<108x4x1xf32, #tpu.memory_space<vmem>>, vector<1x4x1xf32>
    %453 = vector.shape_cast %452 : vector<1x4x1xf32> to vector<4x1xf32>
    %454 = vector.extract_strided_slice %451 {offsets = [0, 0], sizes = [1, 256], strides = [1, 1]} : vector<4x256xf32> to vector<1x256xf32>
    %455 = vector.broadcast %453 : vector<4x1xf32> to vector<4x256xf32>
    %456 = vector.broadcast %454 : vector<1x256xf32> to vector<4x256xf32>
    %457 = arith.mulf %455, %456 : vector<4x256xf32>
    %458 = arith.addf %447, %457 : vector<4x256xf32>
    %c57 = arith.constant 57 : index
    %c0_144 = arith.constant 0 : index
    %c0_145 = arith.constant 0 : index
    %459 = vector.load %arg2[%c57, %c0_144, %c0_145] : memref<108x4x1xf32, #tpu.memory_space<vmem>>, vector<1x4x1xf32>
    %460 = vector.shape_cast %459 : vector<1x4x1xf32> to vector<4x1xf32>
    %461 = vector.extract_strided_slice %451 {offsets = [1, 0], sizes = [1, 256], strides = [1, 1]} : vector<4x256xf32> to vector<1x256xf32>
    %462 = vector.broadcast %460 : vector<4x1xf32> to vector<4x256xf32>
    %463 = vector.broadcast %461 : vector<1x256xf32> to vector<4x256xf32>
    %464 = arith.mulf %462, %463 : vector<4x256xf32>
    %465 = arith.addf %458, %464 : vector<4x256xf32>
    %c58 = arith.constant 58 : index
    %c0_146 = arith.constant 0 : index
    %c0_147 = arith.constant 0 : index
    %466 = vector.load %arg2[%c58, %c0_146, %c0_147] : memref<108x4x1xf32, #tpu.memory_space<vmem>>, vector<1x4x1xf32>
    %467 = vector.shape_cast %466 : vector<1x4x1xf32> to vector<4x1xf32>
    %468 = vector.extract_strided_slice %451 {offsets = [2, 0], sizes = [1, 256], strides = [1, 1]} : vector<4x256xf32> to vector<1x256xf32>
    %469 = vector.broadcast %467 : vector<4x1xf32> to vector<4x256xf32>
    %470 = vector.broadcast %468 : vector<1x256xf32> to vector<4x256xf32>
    %471 = arith.mulf %469, %470 : vector<4x256xf32>
    %472 = arith.addf %465, %471 : vector<4x256xf32>
    %c59 = arith.constant 59 : index
    %c0_148 = arith.constant 0 : index
    %c0_149 = arith.constant 0 : index
    %473 = vector.load %arg2[%c59, %c0_148, %c0_149] : memref<108x4x1xf32, #tpu.memory_space<vmem>>, vector<1x4x1xf32>
    %474 = vector.shape_cast %473 : vector<1x4x1xf32> to vector<4x1xf32>
    %475 = vector.extract_strided_slice %451 {offsets = [3, 0], sizes = [1, 256], strides = [1, 1]} : vector<4x256xf32> to vector<1x256xf32>
    %476 = vector.broadcast %474 : vector<4x1xf32> to vector<4x256xf32>
    %477 = vector.broadcast %475 : vector<1x256xf32> to vector<4x256xf32>
    %478 = arith.mulf %476, %477 : vector<4x256xf32>
    %479 = arith.addf %472, %478 : vector<4x256xf32>
    %c226_i32 = arith.constant 226 : i32
    %480 = tpu.dynamic_rotate %289 by %c226_i32 dim 1 : vector<4x256xf32>, i32 -> vector<4x256xf32>
    %c15_150 = arith.constant 15 : index
    %c0_151 = arith.constant 0 : index
    %481 = vector.load %arg3[%c15_150, %c0_151] : memref<27x256xf32, #tpu.memory_space<vmem>>, vector<1x256xf32>
    %482 = vector.broadcast %481 : vector<1x256xf32> to vector<4x256xf32>
    %483 = arith.mulf %480, %482 : vector<4x256xf32>
    %c60 = arith.constant 60 : index
    %c0_152 = arith.constant 0 : index
    %c0_153 = arith.constant 0 : index
    %484 = vector.load %arg2[%c60, %c0_152, %c0_153] : memref<108x4x1xf32, #tpu.memory_space<vmem>>, vector<1x4x1xf32>
    %485 = vector.shape_cast %484 : vector<1x4x1xf32> to vector<4x1xf32>
    %486 = vector.extract_strided_slice %483 {offsets = [0, 0], sizes = [1, 256], strides = [1, 1]} : vector<4x256xf32> to vector<1x256xf32>
    %487 = vector.broadcast %485 : vector<4x1xf32> to vector<4x256xf32>
    %488 = vector.broadcast %486 : vector<1x256xf32> to vector<4x256xf32>
    %489 = arith.mulf %487, %488 : vector<4x256xf32>
    %490 = arith.addf %479, %489 : vector<4x256xf32>
    %c61 = arith.constant 61 : index
    %c0_154 = arith.constant 0 : index
    %c0_155 = arith.constant 0 : index
    %491 = vector.load %arg2[%c61, %c0_154, %c0_155] : memref<108x4x1xf32, #tpu.memory_space<vmem>>, vector<1x4x1xf32>
    %492 = vector.shape_cast %491 : vector<1x4x1xf32> to vector<4x1xf32>
    %493 = vector.extract_strided_slice %483 {offsets = [1, 0], sizes = [1, 256], strides = [1, 1]} : vector<4x256xf32> to vector<1x256xf32>
    %494 = vector.broadcast %492 : vector<4x1xf32> to vector<4x256xf32>
    %495 = vector.broadcast %493 : vector<1x256xf32> to vector<4x256xf32>
    %496 = arith.mulf %494, %495 : vector<4x256xf32>
    %497 = arith.addf %490, %496 : vector<4x256xf32>
    %c62 = arith.constant 62 : index
    %c0_156 = arith.constant 0 : index
    %c0_157 = arith.constant 0 : index
    %498 = vector.load %arg2[%c62, %c0_156, %c0_157] : memref<108x4x1xf32, #tpu.memory_space<vmem>>, vector<1x4x1xf32>
    %499 = vector.shape_cast %498 : vector<1x4x1xf32> to vector<4x1xf32>
    %500 = vector.extract_strided_slice %483 {offsets = [2, 0], sizes = [1, 256], strides = [1, 1]} : vector<4x256xf32> to vector<1x256xf32>
    %501 = vector.broadcast %499 : vector<4x1xf32> to vector<4x256xf32>
    %502 = vector.broadcast %500 : vector<1x256xf32> to vector<4x256xf32>
    %503 = arith.mulf %501, %502 : vector<4x256xf32>
    %504 = arith.addf %497, %503 : vector<4x256xf32>
    %c63 = arith.constant 63 : index
    %c0_158 = arith.constant 0 : index
    %c0_159 = arith.constant 0 : index
    %505 = vector.load %arg2[%c63, %c0_158, %c0_159] : memref<108x4x1xf32, #tpu.memory_space<vmem>>, vector<1x4x1xf32>
    %506 = vector.shape_cast %505 : vector<1x4x1xf32> to vector<4x1xf32>
    %507 = vector.extract_strided_slice %483 {offsets = [3, 0], sizes = [1, 256], strides = [1, 1]} : vector<4x256xf32> to vector<1x256xf32>
    %508 = vector.broadcast %506 : vector<4x1xf32> to vector<4x256xf32>
    %509 = vector.broadcast %507 : vector<1x256xf32> to vector<4x256xf32>
    %510 = arith.mulf %508, %509 : vector<4x256xf32>
    %511 = arith.addf %504, %510 : vector<4x256xf32>
    %c224_i32 = arith.constant 224 : i32
    %512 = tpu.dynamic_rotate %289 by %c224_i32 dim 1 : vector<4x256xf32>, i32 -> vector<4x256xf32>
    %c16_160 = arith.constant 16 : index
    %c0_161 = arith.constant 0 : index
    %513 = vector.load %arg3[%c16_160, %c0_161] : memref<27x256xf32, #tpu.memory_space<vmem>>, vector<1x256xf32>
    %514 = vector.broadcast %513 : vector<1x256xf32> to vector<4x256xf32>
    %515 = arith.mulf %512, %514 : vector<4x256xf32>
    %c64 = arith.constant 64 : index
    %c0_162 = arith.constant 0 : index
    %c0_163 = arith.constant 0 : index
    %516 = vector.load %arg2[%c64, %c0_162, %c0_163] : memref<108x4x1xf32, #tpu.memory_space<vmem>>, vector<1x4x1xf32>
    %517 = vector.shape_cast %516 : vector<1x4x1xf32> to vector<4x1xf32>
    %518 = vector.extract_strided_slice %515 {offsets = [0, 0], sizes = [1, 256], strides = [1, 1]} : vector<4x256xf32> to vector<1x256xf32>
    %519 = vector.broadcast %517 : vector<4x1xf32> to vector<4x256xf32>
    %520 = vector.broadcast %518 : vector<1x256xf32> to vector<4x256xf32>
    %521 = arith.mulf %519, %520 : vector<4x256xf32>
    %522 = arith.addf %511, %521 : vector<4x256xf32>
    %c65 = arith.constant 65 : index
    %c0_164 = arith.constant 0 : index
    %c0_165 = arith.constant 0 : index
    %523 = vector.load %arg2[%c65, %c0_164, %c0_165] : memref<108x4x1xf32, #tpu.memory_space<vmem>>, vector<1x4x1xf32>
    %524 = vector.shape_cast %523 : vector<1x4x1xf32> to vector<4x1xf32>
    %525 = vector.extract_strided_slice %515 {offsets = [1, 0], sizes = [1, 256], strides = [1, 1]} : vector<4x256xf32> to vector<1x256xf32>
    %526 = vector.broadcast %524 : vector<4x1xf32> to vector<4x256xf32>
    %527 = vector.broadcast %525 : vector<1x256xf32> to vector<4x256xf32>
    %528 = arith.mulf %526, %527 : vector<4x256xf32>
    %529 = arith.addf %522, %528 : vector<4x256xf32>
    %c66 = arith.constant 66 : index
    %c0_166 = arith.constant 0 : index
    %c0_167 = arith.constant 0 : index
    %530 = vector.load %arg2[%c66, %c0_166, %c0_167] : memref<108x4x1xf32, #tpu.memory_space<vmem>>, vector<1x4x1xf32>
    %531 = vector.shape_cast %530 : vector<1x4x1xf32> to vector<4x1xf32>
    %532 = vector.extract_strided_slice %515 {offsets = [2, 0], sizes = [1, 256], strides = [1, 1]} : vector<4x256xf32> to vector<1x256xf32>
    %533 = vector.broadcast %531 : vector<4x1xf32> to vector<4x256xf32>
    %534 = vector.broadcast %532 : vector<1x256xf32> to vector<4x256xf32>
    %535 = arith.mulf %533, %534 : vector<4x256xf32>
    %536 = arith.addf %529, %535 : vector<4x256xf32>
    %c67 = arith.constant 67 : index
    %c0_168 = arith.constant 0 : index
    %c0_169 = arith.constant 0 : index
    %537 = vector.load %arg2[%c67, %c0_168, %c0_169] : memref<108x4x1xf32, #tpu.memory_space<vmem>>, vector<1x4x1xf32>
    %538 = vector.shape_cast %537 : vector<1x4x1xf32> to vector<4x1xf32>
    %539 = vector.extract_strided_slice %515 {offsets = [3, 0], sizes = [1, 256], strides = [1, 1]} : vector<4x256xf32> to vector<1x256xf32>
    %540 = vector.broadcast %538 : vector<4x1xf32> to vector<4x256xf32>
    %541 = vector.broadcast %539 : vector<1x256xf32> to vector<4x256xf32>
    %542 = arith.mulf %540, %541 : vector<4x256xf32>
    %543 = arith.addf %536, %542 : vector<4x256xf32>
    %c222_i32 = arith.constant 222 : i32
    %544 = tpu.dynamic_rotate %289 by %c222_i32 dim 1 : vector<4x256xf32>, i32 -> vector<4x256xf32>
    %c17_170 = arith.constant 17 : index
    %c0_171 = arith.constant 0 : index
    %545 = vector.load %arg3[%c17_170, %c0_171] : memref<27x256xf32, #tpu.memory_space<vmem>>, vector<1x256xf32>
    %546 = vector.broadcast %545 : vector<1x256xf32> to vector<4x256xf32>
    %547 = arith.mulf %544, %546 : vector<4x256xf32>
    %c68 = arith.constant 68 : index
    %c0_172 = arith.constant 0 : index
    %c0_173 = arith.constant 0 : index
    %548 = vector.load %arg2[%c68, %c0_172, %c0_173] : memref<108x4x1xf32, #tpu.memory_space<vmem>>, vector<1x4x1xf32>
    %549 = vector.shape_cast %548 : vector<1x4x1xf32> to vector<4x1xf32>
    %550 = vector.extract_strided_slice %547 {offsets = [0, 0], sizes = [1, 256], strides = [1, 1]} : vector<4x256xf32> to vector<1x256xf32>
    %551 = vector.broadcast %549 : vector<4x1xf32> to vector<4x256xf32>
    %552 = vector.broadcast %550 : vector<1x256xf32> to vector<4x256xf32>
    %553 = arith.mulf %551, %552 : vector<4x256xf32>
    %554 = arith.addf %543, %553 : vector<4x256xf32>
    %c69 = arith.constant 69 : index
    %c0_174 = arith.constant 0 : index
    %c0_175 = arith.constant 0 : index
    %555 = vector.load %arg2[%c69, %c0_174, %c0_175] : memref<108x4x1xf32, #tpu.memory_space<vmem>>, vector<1x4x1xf32>
    %556 = vector.shape_cast %555 : vector<1x4x1xf32> to vector<4x1xf32>
    %557 = vector.extract_strided_slice %547 {offsets = [1, 0], sizes = [1, 256], strides = [1, 1]} : vector<4x256xf32> to vector<1x256xf32>
    %558 = vector.broadcast %556 : vector<4x1xf32> to vector<4x256xf32>
    %559 = vector.broadcast %557 : vector<1x256xf32> to vector<4x256xf32>
    %560 = arith.mulf %558, %559 : vector<4x256xf32>
    %561 = arith.addf %554, %560 : vector<4x256xf32>
    %c70 = arith.constant 70 : index
    %c0_176 = arith.constant 0 : index
    %c0_177 = arith.constant 0 : index
    %562 = vector.load %arg2[%c70, %c0_176, %c0_177] : memref<108x4x1xf32, #tpu.memory_space<vmem>>, vector<1x4x1xf32>
    %563 = vector.shape_cast %562 : vector<1x4x1xf32> to vector<4x1xf32>
    %564 = vector.extract_strided_slice %547 {offsets = [2, 0], sizes = [1, 256], strides = [1, 1]} : vector<4x256xf32> to vector<1x256xf32>
    %565 = vector.broadcast %563 : vector<4x1xf32> to vector<4x256xf32>
    %566 = vector.broadcast %564 : vector<1x256xf32> to vector<4x256xf32>
    %567 = arith.mulf %565, %566 : vector<4x256xf32>
    %568 = arith.addf %561, %567 : vector<4x256xf32>
    %c71 = arith.constant 71 : index
    %c0_178 = arith.constant 0 : index
    %c0_179 = arith.constant 0 : index
    %569 = vector.load %arg2[%c71, %c0_178, %c0_179] : memref<108x4x1xf32, #tpu.memory_space<vmem>>, vector<1x4x1xf32>
    %570 = vector.shape_cast %569 : vector<1x4x1xf32> to vector<4x1xf32>
    %571 = vector.extract_strided_slice %547 {offsets = [3, 0], sizes = [1, 256], strides = [1, 1]} : vector<4x256xf32> to vector<1x256xf32>
    %572 = vector.broadcast %570 : vector<4x1xf32> to vector<4x256xf32>
    %573 = vector.broadcast %571 : vector<1x256xf32> to vector<4x256xf32>
    %574 = arith.mulf %572, %573 : vector<4x256xf32>
    %575 = arith.addf %568, %574 : vector<4x256xf32>
    %cst_180 = arith.constant 0.000000e+00 : f32
    %576 = vector.broadcast %cst_180 : f32 to vector<4x256xf32>
    %577 = arith.maximumf %575, %576 : vector<4x256xf32>
    %578 = arith.addf %290, %577 : vector<4x256xf32>
    %cst_181 = arith.constant 0.000000e+00 : f32
    %579 = vector.broadcast %cst_181 : f32 to vector<4x256xf32>
    %c68_i32 = arith.constant 68 : i32
    %580 = tpu.dynamic_rotate %577 by %c68_i32 dim 1 : vector<4x256xf32>, i32 -> vector<4x256xf32>
    %c18_182 = arith.constant 18 : index
    %c0_183 = arith.constant 0 : index
    %581 = vector.load %arg3[%c18_182, %c0_183] : memref<27x256xf32, #tpu.memory_space<vmem>>, vector<1x256xf32>
    %582 = vector.broadcast %581 : vector<1x256xf32> to vector<4x256xf32>
    %583 = arith.mulf %580, %582 : vector<4x256xf32>
    %c72 = arith.constant 72 : index
    %c0_184 = arith.constant 0 : index
    %c0_185 = arith.constant 0 : index
    %584 = vector.load %arg2[%c72, %c0_184, %c0_185] : memref<108x4x1xf32, #tpu.memory_space<vmem>>, vector<1x4x1xf32>
    %585 = vector.shape_cast %584 : vector<1x4x1xf32> to vector<4x1xf32>
    %586 = vector.extract_strided_slice %583 {offsets = [0, 0], sizes = [1, 256], strides = [1, 1]} : vector<4x256xf32> to vector<1x256xf32>
    %587 = vector.broadcast %585 : vector<4x1xf32> to vector<4x256xf32>
    %588 = vector.broadcast %586 : vector<1x256xf32> to vector<4x256xf32>
    %589 = arith.mulf %587, %588 : vector<4x256xf32>
    %590 = arith.addf %579, %589 : vector<4x256xf32>
    %c73 = arith.constant 73 : index
    %c0_186 = arith.constant 0 : index
    %c0_187 = arith.constant 0 : index
    %591 = vector.load %arg2[%c73, %c0_186, %c0_187] : memref<108x4x1xf32, #tpu.memory_space<vmem>>, vector<1x4x1xf32>
    %592 = vector.shape_cast %591 : vector<1x4x1xf32> to vector<4x1xf32>
    %593 = vector.extract_strided_slice %583 {offsets = [1, 0], sizes = [1, 256], strides = [1, 1]} : vector<4x256xf32> to vector<1x256xf32>
    %594 = vector.broadcast %592 : vector<4x1xf32> to vector<4x256xf32>
    %595 = vector.broadcast %593 : vector<1x256xf32> to vector<4x256xf32>
    %596 = arith.mulf %594, %595 : vector<4x256xf32>
    %597 = arith.addf %590, %596 : vector<4x256xf32>
    %c74 = arith.constant 74 : index
    %c0_188 = arith.constant 0 : index
    %c0_189 = arith.constant 0 : index
    %598 = vector.load %arg2[%c74, %c0_188, %c0_189] : memref<108x4x1xf32, #tpu.memory_space<vmem>>, vector<1x4x1xf32>
    %599 = vector.shape_cast %598 : vector<1x4x1xf32> to vector<4x1xf32>
    %600 = vector.extract_strided_slice %583 {offsets = [2, 0], sizes = [1, 256], strides = [1, 1]} : vector<4x256xf32> to vector<1x256xf32>
    %601 = vector.broadcast %599 : vector<4x1xf32> to vector<4x256xf32>
    %602 = vector.broadcast %600 : vector<1x256xf32> to vector<4x256xf32>
    %603 = arith.mulf %601, %602 : vector<4x256xf32>
    %604 = arith.addf %597, %603 : vector<4x256xf32>
    %c75 = arith.constant 75 : index
    %c0_190 = arith.constant 0 : index
    %c0_191 = arith.constant 0 : index
    %605 = vector.load %arg2[%c75, %c0_190, %c0_191] : memref<108x4x1xf32, #tpu.memory_space<vmem>>, vector<1x4x1xf32>
    %606 = vector.shape_cast %605 : vector<1x4x1xf32> to vector<4x1xf32>
    %607 = vector.extract_strided_slice %583 {offsets = [3, 0], sizes = [1, 256], strides = [1, 1]} : vector<4x256xf32> to vector<1x256xf32>
    %608 = vector.broadcast %606 : vector<4x1xf32> to vector<4x256xf32>
    %609 = vector.broadcast %607 : vector<1x256xf32> to vector<4x256xf32>
    %610 = arith.mulf %608, %609 : vector<4x256xf32>
    %611 = arith.addf %604, %610 : vector<4x256xf32>
    %c64_i32 = arith.constant 64 : i32
    %612 = tpu.dynamic_rotate %577 by %c64_i32 dim 1 : vector<4x256xf32>, i32 -> vector<4x256xf32>
    %c19_192 = arith.constant 19 : index
    %c0_193 = arith.constant 0 : index
    %613 = vector.load %arg3[%c19_192, %c0_193] : memref<27x256xf32, #tpu.memory_space<vmem>>, vector<1x256xf32>
    %614 = vector.broadcast %613 : vector<1x256xf32> to vector<4x256xf32>
    %615 = arith.mulf %612, %614 : vector<4x256xf32>
    %c76 = arith.constant 76 : index
    %c0_194 = arith.constant 0 : index
    %c0_195 = arith.constant 0 : index
    %616 = vector.load %arg2[%c76, %c0_194, %c0_195] : memref<108x4x1xf32, #tpu.memory_space<vmem>>, vector<1x4x1xf32>
    %617 = vector.shape_cast %616 : vector<1x4x1xf32> to vector<4x1xf32>
    %618 = vector.extract_strided_slice %615 {offsets = [0, 0], sizes = [1, 256], strides = [1, 1]} : vector<4x256xf32> to vector<1x256xf32>
    %619 = vector.broadcast %617 : vector<4x1xf32> to vector<4x256xf32>
    %620 = vector.broadcast %618 : vector<1x256xf32> to vector<4x256xf32>
    %621 = arith.mulf %619, %620 : vector<4x256xf32>
    %622 = arith.addf %611, %621 : vector<4x256xf32>
    %c77 = arith.constant 77 : index
    %c0_196 = arith.constant 0 : index
    %c0_197 = arith.constant 0 : index
    %623 = vector.load %arg2[%c77, %c0_196, %c0_197] : memref<108x4x1xf32, #tpu.memory_space<vmem>>, vector<1x4x1xf32>
    %624 = vector.shape_cast %623 : vector<1x4x1xf32> to vector<4x1xf32>
    %625 = vector.extract_strided_slice %615 {offsets = [1, 0], sizes = [1, 256], strides = [1, 1]} : vector<4x256xf32> to vector<1x256xf32>
    %626 = vector.broadcast %624 : vector<4x1xf32> to vector<4x256xf32>
    %627 = vector.broadcast %625 : vector<1x256xf32> to vector<4x256xf32>
    %628 = arith.mulf %626, %627 : vector<4x256xf32>
    %629 = arith.addf %622, %628 : vector<4x256xf32>
    %c78 = arith.constant 78 : index
    %c0_198 = arith.constant 0 : index
    %c0_199 = arith.constant 0 : index
    %630 = vector.load %arg2[%c78, %c0_198, %c0_199] : memref<108x4x1xf32, #tpu.memory_space<vmem>>, vector<1x4x1xf32>
    %631 = vector.shape_cast %630 : vector<1x4x1xf32> to vector<4x1xf32>
    %632 = vector.extract_strided_slice %615 {offsets = [2, 0], sizes = [1, 256], strides = [1, 1]} : vector<4x256xf32> to vector<1x256xf32>
    %633 = vector.broadcast %631 : vector<4x1xf32> to vector<4x256xf32>
    %634 = vector.broadcast %632 : vector<1x256xf32> to vector<4x256xf32>
    %635 = arith.mulf %633, %634 : vector<4x256xf32>
    %636 = arith.addf %629, %635 : vector<4x256xf32>
    %c79 = arith.constant 79 : index
    %c0_200 = arith.constant 0 : index
    %c0_201 = arith.constant 0 : index
    %637 = vector.load %arg2[%c79, %c0_200, %c0_201] : memref<108x4x1xf32, #tpu.memory_space<vmem>>, vector<1x4x1xf32>
    %638 = vector.shape_cast %637 : vector<1x4x1xf32> to vector<4x1xf32>
    %639 = vector.extract_strided_slice %615 {offsets = [3, 0], sizes = [1, 256], strides = [1, 1]} : vector<4x256xf32> to vector<1x256xf32>
    %640 = vector.broadcast %638 : vector<4x1xf32> to vector<4x256xf32>
    %641 = vector.broadcast %639 : vector<1x256xf32> to vector<4x256xf32>
    %642 = arith.mulf %640, %641 : vector<4x256xf32>
    %643 = arith.addf %636, %642 : vector<4x256xf32>
    %c60_i32 = arith.constant 60 : i32
    %644 = tpu.dynamic_rotate %577 by %c60_i32 dim 1 : vector<4x256xf32>, i32 -> vector<4x256xf32>
    %c20_202 = arith.constant 20 : index
    %c0_203 = arith.constant 0 : index
    %645 = vector.load %arg3[%c20_202, %c0_203] : memref<27x256xf32, #tpu.memory_space<vmem>>, vector<1x256xf32>
    %646 = vector.broadcast %645 : vector<1x256xf32> to vector<4x256xf32>
    %647 = arith.mulf %644, %646 : vector<4x256xf32>
    %c80 = arith.constant 80 : index
    %c0_204 = arith.constant 0 : index
    %c0_205 = arith.constant 0 : index
    %648 = vector.load %arg2[%c80, %c0_204, %c0_205] : memref<108x4x1xf32, #tpu.memory_space<vmem>>, vector<1x4x1xf32>
    %649 = vector.shape_cast %648 : vector<1x4x1xf32> to vector<4x1xf32>
    %650 = vector.extract_strided_slice %647 {offsets = [0, 0], sizes = [1, 256], strides = [1, 1]} : vector<4x256xf32> to vector<1x256xf32>
    %651 = vector.broadcast %649 : vector<4x1xf32> to vector<4x256xf32>
    %652 = vector.broadcast %650 : vector<1x256xf32> to vector<4x256xf32>
    %653 = arith.mulf %651, %652 : vector<4x256xf32>
    %654 = arith.addf %643, %653 : vector<4x256xf32>
    %c81 = arith.constant 81 : index
    %c0_206 = arith.constant 0 : index
    %c0_207 = arith.constant 0 : index
    %655 = vector.load %arg2[%c81, %c0_206, %c0_207] : memref<108x4x1xf32, #tpu.memory_space<vmem>>, vector<1x4x1xf32>
    %656 = vector.shape_cast %655 : vector<1x4x1xf32> to vector<4x1xf32>
    %657 = vector.extract_strided_slice %647 {offsets = [1, 0], sizes = [1, 256], strides = [1, 1]} : vector<4x256xf32> to vector<1x256xf32>
    %658 = vector.broadcast %656 : vector<4x1xf32> to vector<4x256xf32>
    %659 = vector.broadcast %657 : vector<1x256xf32> to vector<4x256xf32>
    %660 = arith.mulf %658, %659 : vector<4x256xf32>
    %661 = arith.addf %654, %660 : vector<4x256xf32>
    %c82 = arith.constant 82 : index
    %c0_208 = arith.constant 0 : index
    %c0_209 = arith.constant 0 : index
    %662 = vector.load %arg2[%c82, %c0_208, %c0_209] : memref<108x4x1xf32, #tpu.memory_space<vmem>>, vector<1x4x1xf32>
    %663 = vector.shape_cast %662 : vector<1x4x1xf32> to vector<4x1xf32>
    %664 = vector.extract_strided_slice %647 {offsets = [2, 0], sizes = [1, 256], strides = [1, 1]} : vector<4x256xf32> to vector<1x256xf32>
    %665 = vector.broadcast %663 : vector<4x1xf32> to vector<4x256xf32>
    %666 = vector.broadcast %664 : vector<1x256xf32> to vector<4x256xf32>
    %667 = arith.mulf %665, %666 : vector<4x256xf32>
    %668 = arith.addf %661, %667 : vector<4x256xf32>
    %c83 = arith.constant 83 : index
    %c0_210 = arith.constant 0 : index
    %c0_211 = arith.constant 0 : index
    %669 = vector.load %arg2[%c83, %c0_210, %c0_211] : memref<108x4x1xf32, #tpu.memory_space<vmem>>, vector<1x4x1xf32>
    %670 = vector.shape_cast %669 : vector<1x4x1xf32> to vector<4x1xf32>
    %671 = vector.extract_strided_slice %647 {offsets = [3, 0], sizes = [1, 256], strides = [1, 1]} : vector<4x256xf32> to vector<1x256xf32>
    %672 = vector.broadcast %670 : vector<4x1xf32> to vector<4x256xf32>
    %673 = vector.broadcast %671 : vector<1x256xf32> to vector<4x256xf32>
    %674 = arith.mulf %672, %673 : vector<4x256xf32>
    %675 = arith.addf %668, %674 : vector<4x256xf32>
    %c4_i32 = arith.constant 4 : i32
    %676 = tpu.dynamic_rotate %577 by %c4_i32 dim 1 : vector<4x256xf32>, i32 -> vector<4x256xf32>
    %c21_212 = arith.constant 21 : index
    %c0_213 = arith.constant 0 : index
    %677 = vector.load %arg3[%c21_212, %c0_213] : memref<27x256xf32, #tpu.memory_space<vmem>>, vector<1x256xf32>
    %678 = vector.broadcast %677 : vector<1x256xf32> to vector<4x256xf32>
    %679 = arith.mulf %676, %678 : vector<4x256xf32>
    %c84 = arith.constant 84 : index
    %c0_214 = arith.constant 0 : index
    %c0_215 = arith.constant 0 : index
    %680 = vector.load %arg2[%c84, %c0_214, %c0_215] : memref<108x4x1xf32, #tpu.memory_space<vmem>>, vector<1x4x1xf32>
    %681 = vector.shape_cast %680 : vector<1x4x1xf32> to vector<4x1xf32>
    %682 = vector.extract_strided_slice %679 {offsets = [0, 0], sizes = [1, 256], strides = [1, 1]} : vector<4x256xf32> to vector<1x256xf32>
    %683 = vector.broadcast %681 : vector<4x1xf32> to vector<4x256xf32>
    %684 = vector.broadcast %682 : vector<1x256xf32> to vector<4x256xf32>
    %685 = arith.mulf %683, %684 : vector<4x256xf32>
    %686 = arith.addf %675, %685 : vector<4x256xf32>
    %c85 = arith.constant 85 : index
    %c0_216 = arith.constant 0 : index
    %c0_217 = arith.constant 0 : index
    %687 = vector.load %arg2[%c85, %c0_216, %c0_217] : memref<108x4x1xf32, #tpu.memory_space<vmem>>, vector<1x4x1xf32>
    %688 = vector.shape_cast %687 : vector<1x4x1xf32> to vector<4x1xf32>
    %689 = vector.extract_strided_slice %679 {offsets = [1, 0], sizes = [1, 256], strides = [1, 1]} : vector<4x256xf32> to vector<1x256xf32>
    %690 = vector.broadcast %688 : vector<4x1xf32> to vector<4x256xf32>
    %691 = vector.broadcast %689 : vector<1x256xf32> to vector<4x256xf32>
    %692 = arith.mulf %690, %691 : vector<4x256xf32>
    %693 = arith.addf %686, %692 : vector<4x256xf32>
    %c86 = arith.constant 86 : index
    %c0_218 = arith.constant 0 : index
    %c0_219 = arith.constant 0 : index
    %694 = vector.load %arg2[%c86, %c0_218, %c0_219] : memref<108x4x1xf32, #tpu.memory_space<vmem>>, vector<1x4x1xf32>
    %695 = vector.shape_cast %694 : vector<1x4x1xf32> to vector<4x1xf32>
    %696 = vector.extract_strided_slice %679 {offsets = [2, 0], sizes = [1, 256], strides = [1, 1]} : vector<4x256xf32> to vector<1x256xf32>
    %697 = vector.broadcast %695 : vector<4x1xf32> to vector<4x256xf32>
    %698 = vector.broadcast %696 : vector<1x256xf32> to vector<4x256xf32>
    %699 = arith.mulf %697, %698 : vector<4x256xf32>
    %700 = arith.addf %693, %699 : vector<4x256xf32>
    %c87 = arith.constant 87 : index
    %c0_220 = arith.constant 0 : index
    %c0_221 = arith.constant 0 : index
    %701 = vector.load %arg2[%c87, %c0_220, %c0_221] : memref<108x4x1xf32, #tpu.memory_space<vmem>>, vector<1x4x1xf32>
    %702 = vector.shape_cast %701 : vector<1x4x1xf32> to vector<4x1xf32>
    %703 = vector.extract_strided_slice %679 {offsets = [3, 0], sizes = [1, 256], strides = [1, 1]} : vector<4x256xf32> to vector<1x256xf32>
    %704 = vector.broadcast %702 : vector<4x1xf32> to vector<4x256xf32>
    %705 = vector.broadcast %703 : vector<1x256xf32> to vector<4x256xf32>
    %706 = arith.mulf %704, %705 : vector<4x256xf32>
    %707 = arith.addf %700, %706 : vector<4x256xf32>
    %c88 = arith.constant 88 : index
    %c0_222 = arith.constant 0 : index
    %c0_223 = arith.constant 0 : index
    %708 = vector.load %arg2[%c88, %c0_222, %c0_223] : memref<108x4x1xf32, #tpu.memory_space<vmem>>, vector<1x4x1xf32>
    %709 = vector.shape_cast %708 : vector<1x4x1xf32> to vector<4x1xf32>
    %710 = vector.extract_strided_slice %577 {offsets = [0, 0], sizes = [1, 256], strides = [1, 1]} : vector<4x256xf32> to vector<1x256xf32>
    %711 = vector.broadcast %709 : vector<4x1xf32> to vector<4x256xf32>
    %712 = vector.broadcast %710 : vector<1x256xf32> to vector<4x256xf32>
    %713 = arith.mulf %711, %712 : vector<4x256xf32>
    %714 = arith.addf %707, %713 : vector<4x256xf32>
    %c89 = arith.constant 89 : index
    %c0_224 = arith.constant 0 : index
    %c0_225 = arith.constant 0 : index
    %715 = vector.load %arg2[%c89, %c0_224, %c0_225] : memref<108x4x1xf32, #tpu.memory_space<vmem>>, vector<1x4x1xf32>
    %716 = vector.shape_cast %715 : vector<1x4x1xf32> to vector<4x1xf32>
    %717 = vector.extract_strided_slice %577 {offsets = [1, 0], sizes = [1, 256], strides = [1, 1]} : vector<4x256xf32> to vector<1x256xf32>
    %718 = vector.broadcast %716 : vector<4x1xf32> to vector<4x256xf32>
    %719 = vector.broadcast %717 : vector<1x256xf32> to vector<4x256xf32>
    %720 = arith.mulf %718, %719 : vector<4x256xf32>
    %721 = arith.addf %714, %720 : vector<4x256xf32>
    %c90 = arith.constant 90 : index
    %c0_226 = arith.constant 0 : index
    %c0_227 = arith.constant 0 : index
    %722 = vector.load %arg2[%c90, %c0_226, %c0_227] : memref<108x4x1xf32, #tpu.memory_space<vmem>>, vector<1x4x1xf32>
    %723 = vector.shape_cast %722 : vector<1x4x1xf32> to vector<4x1xf32>
    %724 = vector.extract_strided_slice %577 {offsets = [2, 0], sizes = [1, 256], strides = [1, 1]} : vector<4x256xf32> to vector<1x256xf32>
    %725 = vector.broadcast %723 : vector<4x1xf32> to vector<4x256xf32>
    %726 = vector.broadcast %724 : vector<1x256xf32> to vector<4x256xf32>
    %727 = arith.mulf %725, %726 : vector<4x256xf32>
    %728 = arith.addf %721, %727 : vector<4x256xf32>
    %c91 = arith.constant 91 : index
    %c0_228 = arith.constant 0 : index
    %c0_229 = arith.constant 0 : index
    %729 = vector.load %arg2[%c91, %c0_228, %c0_229] : memref<108x4x1xf32, #tpu.memory_space<vmem>>, vector<1x4x1xf32>
    %730 = vector.shape_cast %729 : vector<1x4x1xf32> to vector<4x1xf32>
    %731 = vector.extract_strided_slice %577 {offsets = [3, 0], sizes = [1, 256], strides = [1, 1]} : vector<4x256xf32> to vector<1x256xf32>
    %732 = vector.broadcast %730 : vector<4x1xf32> to vector<4x256xf32>
    %733 = vector.broadcast %731 : vector<1x256xf32> to vector<4x256xf32>
    %734 = arith.mulf %732, %733 : vector<4x256xf32>
    %735 = arith.addf %728, %734 : vector<4x256xf32>
    %c252_i32 = arith.constant 252 : i32
    %736 = tpu.dynamic_rotate %577 by %c252_i32 dim 1 : vector<4x256xf32>, i32 -> vector<4x256xf32>
    %c23_230 = arith.constant 23 : index
    %c0_231 = arith.constant 0 : index
    %737 = vector.load %arg3[%c23_230, %c0_231] : memref<27x256xf32, #tpu.memory_space<vmem>>, vector<1x256xf32>
    %738 = vector.broadcast %737 : vector<1x256xf32> to vector<4x256xf32>
    %739 = arith.mulf %736, %738 : vector<4x256xf32>
    %c92 = arith.constant 92 : index
    %c0_232 = arith.constant 0 : index
    %c0_233 = arith.constant 0 : index
    %740 = vector.load %arg2[%c92, %c0_232, %c0_233] : memref<108x4x1xf32, #tpu.memory_space<vmem>>, vector<1x4x1xf32>
    %741 = vector.shape_cast %740 : vector<1x4x1xf32> to vector<4x1xf32>
    %742 = vector.extract_strided_slice %739 {offsets = [0, 0], sizes = [1, 256], strides = [1, 1]} : vector<4x256xf32> to vector<1x256xf32>
    %743 = vector.broadcast %741 : vector<4x1xf32> to vector<4x256xf32>
    %744 = vector.broadcast %742 : vector<1x256xf32> to vector<4x256xf32>
    %745 = arith.mulf %743, %744 : vector<4x256xf32>
    %746 = arith.addf %735, %745 : vector<4x256xf32>
    %c93 = arith.constant 93 : index
    %c0_234 = arith.constant 0 : index
    %c0_235 = arith.constant 0 : index
    %747 = vector.load %arg2[%c93, %c0_234, %c0_235] : memref<108x4x1xf32, #tpu.memory_space<vmem>>, vector<1x4x1xf32>
    %748 = vector.shape_cast %747 : vector<1x4x1xf32> to vector<4x1xf32>
    %749 = vector.extract_strided_slice %739 {offsets = [1, 0], sizes = [1, 256], strides = [1, 1]} : vector<4x256xf32> to vector<1x256xf32>
    %750 = vector.broadcast %748 : vector<4x1xf32> to vector<4x256xf32>
    %751 = vector.broadcast %749 : vector<1x256xf32> to vector<4x256xf32>
    %752 = arith.mulf %750, %751 : vector<4x256xf32>
    %753 = arith.addf %746, %752 : vector<4x256xf32>
    %c94 = arith.constant 94 : index
    %c0_236 = arith.constant 0 : index
    %c0_237 = arith.constant 0 : index
    %754 = vector.load %arg2[%c94, %c0_236, %c0_237] : memref<108x4x1xf32, #tpu.memory_space<vmem>>, vector<1x4x1xf32>
    %755 = vector.shape_cast %754 : vector<1x4x1xf32> to vector<4x1xf32>
    %756 = vector.extract_strided_slice %739 {offsets = [2, 0], sizes = [1, 256], strides = [1, 1]} : vector<4x256xf32> to vector<1x256xf32>
    %757 = vector.broadcast %755 : vector<4x1xf32> to vector<4x256xf32>
    %758 = vector.broadcast %756 : vector<1x256xf32> to vector<4x256xf32>
    %759 = arith.mulf %757, %758 : vector<4x256xf32>
    %760 = arith.addf %753, %759 : vector<4x256xf32>
    %c95 = arith.constant 95 : index
    %c0_238 = arith.constant 0 : index
    %c0_239 = arith.constant 0 : index
    %761 = vector.load %arg2[%c95, %c0_238, %c0_239] : memref<108x4x1xf32, #tpu.memory_space<vmem>>, vector<1x4x1xf32>
    %762 = vector.shape_cast %761 : vector<1x4x1xf32> to vector<4x1xf32>
    %763 = vector.extract_strided_slice %739 {offsets = [3, 0], sizes = [1, 256], strides = [1, 1]} : vector<4x256xf32> to vector<1x256xf32>
    %764 = vector.broadcast %762 : vector<4x1xf32> to vector<4x256xf32>
    %765 = vector.broadcast %763 : vector<1x256xf32> to vector<4x256xf32>
    %766 = arith.mulf %764, %765 : vector<4x256xf32>
    %767 = arith.addf %760, %766 : vector<4x256xf32>
    %c196_i32 = arith.constant 196 : i32
    %768 = tpu.dynamic_rotate %577 by %c196_i32 dim 1 : vector<4x256xf32>, i32 -> vector<4x256xf32>
    %c24_240 = arith.constant 24 : index
    %c0_241 = arith.constant 0 : index
    %769 = vector.load %arg3[%c24_240, %c0_241] : memref<27x256xf32, #tpu.memory_space<vmem>>, vector<1x256xf32>
    %770 = vector.broadcast %769 : vector<1x256xf32> to vector<4x256xf32>
    %771 = arith.mulf %768, %770 : vector<4x256xf32>
    %c96 = arith.constant 96 : index
    %c0_242 = arith.constant 0 : index
    %c0_243 = arith.constant 0 : index
    %772 = vector.load %arg2[%c96, %c0_242, %c0_243] : memref<108x4x1xf32, #tpu.memory_space<vmem>>, vector<1x4x1xf32>
    %773 = vector.shape_cast %772 : vector<1x4x1xf32> to vector<4x1xf32>
    %774 = vector.extract_strided_slice %771 {offsets = [0, 0], sizes = [1, 256], strides = [1, 1]} : vector<4x256xf32> to vector<1x256xf32>
    %775 = vector.broadcast %773 : vector<4x1xf32> to vector<4x256xf32>
    %776 = vector.broadcast %774 : vector<1x256xf32> to vector<4x256xf32>
    %777 = arith.mulf %775, %776 : vector<4x256xf32>
    %778 = arith.addf %767, %777 : vector<4x256xf32>
    %c97 = arith.constant 97 : index
    %c0_244 = arith.constant 0 : index
    %c0_245 = arith.constant 0 : index
    %779 = vector.load %arg2[%c97, %c0_244, %c0_245] : memref<108x4x1xf32, #tpu.memory_space<vmem>>, vector<1x4x1xf32>
    %780 = vector.shape_cast %779 : vector<1x4x1xf32> to vector<4x1xf32>
    %781 = vector.extract_strided_slice %771 {offsets = [1, 0], sizes = [1, 256], strides = [1, 1]} : vector<4x256xf32> to vector<1x256xf32>
    %782 = vector.broadcast %780 : vector<4x1xf32> to vector<4x256xf32>
    %783 = vector.broadcast %781 : vector<1x256xf32> to vector<4x256xf32>
    %784 = arith.mulf %782, %783 : vector<4x256xf32>
    %785 = arith.addf %778, %784 : vector<4x256xf32>
    %c98 = arith.constant 98 : index
    %c0_246 = arith.constant 0 : index
    %c0_247 = arith.constant 0 : index
    %786 = vector.load %arg2[%c98, %c0_246, %c0_247] : memref<108x4x1xf32, #tpu.memory_space<vmem>>, vector<1x4x1xf32>
    %787 = vector.shape_cast %786 : vector<1x4x1xf32> to vector<4x1xf32>
    %788 = vector.extract_strided_slice %771 {offsets = [2, 0], sizes = [1, 256], strides = [1, 1]} : vector<4x256xf32> to vector<1x256xf32>
    %789 = vector.broadcast %787 : vector<4x1xf32> to vector<4x256xf32>
    %790 = vector.broadcast %788 : vector<1x256xf32> to vector<4x256xf32>
    %791 = arith.mulf %789, %790 : vector<4x256xf32>
    %792 = arith.addf %785, %791 : vector<4x256xf32>
    %c99 = arith.constant 99 : index
    %c0_248 = arith.constant 0 : index
    %c0_249 = arith.constant 0 : index
    %793 = vector.load %arg2[%c99, %c0_248, %c0_249] : memref<108x4x1xf32, #tpu.memory_space<vmem>>, vector<1x4x1xf32>
    %794 = vector.shape_cast %793 : vector<1x4x1xf32> to vector<4x1xf32>
    %795 = vector.extract_strided_slice %771 {offsets = [3, 0], sizes = [1, 256], strides = [1, 1]} : vector<4x256xf32> to vector<1x256xf32>
    %796 = vector.broadcast %794 : vector<4x1xf32> to vector<4x256xf32>
    %797 = vector.broadcast %795 : vector<1x256xf32> to vector<4x256xf32>
    %798 = arith.mulf %796, %797 : vector<4x256xf32>
    %799 = arith.addf %792, %798 : vector<4x256xf32>
    %c192_i32 = arith.constant 192 : i32
    %800 = tpu.dynamic_rotate %577 by %c192_i32 dim 1 : vector<4x256xf32>, i32 -> vector<4x256xf32>
    %c25_250 = arith.constant 25 : index
    %c0_251 = arith.constant 0 : index
    %801 = vector.load %arg3[%c25_250, %c0_251] : memref<27x256xf32, #tpu.memory_space<vmem>>, vector<1x256xf32>
    %802 = vector.broadcast %801 : vector<1x256xf32> to vector<4x256xf32>
    %803 = arith.mulf %800, %802 : vector<4x256xf32>
    %c100 = arith.constant 100 : index
    %c0_252 = arith.constant 0 : index
    %c0_253 = arith.constant 0 : index
    %804 = vector.load %arg2[%c100, %c0_252, %c0_253] : memref<108x4x1xf32, #tpu.memory_space<vmem>>, vector<1x4x1xf32>
    %805 = vector.shape_cast %804 : vector<1x4x1xf32> to vector<4x1xf32>
    %806 = vector.extract_strided_slice %803 {offsets = [0, 0], sizes = [1, 256], strides = [1, 1]} : vector<4x256xf32> to vector<1x256xf32>
    %807 = vector.broadcast %805 : vector<4x1xf32> to vector<4x256xf32>
    %808 = vector.broadcast %806 : vector<1x256xf32> to vector<4x256xf32>
    %809 = arith.mulf %807, %808 : vector<4x256xf32>
    %810 = arith.addf %799, %809 : vector<4x256xf32>
    %c101 = arith.constant 101 : index
    %c0_254 = arith.constant 0 : index
    %c0_255 = arith.constant 0 : index
    %811 = vector.load %arg2[%c101, %c0_254, %c0_255] : memref<108x4x1xf32, #tpu.memory_space<vmem>>, vector<1x4x1xf32>
    %812 = vector.shape_cast %811 : vector<1x4x1xf32> to vector<4x1xf32>
    %813 = vector.extract_strided_slice %803 {offsets = [1, 0], sizes = [1, 256], strides = [1, 1]} : vector<4x256xf32> to vector<1x256xf32>
    %814 = vector.broadcast %812 : vector<4x1xf32> to vector<4x256xf32>
    %815 = vector.broadcast %813 : vector<1x256xf32> to vector<4x256xf32>
    %816 = arith.mulf %814, %815 : vector<4x256xf32>
    %817 = arith.addf %810, %816 : vector<4x256xf32>
    %c102 = arith.constant 102 : index
    %c0_256 = arith.constant 0 : index
    %c0_257 = arith.constant 0 : index
    %818 = vector.load %arg2[%c102, %c0_256, %c0_257] : memref<108x4x1xf32, #tpu.memory_space<vmem>>, vector<1x4x1xf32>
    %819 = vector.shape_cast %818 : vector<1x4x1xf32> to vector<4x1xf32>
    %820 = vector.extract_strided_slice %803 {offsets = [2, 0], sizes = [1, 256], strides = [1, 1]} : vector<4x256xf32> to vector<1x256xf32>
    %821 = vector.broadcast %819 : vector<4x1xf32> to vector<4x256xf32>
    %822 = vector.broadcast %820 : vector<1x256xf32> to vector<4x256xf32>
    %823 = arith.mulf %821, %822 : vector<4x256xf32>
    %824 = arith.addf %817, %823 : vector<4x256xf32>
    %c103 = arith.constant 103 : index
    %c0_258 = arith.constant 0 : index
    %c0_259 = arith.constant 0 : index
    %825 = vector.load %arg2[%c103, %c0_258, %c0_259] : memref<108x4x1xf32, #tpu.memory_space<vmem>>, vector<1x4x1xf32>
    %826 = vector.shape_cast %825 : vector<1x4x1xf32> to vector<4x1xf32>
    %827 = vector.extract_strided_slice %803 {offsets = [3, 0], sizes = [1, 256], strides = [1, 1]} : vector<4x256xf32> to vector<1x256xf32>
    %828 = vector.broadcast %826 : vector<4x1xf32> to vector<4x256xf32>
    %829 = vector.broadcast %827 : vector<1x256xf32> to vector<4x256xf32>
    %830 = arith.mulf %828, %829 : vector<4x256xf32>
    %831 = arith.addf %824, %830 : vector<4x256xf32>
    %c188_i32 = arith.constant 188 : i32
    %832 = tpu.dynamic_rotate %577 by %c188_i32 dim 1 : vector<4x256xf32>, i32 -> vector<4x256xf32>
    %c26_260 = arith.constant 26 : index
    %c0_261 = arith.constant 0 : index
    %833 = vector.load %arg3[%c26_260, %c0_261] : memref<27x256xf32, #tpu.memory_space<vmem>>, vector<1x256xf32>
    %834 = vector.broadcast %833 : vector<1x256xf32> to vector<4x256xf32>
    %835 = arith.mulf %832, %834 : vector<4x256xf32>
    %c104 = arith.constant 104 : index
    %c0_262 = arith.constant 0 : index
    %c0_263 = arith.constant 0 : index
    %836 = vector.load %arg2[%c104, %c0_262, %c0_263] : memref<108x4x1xf32, #tpu.memory_space<vmem>>, vector<1x4x1xf32>
    %837 = vector.shape_cast %836 : vector<1x4x1xf32> to vector<4x1xf32>
    %838 = vector.extract_strided_slice %835 {offsets = [0, 0], sizes = [1, 256], strides = [1, 1]} : vector<4x256xf32> to vector<1x256xf32>
    %839 = vector.broadcast %837 : vector<4x1xf32> to vector<4x256xf32>
    %840 = vector.broadcast %838 : vector<1x256xf32> to vector<4x256xf32>
    %841 = arith.mulf %839, %840 : vector<4x256xf32>
    %842 = arith.addf %831, %841 : vector<4x256xf32>
    %c105 = arith.constant 105 : index
    %c0_264 = arith.constant 0 : index
    %c0_265 = arith.constant 0 : index
    %843 = vector.load %arg2[%c105, %c0_264, %c0_265] : memref<108x4x1xf32, #tpu.memory_space<vmem>>, vector<1x4x1xf32>
    %844 = vector.shape_cast %843 : vector<1x4x1xf32> to vector<4x1xf32>
    %845 = vector.extract_strided_slice %835 {offsets = [1, 0], sizes = [1, 256], strides = [1, 1]} : vector<4x256xf32> to vector<1x256xf32>
    %846 = vector.broadcast %844 : vector<4x1xf32> to vector<4x256xf32>
    %847 = vector.broadcast %845 : vector<1x256xf32> to vector<4x256xf32>
    %848 = arith.mulf %846, %847 : vector<4x256xf32>
    %849 = arith.addf %842, %848 : vector<4x256xf32>
    %c106 = arith.constant 106 : index
    %c0_266 = arith.constant 0 : index
    %c0_267 = arith.constant 0 : index
    %850 = vector.load %arg2[%c106, %c0_266, %c0_267] : memref<108x4x1xf32, #tpu.memory_space<vmem>>, vector<1x4x1xf32>
    %851 = vector.shape_cast %850 : vector<1x4x1xf32> to vector<4x1xf32>
    %852 = vector.extract_strided_slice %835 {offsets = [2, 0], sizes = [1, 256], strides = [1, 1]} : vector<4x256xf32> to vector<1x256xf32>
    %853 = vector.broadcast %851 : vector<4x1xf32> to vector<4x256xf32>
    %854 = vector.broadcast %852 : vector<1x256xf32> to vector<4x256xf32>
    %855 = arith.mulf %853, %854 : vector<4x256xf32>
    %856 = arith.addf %849, %855 : vector<4x256xf32>
    %c107 = arith.constant 107 : index
    %c0_268 = arith.constant 0 : index
    %c0_269 = arith.constant 0 : index
    %857 = vector.load %arg2[%c107, %c0_268, %c0_269] : memref<108x4x1xf32, #tpu.memory_space<vmem>>, vector<1x4x1xf32>
    %858 = vector.shape_cast %857 : vector<1x4x1xf32> to vector<4x1xf32>
    %859 = vector.extract_strided_slice %835 {offsets = [3, 0], sizes = [1, 256], strides = [1, 1]} : vector<4x256xf32> to vector<1x256xf32>
    %860 = vector.broadcast %858 : vector<4x1xf32> to vector<4x256xf32>
    %861 = vector.broadcast %859 : vector<1x256xf32> to vector<4x256xf32>
    %862 = arith.mulf %860, %861 : vector<4x256xf32>
    %863 = arith.addf %856, %862 : vector<4x256xf32>
    %cst_270 = arith.constant 0.000000e+00 : f32
    %864 = vector.broadcast %cst_270 : f32 to vector<4x256xf32>
    %865 = arith.maximumf %863, %864 : vector<4x256xf32>
    %866 = arith.addf %578, %865 : vector<4x256xf32>
    %867 = arith.index_cast %c0_i32 : i32 to index
    %c0_271 = arith.constant 0 : index
    %c0_272 = arith.constant 0 : index
    %868 = vector.load %arg4[%867, %c0_271, %c0_272] : memref<1x4x256xf32, #tpu.memory_space<vmem>>, vector<1x4x256xf32>
    %869 = vector.shape_cast %868 : vector<1x4x256xf32> to vector<4x256xf32>
    %870 = vector.shape_cast %866 : vector<4x256xf32> to vector<1x4x256xf32>
    tpu.vector_store %arg4[%867, %c0_271, %c0_272], %870 {strides = array<i32>} : memref<1x4x256xf32, #tpu.memory_space<vmem>>, vector<1x4x256xf32>,
    %c1_i32_273 = arith.constant 1 : i32
    return
  }
  func.func @transform_0(%arg0: i32) -> (i32, i32, i32) {
    %c0_i32 = arith.constant 0 : i32
    %c0_i32_0 = arith.constant 0 : i32
    %c0_i32_1 = arith.constant 0 : i32
    return %arg0, %c0_i32, %c0_i32_0 : i32, i32, i32
  }
  func.func @transform_1(%arg0: i32) -> (i32, i32, i32) {
    %c0_i32 = arith.constant 0 : i32
    %c0_i32_0 = arith.constant 0 : i32
    %c0_i32_1 = arith.constant 0 : i32
    %c0_i32_2 = arith.constant 0 : i32
    return %c0_i32, %c0_i32_0, %c0_i32_1 : i32, i32, i32
  }
  func.func @transform_2(%arg0: i32) -> (i32, i32) {
    %c0_i32 = arith.constant 0 : i32
    %c0_i32_0 = arith.constant 0 : i32
    %c0_i32_1 = arith.constant 0 : i32
    return %c0_i32, %c0_i32_0 : i32, i32
  }
  func.func @transform_3(%arg0: i32) -> (i32, i32, i32) {
    %c0_i32 = arith.constant 0 : i32
    %c0_i32_0 = arith.constant 0 : i32
    %c0_i32_1 = arith.constant 0 : i32
    return %arg0, %c0_i32, %c0_i32_0 : i32, i32, i32
  }
}

</mosaic_0001>

<bundles_post_ra>
// kernel: tpu_custom_call.1
= control target key start
LH: loop header
LB: loop body
LE: loop exit
PB: predicated region body
PF: predicated region fallthrough
CT: control target
= control target key end

     0   :  { %8 = vsyncpa [#allocation3], 0  ;;  %s3326_s0 = inlined_call_operand.vmem [shape: f32[2,4,256], index: 0, kind: input, shape index: {}]   ;;  %s3327_s1 = inlined_call_operand.vmem [shape: f32[108,4,1], index: 1, kind: input, shape index: {}]   ;;  %s3328_s2 = inlined_call_operand.vmem [shape: f32[27,256], index: 2, kind: input, shape index: {}]   ;;  %s3329_s3 = inlined_call_operand.hbm [shape: f32[2,4,256], index: 3, kind: output, shape index: {}]  }
   0x1   :  { %10 = vsyncpa [#allocation3 + $0x1], 0  ;;  %s2410_s12 = smov 0   ;;  %s2412_s13 = smov 0  }
   0x2   :  { %s2414_s14 = smov 0   ;;  %s2416_s15 = smov 0  }
   0x3 LB: > { %s2431_s16 = sadd.s32 4294967295, %s2366_s15   ;;  %s2096_s17 = sadd.s32 4294967294, %s2366_s15   ;;  %s2366_s15 = sphi %s2416_s15, %s3335_s15   ;;  %s2362_s14 = sphi %s2414_s14, %s3334_s14   ;;  %s2358_s13 = sphi %s2412_s13, %s3333_s13   ;;  %s2354_s12 = sphi %s2410_s12, %s3332_s12  }
   0x4   : > { %s2435_s18 = sadd.s32 1, %s2366_s15   ;;  %s91_s19 = sadd.s32 1, %s2362_s14 }
   0x5   : > { %s88_s20 = ssub.s32 %s2366_s15, %s2435_s18  ;;  %p101_p0 = scmp.ne.s32.totalorder %s2362_s14, %s2358_s13 }
   0x6   : > { %p89_p1 = scmp.eq.s32.totalorder %s88_s20, 0  ;;  %p102_p2 = scmp.eq.s32.totalorder %s2431_s16, 1 }
   0x7   : > { %p107_p3 = scmp.ne.s32.totalorder %s2358_s13, %s2354_s12  ;;  %p108_p4 = scmp.eq.s32.totalorder %s2096_s17, 1 }
   0x8   : > { %s2446_s21 = scalar_select %p89_p1, %s2362_s14, %s91_s19  }
   0x9   : > { %p2448_p5 = por %p102_p2, %p101_p0  ;;  %p2452_p6 = por %p108_p4, %p107_p3 }
   0xa   : > { %p2099_p7 = scmp.ge.s32.totalorder %s2366_s15, 1  ;;  %p140_p8 = scmp.lt.s32.totalorder %s2366_s15, 3 }
   0xc   : > { %p141_p9 = pnand %p2099_p7, %p140_p8 }
   0xd   : > { %p164_p10 = scmp.lt.s32.totalorder (!%p141_p9), %s2431_s16, 1  ;;  %s2369_s10 = smov (!%p141_p9), 17  }
   0xe   : > { %144 = sbr.rel (%p141_p9) target bundleno = 707 (0x2c3), region = 32  ;;  %s2370_s19 = smov (!%p141_p9), 16  }
   0xf   : > { %s2371_s27 = smov (!%p141_p9), 15   ;;  %s2372_s9 = smov (!%p141_p9), 1  }
  0x10   : > { %s2373_s6 = smov (!%p141_p9), 127   ;;  %s2374_s24 = smov (!%p141_p9), 113  }
  0x11   : > { %s2377_s17 = smov (!%p141_p9), 126   ;;  %s2379_s25 = smov (!%p141_p9), 32  }
  0x12   : > { %s2380_s26 = smov (!%p141_p9), 98   ;;  %s2382_s30 = smov (!%p141_p9), 2  }
  0x13   : > { %v2104_v0 = vld [vmem:[%s3327_s1 + $0x8] sm:$0xf]  ;;  %v193_v1 = vld [vmem:[%s3327_s1] sm:$0xf]  ;;  %v2368_v2 = vmov 0   ;;  %s165_s28 = scalar_select %p164_p10, %s2431_s16, 1  ;;  %v180_v56 = vlaneseq }
  0x14   : > { %2302 = vset.pattern.permute.xlu2 %v2368_v2  ;;  %2301 = vset.pattern.permute.xlu1 %v2368_v2  ;;  %v2105_v4 = vld [vmem:[%s3327_s1 + $0xc] sm:$0xf]  ;;  %v2103_v5 = vld [vmem:[%s3327_s1 + $0x4] sm:$0xf]  ;;  %v2107_v8 = vld [vmem:[%s3327_s1 + $0x10] sm:$0xf] }
  0x15   : > { %222 = vperm.xlu2 %2302, %v2104_v0   ;;  %196 = vperm.xlu1 %2301, %v193_v1   ;;  %s2238_s29 = sshll.u32 %s165_s28, 3  ;;  %v2110_v11 = vld [vmem:[%s3327_s1 + $0x1c] sm:$0xf]  ;;  %v2109_v12 = vld [vmem:[%s3327_s1 + $0x18] sm:$0xf]  ;;  %v2582_v59 = vand.u32 127, %v180_v56 }
  0x16   : > { %2303 = vset.pattern.permute.xlu0 %v2368_v2  ;;  %s168_s5 = scalar_lea.vmem %s3326_s0, %s2238_s29  ;;  %v2108_v15 = vld [vmem:[%s3327_s1 + $0x14] sm:$0xf]  ;;  %v2114_v18 = vld [vmem:[%s3327_s1 + $0x28] sm:$0xf]  ;;  %v2112_v19 = vld [vmem:[%s3327_s1 + $0x20] sm:$0xf] }
  0x17   : > { %v2469_v3 = vld [vmem:[%s168_s5] sm:$0xff]  ;;  %v2115_v23 = vld [vmem:[%s3327_s1 + $0x2c] sm:$0xf]  ;;  %v2119_v24 = vld [vmem:[%s3327_s1 + $0x38] sm:$0xf]  ;;  %vm182_vm0 = vcmp.lt.s32.totalorder %v2582_v59, 17 }
  0x18   : > { %171 = vst [vmem:[#allocation1] ss:$2 sm:$0xff] %v2469_v3  ;;  %v2113_v20 = vld [vmem:[%s3327_s1 + $0x24] sm:$0xf]  ;;  %v2117_v25 = vld [vmem:[%s3327_s1 + $0x30] sm:$0xf] }
  0x19   : > { %v2118_v26 = vld [vmem:[%s3327_s1 + $0x34] sm:$0xf]  ;;  %v2122_v27 = vld [vmem:[%s3327_s1 + $0x44] sm:$0xf]  ;;  %v2120_v30 = vld [vmem:[%s3327_s1 + $0x3c] sm:$0xf] }
  0x1a   : > { %v2121_v31 = vld [vmem:[%s3327_s1 + $0x40] sm:$0xf]  ;;  %v2123_v32 = vld [vmem:[%s3327_s1 + $0x48] sm:$0xf]  ;;  %v2124_v33 = vld [vmem:[%s3327_s1 + $0x4c] sm:$0xf] }
  0x1b   : > { %v2127_v34 = vld [vmem:[%s3327_s1 + $0x54] sm:$0xf]  ;;  %v2126_v37 = vld [vmem:[%s3327_s1 + $0x50] sm:$0xf]  ;;  %v2129_v39 = vld [vmem:[%s3327_s1 + $0x5c] sm:$0xf] }
  0x1c   : > { %v2128_v40 = vld [vmem:[%s3327_s1 + $0x58] sm:$0xf]  ;;  %v2132_v41 = vld [vmem:[%s3327_s1 + $0x64] sm:$0xf]  ;;  %v2131_v43 = vld [vmem:[%s3327_s1 + $0x60] sm:$0xf] }
  0x1d   : > { %235 = vperm.xlu2 %2302, %v2105_v4   ;;  %209 = vperm.xlu1 %2301, %v2103_v5   ;;  %v2134_v45 = vld [vmem:[%s3327_s1 + $0x6c] sm:$0xf]  ;;  %v2133_v46 = vld [vmem:[%s3327_s1 + $0x68] sm:$0xf]  ;;  %v2137_v47 = vld [vmem:[%s3327_s1 + $0x74] sm:$0xf] }
  0x1e   : > { %v2136_v49 = vld [vmem:[%s3327_s1 + $0x70] sm:$0xf]  ;;  %v2139_v53 = vld [vmem:[%s3327_s1 + $0x7c] sm:$0xf]  ;;  %v2138_v54 = vld [vmem:[%s3327_s1 + $0x78] sm:$0xf] }
  0x1f   : > { %v172_v6 = vld.sshfl [vmem:[#allocation1] sm:$0xff pattern:$0x75316420]  ;;  %v173_v7 = vld.sshfl [vmem:[#allocation1 + $0x8] sm:$0xff pattern:$0x75316420] }
  0x20   : > { %176 = vrot.lane.b32.xlu0 %v172_v6, %s2369_s10  ;;  %244 = vst [vmem:[#allocation1] ss:$2 sm:$0xff] %v2469_v3  ;;  %v2142_v55 = vld [vmem:[%s3327_s1 + $0x84] sm:$0xf]  ;;  %v2141_v61 = vld [vmem:[%s3327_s1 + $0x80] sm:$0xf] }
  0x21   : > { %v185_v63 = vld [vmem:[%s3328_s2] ss:$8 sm:$0x3]  ;;  %v2147_v0 = vld [vmem:[%s3327_s1 + $0x94] sm:$0xf]  ;;  %vm253_vm1 = vcmp.lt.s32.totalorder %v2582_v59, 16 }
  0x22   : > { %v187_v1 = vperm.slane %v185_v63, 0  ;;  %v188_v2 = vperm.slane %v185_v63, 1  ;;  %v2153_v56 = vld [vmem:[%s3327_s1 + $0xa8] sm:$0xf]  ;;  %v2162_v63 = vld [vmem:[%s3327_s1 + $0xc4] sm:$0xf] }
  0x23   : > { %vm326_vm2 = vcmp.lt.s32.totalorder %v2582_v59, 15  ;;  %vm399_vm3 = vcmp.lt.s32.totalorder %v2582_v59, 1  ;;  %vm540_vm4 = vcmp.lt.s32.totalorder %v2582_v59, 127  ;;  %vm613_vm5 = vcmp.lt.s32.totalorder %v2582_v59, 113  ;;  %s2386_s28 = smov 68   ;;  %s2387_s4 = smov 64  }
  0x24   : > { %vm686_vm6 = vcmp.lt.s32.totalorder %v2582_v59, 112  ;;  %vm759_vm7 = vcmp.lt.s32.totalorder %v2582_v59, 111  ;;  %vm836_vm8 = vcmp.lt.s32.totalorder %v2582_v59, 34  ;;  %vm904_vm9 = vcmp.lt.s32.totalorder %v2582_v59, 32  ;;  %s2388_s7 = smov 60   ;;  %s161_s29 = sand.u32 1, %s2358_s13  }
  0x25   : > { %269 = vperm.xlu2 %2302, %v2107_v8   ;;  %vm972_vm10 = vcmp.lt.s32.totalorder %v2582_v59, 30  ;;  %vm1040_vm11 = vcmp.lt.s32.totalorder %v2582_v59, 2  ;;  %vm1160_vm12 = vcmp.lt.s32.totalorder %v2582_v59, 126  ;;  %vm1228_vm13 = vcmp.lt.s32.totalorder %v2582_v59, 98  ;;  %s2324_s20 = scalar_lea.hbm %s3329_s3, 16 }
  0x26   : > { %vm1296_vm14 = vcmp.lt.s32.totalorder %v2582_v59, 96  ;;  %vm1364_vm15 = vcmp.lt.s32.totalorder %v2582_v59, 94 }
  0x27   : > { %v246_v9 = vld.sshfl [vmem:[#allocation1 + $0x8] sm:$0xff pattern:$0x75316420]  ;;  %v245_v10 = vld.sshfl [vmem:[#allocation1] sm:$0xff pattern:$0x75316420] }
  0x28   : > { %178 = vrot.lane.b32.xlu0 %v173_v7, %s2369_s10  ;;  %251 = vrot.lane.b32.xlu1 %v246_v9, %s2370_s19  ;;  %317 = vst [vmem:[#allocation1] ss:$2 sm:$0xff] %v2469_v3  ;;  %v2144_v9 = vld [vmem:[%s3327_s1 + $0x8c] sm:$0xf] }
  0x2d   : > { %308 = vperm.xlu2 %2302, %v2110_v11  }
  0x2f   : > { %v319_v13 = vld.sshfl [vmem:[#allocation1 + $0x8] sm:$0xff pattern:$0x75316420]  ;;  %v318_v14 = vld.sshfl [vmem:[#allocation1] sm:$0xff pattern:$0x75316420] }
  0x30   : > { %295 = vperm.xlu1 %2301, %v2109_v12   ;;  %249 = vrot.lane.b32.xlu0 %v245_v10, %s2370_s19  ;;  %390 = vst [vmem:[#allocation1] ss:$2 sm:$0xff] %v2469_v3  ;;  %v2143_v12 = vld [vmem:[%s3327_s1 + $0x88] sm:$0xf]  ;;  %s2378_s19 = smov 34  }
  0x35   : > { %324 = vrot.lane.b32.xlu2 %v319_v13, %s2371_s27  ;;  %v2152_v13 = vld [vmem:[%s3327_s1 + $0xa4] sm:$0xf] }
  0x37   : > { %v392_v16 = vld.sshfl [vmem:[#allocation1 + $0x8] sm:$0xff pattern:$0x75316420]  ;;  %v391_v17 = vld.sshfl [vmem:[#allocation1] sm:$0xff pattern:$0x75316420] }
  0x38   : > { %282 = vperm.xlu0 %2303, %v2108_v15   ;;  %322 = vrot.lane.b32.xlu1 %v318_v14, %s2371_s27  ;;  %531 = vst [vmem:[#allocation1] ss:$2 sm:$0xff] %v2469_v3  ;;  %v2106_v14 = vld [vmem:[%s3328_s2 + $0x1] ss:$8 sm:$0x3]  ;;  %s2381_s27 = smov 30  }
  0x3d   : > { %368 = vperm.xlu2 %2302, %v2114_v18  }
  0x3f   : > { %v532_v21 = vld.sshfl [vmem:[#allocation1] sm:$0xff pattern:$0x75316420]  ;;  %v533_v22 = vld.sshfl [vmem:[#allocation1 + $0x8] sm:$0xff pattern:$0x75316420] }
  0x40   : > { %342 = vperm.xlu0 %2303, %v2112_v19   ;;  %355 = vperm.xlu1 %2301, %v2113_v20   ;;  %604 = vst [vmem:[#allocation1] ss:$2 sm:$0xff] %v2469_v3 }
  0x45   : > { %397 = vrot.lane.b32.xlu2 %v392_v16, %s2372_s9 }
  0x47   : > { %v605_v28 = vld.sshfl [vmem:[#allocation1] sm:$0xff pattern:$0x75316420]  ;;  %v606_v29 = vld.sshfl [vmem:[#allocation1 + $0x8] sm:$0xff pattern:$0x75316420] }
  0x48   : > { %381 = vperm.xlu0 %2303, %v2115_v23   ;;  %395 = vrot.lane.b32.xlu1 %v391_v17, %s2372_s9  ;;  %677 = vst [vmem:[#allocation1] ss:$2 sm:$0xff] %v2469_v3  ;;  %s2389_s9 = smov 4  }
  0x4d   : > { %441 = vperm.xlu2 %2302, %v2119_v24  }
  0x4f   : > { %v678_v35 = vld.sshfl [vmem:[#allocation1] sm:$0xff pattern:$0x75316420]  ;;  %v679_v36 = vld.sshfl [vmem:[#allocation1 + $0x8] sm:$0xff pattern:$0x75316420] }
  0x50   : > { %415 = vperm.xlu0 %2303, %v2117_v25   ;;  %428 = vperm.xlu1 %2301, %v2118_v26   ;;  %750 = vst [vmem:[#allocation1] ss:$2 sm:$0xff] %v2469_v3  ;;  %v2146_v26 = vld [vmem:[%s3327_s1 + $0x90] sm:$0xf] }
  0x55   : > { %484 = vperm.xlu2 %2302, %v2122_v27  }
  0x57   : > { %v751_v51 = vld.sshfl [vmem:[#allocation1] sm:$0xff pattern:$0x75316420]  ;;  %v752_v62 = vld.sshfl [vmem:[#allocation1 + $0x8] sm:$0xff pattern:$0x75316420] }
  0x58   : > { %454 = vperm.xlu0 %2303, %v2120_v30   ;;  %467 = vperm.xlu1 %2301, %v2121_v31   ;;  %v2148_v31 = vld [vmem:[%s3327_s1 + $0x98] sm:$0xf] }
  0x5d   : > { %536 = vrot.lane.b32.xlu2 %v532_v21, %s2373_s6  ;;  %v259_v21 = vperm.slane %v2106_v14, 0 }
  0x60   : > { %501 = vperm.xlu0 %2303, %v2123_v32   ;;  %518 = vperm.xlu1 %2301, %v2124_v33  }
  0x65   : > { %569 = vperm.xlu2 %2302, %v2127_v34  }
  0x68   : > { %556 = vperm.xlu1 %2301, %v2126_v37   ;;  %538 = vrot.lane.b32.xlu0 %v533_v22, %s2373_s6  ;;  %s2375_s6 = smov 112   ;;  %v260_v22 = vperm.slane %v2106_v14, 1 }
  0x6d   : > { %609 = vrot.lane.b32.xlu2 %v605_v28, %s2374_s24 }
  0x6f   : > { %v2539_v38 = vpop.permute.xlu2 %222 }
  0x70   : > { %595 = vperm.xlu1 %2301, %v2129_v39   ;;  %582 = vperm.xlu0 %2303, %v2128_v40  }
  0x75   : > { %642 = vperm.xlu2 %2302, %v2132_v41  }
  0x77   : > { %v2550_v42 = vpop.permute.xlu2 %235 }
  0x78   : > { %629 = vperm.xlu1 %2301, %v2131_v43   ;;  %611 = vrot.lane.b32.xlu0 %v606_v29, %s2374_s24  ;;  %s2376_s24 = smov 111  }
  0x7d   : > { %682 = vrot.lane.b32.xlu2 %v678_v35, %s2375_s6 }
  0x7f   : > { %v2555_v44 = vpop.permute.xlu2 %269 }
  0x80   : > { %668 = vperm.xlu1 %2301, %v2134_v45   ;;  %655 = vperm.xlu0 %2303, %v2133_v46  }
  0x85   : > { %715 = vperm.xlu2 %2302, %v2137_v47  }
  0x87   : > { %v2566_v48 = vpop.permute.xlu2 %308  ;;  %v197_v50 = vpop.permute.xlu1 %196 }
  0x88   : > { %702 = vperm.xlu1 %2301, %v2136_v49   ;;  %684 = vrot.lane.b32.xlu0 %v679_v36, %s2375_s6  ;;  %v2157_v36 = vld [vmem:[%s3327_s1 + $0xb4] sm:$0xf]  ;;  %s2383_s6 = smov 96  }
  0x8d   : > { %755 = vrot.lane.b32.xlu2 %v751_v51, %s2376_s24 }
  0x8f   : > { %v2571_v52 = vpop.permute.xlu2 %324  ;;  %v210_v57 = vpop.permute.xlu1 %209 }
  0x90   : > { %741 = vperm.xlu1 %2301, %v2139_v53   ;;  %728 = vperm.xlu0 %2303, %v2138_v54   ;;  %v2149_v53 = vld [vmem:[%s3327_s1 + $0x9c] sm:$0xf] }
  0x92   : > { %v177_v58 = vpop.permute.xlu0 %176 }
  0x95   : > { %788 = vperm.xlu2 %2302, %v2142_v55  }
  0x97   : > { %v2584_v60 = vpop.permute.xlu2 %368 }
  0x98   : > { %775 = vperm.xlu1 %2301, %v2141_v61   ;;  %757 = vrot.lane.b32.xlu0 %v752_v62, %s2376_s24  ;;  %v2111_v62 = vld [vmem:[%s3328_s2 + $0x2] ss:$8 sm:$0x3]  ;;  %s2384_s24 = smov 94  }
  0x9a   : > { %v179_v4 = vpop.permute.xlu0 %178  ;;  %v252_v5 = vpop.permute.xlu1 %251 }
  0x9b   : > { %v183_v6 = vsel %vm182_vm0, %v177_v58, %v179_v4  ;;  %v184_v7 = vsel %vm182_vm0, %v179_v4, %v177_v58  ;;  %vm828_vm0 = vcmask 1043456  }
  0x9c   : > { %v191_v10 = vmul.f32 %v187_v1, %v184_v7  ;;  %v192_v11 = vmul.f32 %v188_v2, %v183_v6  ;;  %v333_v6 = vperm.slane %v2111_v62, 1 }
  0x9d   : > { %865 = vperm.xlu2 %2302, %v2147_v0  }
  0x9e   : > { %v199_v15 = vperm.slane %v191_v10, 0  ;;  %v200_v16 = vperm.slane %v192_v11, 0  ;;  %v212_v17 = vperm.slane %v191_v10, 1  ;;  %v213_v18 = vperm.slane %v192_v11, 1 }
  0x9f   : > { %v2596_v8 = vpop.permute.xlu2 %397  ;;  %v225_v32 = vperm.slane %v191_v10, 2  ;;  %v226_v33 = vperm.slane %v192_v11, 2  ;;  %v238_v43 = vperm.slane %v191_v10, 3  ;;  %v239_v45 = vperm.slane %v192_v11, 3 }
  0xa0   : > { %814 = vperm.xlu1 %2301, %v2144_v9   ;;  %801 = vperm.xlu0 %2303, %v2143_v12   ;;  %v201_v27 = vmul.f32 %v199_v15, %v197_v50  ;;  %v202_v28 = vmul.f32 %v200_v16, %v197_v50  ;;  %v214_v29 = vmul.f32 %v212_v17, %v210_v57  ;;  %v2151_v15 = vld [vmem:[%s3327_s1 + $0xa0] sm:$0xf] }
  0xa1   : > { %v215_v30 = vmul.f32 %v213_v18, %v210_v57  ;;  %v227_v46 = vmul.f32 %v225_v32, %v2539_v38  ;;  %v228_v47 = vmul.f32 %v226_v33, %v2539_v38  ;;  %v240_v57 = vmul.f32 %v238_v43, %v2550_v42  ;;  %v2158_v18 = vld [vmem:[%s3327_s1 + $0xb8] sm:$0xf]  ;;  %v2163_v43 = vld [vmem:[%s3327_s1 + $0xc8] sm:$0xf] }
  0xa2   : > { %v2611_v19 = vpop.permute.xlu1 %295  ;;  %v250_v20 = vpop.permute.xlu0 %249  ;;  %v216_v37 = vadd.f32 %v214_v29, %v201_v27  ;;  %v241_v38 = vmul.f32 %v239_v45, %v2550_v42 }
  0xa3   : > { %v254_v23 = vsel %vm253_vm1, %v250_v20, %v252_v5  ;;  %v255_v24 = vsel %vm253_vm1, %v252_v5, %v250_v20  ;;  %v217_v39 = vadd.f32 %v215_v30, %v202_v28  ;;  %v332_v5 = vperm.slane %v2111_v62, 0 }
  0xa4   : > { %v2621_v34 = vmul.f32 %v259_v21, %v255_v24  ;;  %v2623_v35 = vmul.f32 %v260_v22, %v254_v23  ;;  %v229_v54 = vadd.f32 %v227_v46, %v216_v37  ;;  %v2116_v37 = vld [vmem:[%s3328_s2 + $0x3] ss:$8 sm:$0x3]  ;;  %vm1440_vm1 = vcmp.lt.s32.totalorder %v2582_v59, 68 }
  0xa5   : > { %933 = vperm.xlu2 %2302, %v2152_v13   ;;  %v230_v55 = vadd.f32 %v228_v47, %v217_v39  ;;  %v405_v45 = vperm.slane %v2116_v37, 0  ;;  %v406_v46 = vperm.slane %v2116_v37, 1  ;;  %v471_v37 = vperm.slane %v2469_v3, 4 }
  0xa6   : > { %v272_v49 = vperm.slane %v2621_v34, 0  ;;  %v273_v50 = vperm.slane %v2623_v35, 0  ;;  %v242_v0 = vadd.f32 %v240_v57, %v229_v54  ;;  %v285_v42 = vperm.slane %v2621_v34, 1  ;;  %v2168_v54 = vld [vmem:[%s3327_s1 + $0xdc] sm:$0xf] }
  0xa7   : > { %v2613_v25 = vpop.permute.xlu2 %441  ;;  %v243_v1 = vadd.f32 %v241_v38, %v230_v55  ;;  %v286_v2 = vperm.slane %v2623_v35, 1  ;;  %v298_v16 = vperm.slane %v2621_v34, 2  ;;  %v299_v17 = vperm.slane %v2623_v35, 2 }
  0xa8   : > { %852 = vperm.xlu1 %2301, %v2146_v26   ;;  %878 = vperm.xlu0 %2303, %v2148_v31   ;;  %v274_v58 = vmul.f32 %v272_v49, %v2555_v44  ;;  %v275_v61 = vmul.f32 %v273_v50, %v2555_v44  ;;  %v311_v24 = vperm.slane %v2621_v34, 3  ;;  %v312_v26 = vperm.slane %v2623_v35, 3  ;;  %v2154_v35 = vld [vmem:[%s3327_s1 + $0xac] sm:$0xf] }
  0xa9   : > { %v300_v27 = vmul.f32 %v298_v16, %v2611_v19  ;;  %v301_v28 = vmul.f32 %v299_v17, %v2611_v19 }
  0xaa   : > { %v283_v40 = vpop.permute.xlu0 %282  ;;  %v323_v41 = vpop.permute.xlu1 %322  ;;  %v276_v7 = vadd.f32 %v274_v58, %v242_v0  ;;  %v277_v9 = vadd.f32 %v275_v61, %v243_v1  ;;  %v313_v19 = vmul.f32 %v311_v24, %v2566_v48  ;;  %v314_v39 = vmul.f32 %v312_v26, %v2566_v48 }
  0xab   : > { %v287_v10 = vmul.f32 %v285_v42, %v283_v40  ;;  %v288_v11 = vmul.f32 %v286_v2, %v283_v40  ;;  %v327_v12 = vsel %vm326_vm2, %v323_v41, %v2571_v52  ;;  %v328_v13 = vsel %vm326_vm2, %v2571_v52, %v323_v41  ;;  %v2165_v52 = vld [vmem:[%s3327_s1 + $0xd0] sm:$0xf] }
  0xac   : > { %v336_v22 = vmul.f32 %v332_v5, %v328_v13  ;;  %v337_v23 = vmul.f32 %v333_v6, %v327_v12  ;;  %vm1508_vm2 = vcmp.lt.s32.totalorder %v2582_v59, 64 }
  0xad   : > { %1001 = vperm.xlu2 %2302, %v2157_v36   ;;  %v289_v20 = vadd.f32 %v287_v10, %v276_v7  ;;  %v290_v21 = vadd.f32 %v288_v11, %v277_v9  ;;  %v2166_v11 = vld [vmem:[%s3327_s1 + $0xd4] sm:$0xf] }
  0xae   : > { %v345_v29 = vperm.slane %v336_v22, 0  ;;  %v346_v30 = vperm.slane %v337_v23, 0  ;;  %v358_v50 = vperm.slane %v336_v22, 1  ;;  %v371_v61 = vperm.slane %v336_v22, 2 }
  0xaf   : > { %v2632_v51 = vpop.permute.xlu2 %484  ;;  %v302_v33 = vadd.f32 %v300_v27, %v289_v20  ;;  %v303_v36 = vadd.f32 %v301_v28, %v290_v21  ;;  %v372_v62 = vperm.slane %v337_v23, 2  ;;  %v384_v2 = vperm.slane %v336_v22, 3 }
  0xb0   : > { %891 = vperm.xlu1 %2301, %v2149_v53   ;;  %946 = vperm.xlu0 %2303, %v2153_v56   ;;  %v359_v53 = vperm.slane %v337_v23, 1 }
  0xb1   : > { %v315_v47 = vadd.f32 %v313_v19, %v302_v33  ;;  %v316_v49 = vadd.f32 %v314_v39, %v303_v36  ;;  %v374_v12 = vmul.f32 %v372_v62, %v2584_v60  ;;  %v505_v62 = vperm.slane %v2469_v3, 6 }
  0xb2   : > { %v343_v4 = vpop.permute.xlu0 %342  ;;  %v356_v44 = vpop.permute.xlu1 %355 }
  0xb3   : > { %v347_v40 = vmul.f32 %v345_v29, %v343_v4  ;;  %v348_v41 = vmul.f32 %v346_v30, %v343_v4  ;;  %v361_v0 = vmul.f32 %v359_v53, %v356_v44  ;;  %v385_v4 = vperm.slane %v337_v23, 3 }
  0xb4   : > { %v470_v30 = vperm.slane %v2469_v3, 0 }
  0xb5   : > { %1069 = vperm.xlu2 %2302, %v2162_v63   ;;  %v349_v56 = vadd.f32 %v347_v40, %v315_v47  ;;  %v350_v57 = vadd.f32 %v348_v41, %v316_v49  ;;  %v360_v63 = vmul.f32 %v358_v50, %v356_v44  ;;  %v373_v44 = vmul.f32 %v371_v61, %v2584_v60  ;;  %v2159_v60 = vld [vmem:[%s3327_s1 + $0xbc] sm:$0xf] }
  0xb6   : > { %v474_v47 = vperm.slane %v470_v30, 0  ;;  %v504_v61 = vperm.slane %v2469_v3, 2 }
  0xb7   : > { %v2659_v14 = vpop.permute.xlu2 %536  ;;  %v362_v6 = vadd.f32 %v360_v63, %v349_v56  ;;  %v363_v7 = vadd.f32 %v361_v0, %v350_v57  ;;  %v2161_v56 = vld [vmem:[%s3327_s1 + $0xc0] sm:$0xf]  ;;  %v2125_v57 = vld [vmem:[%s3328_s2 + $0x5] ss:$8 sm:$0x3] }
  0xb8   : > { %920 = vperm.xlu1 %2301, %v2151_v15   ;;  %1014 = vperm.xlu0 %2303, %v2158_v18   ;;  %v546_v0 = vperm.slane %v2125_v57, 0 }
  0xb9   : > { %v375_v16 = vadd.f32 %v373_v44, %v362_v6  ;;  %v376_v17 = vadd.f32 %v374_v12, %v363_v7  ;;  %v508_v6 = vperm.slane %v504_v61, 2  ;;  %v509_v7 = vperm.slane %v505_v62, 2 }
  0xba   : > { %v382_v31 = vpop.permute.xlu0 %381  ;;  %v396_v32 = vpop.permute.xlu1 %395  ;;  %v522_v44 = vperm.slane %v2469_v3, 7 }
  0xbb   : > { %v400_v48 = vsel %vm399_vm3, %v396_v32, %v2596_v8  ;;  %v401_v55 = vsel %vm399_vm3, %v2596_v8, %v396_v32  ;;  %v2156_v8 = vld [vmem:[%s3327_s1 + $0xb0] sm:$0xf]  ;;  %v386_v13 = vmul.f32 %v384_v2, %v382_v31  ;;  %v387_v15 = vmul.f32 %v385_v4, %v382_v31 }
  0xbc   : > { %v409_v1 = vmul.f32 %v405_v45, %v401_v55  ;;  %v410_v42 = vmul.f32 %v406_v46, %v400_v48  ;;  %v487_v45 = vperm.slane %v2469_v3, 1  ;;  %v488_v46 = vperm.slane %v2469_v3, 5 }
  0xbd   : > { %1108 = vperm.xlu2 %2302, %v2165_v52   ;;  %v388_v23 = vadd.f32 %v386_v13, %v375_v16  ;;  %v389_v52 = vadd.f32 %v387_v15, %v376_v17  ;;  %v475_v48 = vperm.slane %v471_v37, 0  ;;  %vm1576_vm3 = vcmp.lt.s32.totalorder %v2582_v59, 60 }
  0xbe   : > { %v418_v9 = vperm.slane %v409_v1, 0  ;;  %v419_v10 = vperm.slane %v410_v42, 0  ;;  %v431_v24 = vperm.slane %v409_v1, 1  ;;  %v432_v26 = vperm.slane %v410_v42, 1 }
  0xbf   : > { %v2680_v34 = vpop.permute.xlu2 %569  ;;  %v444_v33 = vperm.slane %v409_v1, 2  ;;  %v445_v36 = vperm.slane %v410_v42, 2  ;;  %v457_v39 = vperm.slane %v409_v1, 3  ;;  %v458_v40 = vperm.slane %v410_v42, 3 }
  0xc0   : > { %959 = vperm.xlu1 %2301, %v2154_v35   ;;  %1082 = vperm.xlu0 %2303, %v2163_v43   ;;  %v547_v1 = vperm.slane %v2125_v57, 1  ;;  %v491_v42 = vperm.slane %v487_v45, 1  ;;  %v492_v2 = vperm.slane %v488_v46, 1 }
  0xc1   : > { %v446_v49 = vmul.f32 %v444_v33, %v2613_v25  ;;  %v447_v50 = vmul.f32 %v445_v36, %v2613_v25 }
  0xc2   : > { %v416_v38 = vpop.permute.xlu0 %415  ;;  %v429_v58 = vpop.permute.xlu1 %428 }
  0xc3   : > { %v420_v18 = vmul.f32 %v418_v9, %v416_v38  ;;  %v421_v20 = vmul.f32 %v419_v10, %v416_v38  ;;  %v433_v31 = vmul.f32 %v431_v24, %v429_v58  ;;  %v434_v32 = vmul.f32 %v432_v26, %v429_v58 }
  0xc5   : > { %1147 = vperm.xlu2 %2302, %v2168_v54   ;;  %v422_v28 = vadd.f32 %v420_v18, %v388_v23  ;;  %v423_v29 = vadd.f32 %v421_v20, %v389_v52  ;;  %v494_v23 = vmul.f32 %v492_v2, %v2632_v51 }
  0xc7   : > { %v2699_v5 = vpop.permute.xlu2 %609  ;;  %v435_v35 = vadd.f32 %v433_v31, %v422_v28  ;;  %v436_v19 = vadd.f32 %v434_v32, %v423_v29 }
  0xc8   : > { %988 = vperm.xlu1 %2301, %v2156_v8   ;;  %1121 = vperm.xlu0 %2303, %v2166_v11   ;;  %v521_v11 = vperm.slane %v2469_v3, 3 }
  0xc9   : > { %v448_v38 = vadd.f32 %v446_v49, %v435_v35  ;;  %v449_v58 = vadd.f32 %v447_v50, %v436_v19 }
  0xca   : > { %v455_v21 = vpop.permute.xlu0 %454  ;;  %v468_v22 = vpop.permute.xlu1 %467  ;;  %v525_v26 = vperm.slane %v521_v11, 3 }
  0xcb   : > { %v459_v53 = vmul.f32 %v457_v39, %v455_v21  ;;  %v460_v54 = vmul.f32 %v458_v40, %v455_v21  ;;  %v476_v4 = vmul.f32 %v474_v47, %v468_v22  ;;  %v477_v8 = vmul.f32 %v475_v48, %v468_v22  ;;  %v2164_v21 = vld [vmem:[%s3327_s1 + $0xcc] sm:$0xf] }
  0xcc   : > { %v493_v22 = vmul.f32 %v491_v42, %v2632_v51  ;;  %v2167_v51 = vld [vmem:[%s3327_s1 + $0xd8] sm:$0xf] }
  0xcd   : > { %v461_v25 = vadd.f32 %v459_v53, %v448_v38  ;;  %v462_v63 = vadd.f32 %v460_v54, %v449_v58 }
  0xcf   : > { %v2709_v27 = vpop.permute.xlu2 %642  ;;  %v478_v15 = vadd.f32 %v476_v4, %v461_v25  ;;  %v479_v16 = vadd.f32 %v477_v8, %v462_v63 }
  0xd0   : > { %1027 = vperm.xlu1 %2301, %v2159_v60   ;;  %v526_v60 = vperm.slane %v522_v44, 3 }
  0xd1   : > { %v495_v28 = vadd.f32 %v493_v22, %v478_v15 }
  0xd2   : > { %v502_v41 = vpop.permute.xlu0 %501  ;;  %v519_v43 = vpop.permute.xlu1 %518 }
  0xd3   : > { %v510_v52 = vmul.f32 %v508_v6, %v502_v41  ;;  %v511_v24 = vmul.f32 %v509_v7, %v502_v41  ;;  %v527_v37 = vmul.f32 %v525_v26, %v519_v43  ;;  %v528_v35 = vmul.f32 %v526_v60, %v519_v43  ;;  %v2130_v41 = vld [vmem:[%s3328_s2 + $0x6] ss:$8 sm:$0x3] }
  0xd4   : > { %v619_v53 = vperm.slane %v2130_v41, 0  ;;  %v620_v54 = vperm.slane %v2130_v41, 1 }
  0xd5   : > { %v512_v31 = vadd.f32 %v510_v52, %v495_v28 }
  0xd7   : > { %v2720_v55 = vpop.permute.xlu2 %682  ;;  %v529_v45 = vadd.f32 %v527_v37, %v512_v31 }
  0xd8   : > { %1056 = vperm.xlu1 %2301, %v2161_v56  }
  0xda   : > { %v557_v9 = vpop.permute.xlu1 %556  ;;  %v539_v10 = vpop.permute.xlu0 %538 }
  0xdb   : > { %v541_v12 = vsel %vm540_vm4, %v2659_v14, %v539_v10  ;;  %v542_v13 = vsel %vm540_vm4, %v539_v10, %v2659_v14  ;;  %v496_v14 = vadd.f32 %v494_v23, %v479_v16  ;;  %vm1644_vm4 = vcmp.lt.s32.totalorder %v2582_v59, 4 }
  0xdc   : > { %v550_v17 = vmul.f32 %v546_v0, %v541_v12  ;;  %v551_v18 = vmul.f32 %v547_v1, %v542_v13 }
  0xdd   : > { %v513_v32 = vadd.f32 %v511_v24, %v496_v14  ;;  %v2135_v24 = vld [vmem:[%s3328_s2 + $0x7] ss:$8 sm:$0x3] }
  0xde   : > { %v559_v29 = vperm.slane %v550_v17, 0  ;;  %v560_v30 = vperm.slane %v551_v18, 0  ;;  %v572_v47 = vperm.slane %v550_v17, 1  ;;  %v573_v49 = vperm.slane %v551_v18, 1 }
  0xdf   : > { %v2739_v20 = vpop.permute.xlu2 %715  ;;  %v530_v46 = vadd.f32 %v528_v35, %v513_v32  ;;  %v585_v48 = vperm.slane %v550_v17, 2  ;;  %v586_v56 = vperm.slane %v551_v18, 2  ;;  %v599_v10 = vperm.slane %v551_v18, 3 }
  0xe0   : > { %1095 = vperm.xlu1 %2301, %v2164_v21   ;;  %v561_v19 = vmul.f32 %v559_v29, %v557_v9  ;;  %v562_v39 = vmul.f32 %v560_v30, %v557_v9  ;;  %v574_v57 = vmul.f32 %v572_v47, %v2680_v34  ;;  %v575_v38 = vmul.f32 %v573_v49, %v2680_v34 }
  0xe1   : > { %v598_v9 = vperm.slane %v550_v17, 3  ;;  %v692_v60 = vperm.slane %v2135_v24, 0  ;;  %v693_v28 = vperm.slane %v2135_v24, 1 }
  0xe2   : > { %v596_v33 = vpop.permute.xlu1 %595  ;;  %v583_v36 = vpop.permute.xlu0 %582  ;;  %v563_v50 = vadd.f32 %v561_v19, %v529_v45  ;;  %v564_v43 = vadd.f32 %v562_v39, %v530_v46 }
  0xe3   : > { %v587_v62 = vmul.f32 %v585_v48, %v583_v36  ;;  %v588_v25 = vmul.f32 %v586_v56, %v583_v36  ;;  %v600_v44 = vmul.f32 %v598_v9, %v596_v33  ;;  %v601_v12 = vmul.f32 %v599_v10, %v596_v33 }
  0xe4   : > { %v576_v1 = vadd.f32 %v574_v57, %v563_v50  ;;  %v577_v42 = vadd.f32 %v575_v38, %v564_v43 }
  0xe6   : > { %v589_v11 = vadd.f32 %v587_v62, %v576_v1  ;;  %v590_v34 = vadd.f32 %v588_v25, %v577_v42  ;;  %v2140_v1 = vld [vmem:[%s3328_s2 + $0x10] ss:$8 sm:$0x3] }
  0xe7   : > { %v2746_v40 = vpop.permute.xlu2 %755  ;;  %v765_v9 = vperm.slane %v2140_v1, 0  ;;  %v766_v10 = vperm.slane %v2140_v1, 1 }
  0xe8   : > { %1134 = vperm.xlu1 %2301, %v2167_v51   ;;  %v602_v22 = vadd.f32 %v600_v44, %v589_v11 }
  0xea   : > { %v630_v58 = vpop.permute.xlu1 %629  ;;  %v612_v61 = vpop.permute.xlu0 %611 }
  0xeb   : > { %v614_v63 = vsel %vm613_vm5, %v2699_v5, %v612_v61  ;;  %v615_v0 = vsel %vm613_vm5, %v612_v61, %v2699_v5  ;;  %v603_v5 = vadd.f32 %v601_v12, %v590_v34  ;;  %vm1764_vm5 = vcmp.lt.s32.totalorder %v2582_v59, 124 }
  0xec   : > { %v623_v2 = vmul.f32 %v619_v53, %v614_v63  ;;  %v624_v4 = vmul.f32 %v620_v54, %v615_v0 }
  0xee   : > { %v632_v6 = vperm.slane %v623_v2, 0  ;;  %v633_v7 = vperm.slane %v624_v4, 0  ;;  %v645_v23 = vperm.slane %v623_v2, 1  ;;  %v646_v52 = vperm.slane %v624_v4, 1 }
  0xef   : > { %v2759_v8 = vpop.permute.xlu2 %788  ;;  %v658_v30 = vperm.slane %v623_v2, 2  ;;  %v659_v31 = vperm.slane %v624_v4, 2  ;;  %v671_v46 = vperm.slane %v623_v2, 3  ;;  %v672_v47 = vperm.slane %v624_v4, 3 }
  0xf0   : > { %v634_v16 = vmul.f32 %v632_v6, %v630_v58  ;;  %v635_v21 = vmul.f32 %v633_v7, %v630_v58  ;;  %v647_v14 = vmul.f32 %v645_v23, %v2709_v27  ;;  %v648_v29 = vmul.f32 %v646_v52, %v2709_v27 }
  0xf2   : > { %v669_v13 = vpop.permute.xlu1 %668  ;;  %v656_v15 = vpop.permute.xlu0 %655  ;;  %v636_v17 = vadd.f32 %v634_v16, %v602_v22  ;;  %v637_v18 = vadd.f32 %v635_v21, %v603_v5 }
  0xf3   : > { %v660_v36 = vmul.f32 %v658_v30, %v656_v15  ;;  %v661_v37 = vmul.f32 %v659_v31, %v656_v15  ;;  %v673_v54 = vmul.f32 %v671_v46, %v669_v13  ;;  %v674_v48 = vmul.f32 %v672_v47, %v669_v13 }
  0xf4   : > { %v649_v32 = vadd.f32 %v647_v14, %v636_v17  ;;  %v650_v33 = vadd.f32 %v648_v29, %v637_v18 }
  0xf6   : > { %v662_v50 = vadd.f32 %v660_v36, %v649_v32  ;;  %v663_v27 = vadd.f32 %v661_v37, %v650_v33 }
  0xf7   : > { %v2764_v26 = vpop.permute.xlu2 %865 }
  0xf8   : > { %v675_v38 = vadd.f32 %v673_v54, %v662_v50  ;;  %v676_v58 = vadd.f32 %v674_v48, %v663_v27 }
  0xfa   : > { %v703_v35 = vpop.permute.xlu1 %702  ;;  %v685_v19 = vpop.permute.xlu0 %684 }
  0xfb   : > { %v687_v39 = vsel %vm686_vm6, %v2720_v55, %v685_v19  ;;  %v688_v51 = vsel %vm686_vm6, %v685_v19, %v2720_v55 }
  0xfc   : > { %v696_v41 = vmul.f32 %v692_v60, %v687_v39  ;;  %v697_v45 = vmul.f32 %v693_v28, %v688_v51 }
  0xfe   : > { %v705_v43 = vperm.slane %v696_v41, 0  ;;  %v706_v53 = vperm.slane %v697_v45, 0  ;;  %v718_v25 = vperm.slane %v696_v41, 1  ;;  %v719_v55 = vperm.slane %v697_v45, 1 }
  0xff   : > { %v2771_v49 = vpop.permute.xlu2 %933  ;;  %v731_v6 = vperm.slane %v696_v41, 2  ;;  %v732_v7 = vperm.slane %v697_v45, 2  ;;  %v744_v16 = vperm.slane %v696_v41, 3  ;;  %v745_v21 = vperm.slane %v697_v45, 3 }
 0x100   : > { %v707_v56 = vmul.f32 %v705_v43, %v703_v35  ;;  %v708_v57 = vmul.f32 %v706_v53, %v703_v35  ;;  %v720_v2 = vmul.f32 %v718_v25, %v2739_v20  ;;  %v721_v4 = vmul.f32 %v719_v55, %v2739_v20 }
 0x102   : > { %v742_v61 = vpop.permute.xlu1 %741  ;;  %v729_v62 = vpop.permute.xlu0 %728  ;;  %v709_v63 = vadd.f32 %v707_v56, %v675_v38  ;;  %v710_v0 = vadd.f32 %v708_v57, %v676_v58 }
 0x103   : > { %v733_v44 = vmul.f32 %v731_v6, %v729_v62  ;;  %v734_v12 = vmul.f32 %v732_v7, %v729_v62  ;;  %v746_v18 = vmul.f32 %v744_v16, %v742_v61  ;;  %v747_v60 = vmul.f32 %v745_v21, %v742_v61  ;;  %v2173_v16 = vld [vmem:[%s3327_s1 + $0xec] sm:$0xf] }
 0x104   : > { %v722_v11 = vadd.f32 %v720_v2, %v709_v63  ;;  %v723_v34 = vadd.f32 %v721_v4, %v710_v0  ;;  %v2172_v4 = vld [vmem:[%s3327_s1 + $0xe8] sm:$0xf] }
 0x106   : > { %v735_v23 = vadd.f32 %v733_v44, %v722_v11  ;;  %v736_v20 = vadd.f32 %v734_v12, %v723_v34  ;;  %v2170_v34 = vld [vmem:[%s3327_s1 + $0xe0] sm:$0xf] }
 0x107   : > { %v2776_v42 = vpop.permute.xlu2 %1001 }
 0x108   : > { %v748_v31 = vadd.f32 %v746_v18, %v735_v23  ;;  %v749_v32 = vadd.f32 %v747_v60, %v736_v20  ;;  %v2176_v23 = vld [vmem:[%s3327_s1 + $0xf4] sm:$0xf]  ;;  %v2178_v20 = vld [vmem:[%s3327_s1 + $0xfc] sm:$0xf]  ;;  %v2180_v18 = vld [vmem:[%s3327_s1 + $0x100] sm:$0xf] }
 0x10a   : > { %v776_v13 = vpop.permute.xlu1 %775  ;;  %v758_v15 = vpop.permute.xlu0 %757 }
 0x10b   : > { %v760_v22 = vsel %vm759_vm7, %v2746_v40, %v758_v15  ;;  %v761_v5 = vsel %vm759_vm7, %v758_v15, %v2746_v40  ;;  %v2171_v15 = vld [vmem:[%s3327_s1 + $0xe4] sm:$0xf] }
 0x10c   : > { %v769_v52 = vmul.f32 %v765_v9, %v760_v22  ;;  %v770_v24 = vmul.f32 %v766_v10, %v761_v5  ;;  %v2177_v9 = vld [vmem:[%s3327_s1 + $0xf8] sm:$0xf]  ;;  %v2175_v22 = vld [vmem:[%s3327_s1 + $0xf0] sm:$0xf] }
 0x10d   : > { %v2187_v5 = vld [vmem:[%s3327_s1 + $0x118] sm:$0xf] }
 0x10e   : > { %v778_v28 = vperm.slane %v769_v52, 0  ;;  %v779_v14 = vperm.slane %v770_v24, 0  ;;  %v791_v29 = vperm.slane %v769_v52, 1  ;;  %v792_v30 = vperm.slane %v770_v24, 1 }
 0x10f   : > { %v2783_v17 = vpop.permute.xlu2 %1069  ;;  %v804_v37 = vperm.slane %v769_v52, 2  ;;  %v805_v35 = vperm.slane %v770_v24, 2  ;;  %v817_v45 = vperm.slane %v769_v52, 3  ;;  %v818_v46 = vperm.slane %v770_v24, 3  ;;  %v2192_v24 = vld [vmem:[%s3327_s1 + $0x128] sm:$0xf] }
 0x110   : > { %v780_v33 = vmul.f32 %v778_v28, %v776_v13  ;;  %v781_v36 = vmul.f32 %v779_v14, %v776_v13  ;;  %v793_v39 = vmul.f32 %v791_v29, %v2759_v8  ;;  %v794_v51 = vmul.f32 %v792_v30, %v2759_v8  ;;  %v2182_v13 = vld [vmem:[%s3327_s1 + $0x108] sm:$0xf]  ;;  %v2197_v28 = vld [vmem:[%s3327_s1 + $0x138] sm:$0xf]  ;;  %v2181_v14 = vld [vmem:[%s3327_s1 + $0x104] sm:$0xf] }
 0x111   : > { %v2183_v29 = vld [vmem:[%s3327_s1 + $0x10c] sm:$0xf] }
 0x112   : > { %v782_v19 = vadd.f32 %v780_v33, %v748_v31  ;;  %v783_v40 = vadd.f32 %v781_v36, %v749_v32  ;;  %v815_v41 = vpop.permute.xlu1 %814  ;;  %v802_v47 = vpop.permute.xlu0 %801  ;;  %v2202_v31 = vld [vmem:[%s3327_s1 + $0x148] sm:$0xf]  ;;  %v2185_v32 = vld [vmem:[%s3327_s1 + $0x110] sm:$0xf]  ;;  %v2207_v33 = vld [vmem:[%s3327_s1 + $0x158] sm:$0xf] }
 0x113   : > { %v806_v43 = vmul.f32 %v804_v37, %v802_v47  ;;  %v807_v53 = vmul.f32 %v805_v35, %v802_v47  ;;  %v819_v48 = vmul.f32 %v817_v45, %v815_v41  ;;  %v820_v56 = vmul.f32 %v818_v46, %v815_v41  ;;  %v2186_v36 = vld [vmem:[%s3327_s1 + $0x114] sm:$0xf]  ;;  %v2188_v35 = vld [vmem:[%s3327_s1 + $0x11c] sm:$0xf]  ;;  %v2193_v46 = vld [vmem:[%s3327_s1 + $0x12c] sm:$0xf] }
 0x114   : > { %v795_v50 = vadd.f32 %v793_v39, %v782_v19  ;;  %v796_v27 = vadd.f32 %v794_v51, %v783_v40  ;;  %v2210_v19 = vld [vmem:[%s3327_s1 + $0x164] sm:$0xf]  ;;  %v2190_v39 = vld [vmem:[%s3327_s1 + $0x120] sm:$0xf]  ;;  %v2196_v45 = vld [vmem:[%s3327_s1 + $0x134] sm:$0xf] }
 0x115   : > { %v2191_v40 = vld [vmem:[%s3327_s1 + $0x124] sm:$0xf] }
 0x116   : > { %v808_v57 = vadd.f32 %v806_v43, %v795_v50  ;;  %v809_v38 = vadd.f32 %v807_v53, %v796_v27  ;;  %v2201_v27 = vld [vmem:[%s3327_s1 + $0x144] sm:$0xf]  ;;  %v2145_v43 = vld [vmem:[%s3328_s2 + $0x11] ss:$8 sm:$0x3] }
 0x117   : > { %v2787_v54 = vpop.permute.xlu2 %1108  ;;  %v2195_v53 = vld [vmem:[%s3327_s1 + $0x130] sm:$0xf] }
 0x118   : > { %v821_v58 = vadd.f32 %v819_v48, %v808_v57  ;;  %v822_v61 = vadd.f32 %v820_v56, %v809_v38  ;;  %v842_v48 = vperm.slane %v2145_v43, 0  ;;  %v843_v56 = vperm.slane %v2145_v43, 1  ;;  %v2209_v43 = vld [vmem:[%s3327_s1 + $0x160] sm:$0xf] }
 0x11a   : > { %v2789_v62 = vmax.f32 %v821_v58, 0.0  ;;  %v2791_v25 = vmax.f32 %v822_v61, 0.0  ;;  %v2793_v8 = vpop.permute.xlu0 %878  ;;  %v2849_v21 = vpop.permute.xlu1 %852 }
 0x11c   : > { %v1112_v55 = vperm.slane %v2791_v25, 0  ;;  %1158 = vrot.lane.b32.xlu1 %v2791_v25, %s2377_s17  ;;  %834 = vrot.lane.b32.xlu0 %v2791_v25, %s2378_s19  ;;  %v1151_v63 = vperm.slane %v2791_v25, 3  ;;  %v1125_v11 = vperm.slane %v2791_v25, 1 }
 0x11d   : > { %832 = vrot.lane.b32.xlu2 %v2789_v62, %s2378_s19 }
 0x11e   : > { %v2804_v1 = vmul.f32 %v1112_v55, %v2787_v54 }
 0x11f   : > { %v2801_v0 = vpop.permute.xlu2 %1147 }
 0x120   : > { %v2807_v2 = vmul.f32 %v1151_v63, %v2801_v0 }
 0x122   : > { %v2812_v6 = vpop.permute.xlu0 %946  ;;  %v2865_v52 = vpop.permute.xlu1 %891 }
 0x124   : > { %1202 = vperm.xlu1 %2301, %v2172_v4   ;;  %902 = vrot.lane.b32.xlu0 %v2791_v25, %s2379_s25 }
 0x125   : > { %900 = vrot.lane.b32.xlu2 %v2789_v62, %s2379_s25 }
 0x12a   : > { %v2816_v7 = vpop.permute.xlu0 %1014  ;;  %v2874_v60 = vpop.permute.xlu1 %920 }
 0x12c   : > { %1226 = vrot.lane.b32.xlu1 %v2791_v25, %s2380_s26  ;;  %970 = vrot.lane.b32.xlu0 %v2791_v25, %s2381_s27 }
 0x12d   : > { %968 = vrot.lane.b32.xlu2 %v2789_v62, %s2381_s27  ;;  %s2385_s27 = smov 124  }
 0x132   : > { %v2824_v10 = vpop.permute.xlu0 %1082  ;;  %v2885_v30 = vpop.permute.xlu1 %959 }
 0x134   : > { %1270 = vperm.xlu1 %2301, %v2177_v9   ;;  %1038 = vrot.lane.b32.xlu0 %v2791_v25, %s2382_s30  ;;  %v2150_v9 = vld [vmem:[%s3328_s2 + $0x12] ss:$8 sm:$0x3] }
 0x135   : > { %1036 = vrot.lane.b32.xlu2 %v2789_v62, %s2382_s30  ;;  %s2100_s30 = sshll.u32 %s161_s29, 3 }
 0x136   : > { %s163_s8 = scalar_lea.vmem [#allocation2], %s2100_s30 }
 0x13a   : > { %v2832_v44 = vpop.permute.xlu0 %1121  ;;  %v2900_v37 = vpop.permute.xlu1 %988 }
 0x13b   : > { %v2835_v12 = vmul.f32 %v1125_v11, %v2832_v44  ;;  %v2206_v11 = vld [vmem:[%s3327_s1 + $0x154] sm:$0xf] }
 0x13c   : > { %1294 = vrot.lane.b32.xlu1 %v2791_v25, %s2383_s6  ;;  %1156 = vrot.lane.b32.xlu0 %v2789_v62, %s2377_s17 }
 0x13d   : > { %1176 = vperm.xlu2 %2302, %v2170_v34  }
 0x142   : > { %v2914_v51 = vpop.permute.xlu1 %1027 }
 0x144   : > { %1338 = vperm.xlu1 %2301, %v2182_v13   ;;  %1189 = vperm.xlu0 %2303, %v2171_v15  }
 0x145   : > { %1215 = vperm.xlu2 %2302, %v2173_v16  }
 0x14a   : > { %v2922_v47 = vpop.permute.xlu1 %1056 }
 0x14c   : > { %1362 = vrot.lane.b32.xlu1 %v2791_v25, %s2384_s24  ;;  %1224 = vrot.lane.b32.xlu0 %v2789_v62, %s2380_s26 }
 0x14d   : > { %1244 = vperm.xlu2 %2302, %v2175_v22   ;;  %v2198_v22 = vld [vmem:[%s3327_s1 + $0x13c] sm:$0xf] }
 0x152   : > { %v2934_v61 = vpop.permute.xlu1 %1095 }
 0x154   : > { %1406 = vperm.xlu1 %2301, %v2187_v5   ;;  %1257 = vperm.xlu0 %2303, %v2176_v23  }
 0x155   : > { %1283 = vperm.xlu2 %2302, %v2178_v20   ;;  %v910_v20 = vperm.slane %v2150_v9, 0 }
 0x15c   : > { %1482 = vperm.xlu1 %2301, %v2192_v24   ;;  %1292 = vrot.lane.b32.xlu0 %v2789_v62, %s2383_s6  ;;  %v911_v24 = vperm.slane %v2150_v9, 1 }
 0x15d   : > { %1312 = vperm.xlu2 %2302, %v2180_v18  }
 0x164   : > { %1550 = vperm.xlu1 %2301, %v2197_v28   ;;  %1325 = vperm.xlu0 %2303, %v2181_v14  }
 0x165   : > { %1351 = vperm.xlu2 %2302, %v2183_v29  }
 0x16c   : > { %1618 = vperm.xlu1 %2301, %v2202_v31   ;;  %1360 = vrot.lane.b32.xlu0 %v2789_v62, %s2384_s24  ;;  %s2034_s24 = sshll.u32 %s163_s8, 4  ;;  %s2035_s24 = int_to_ptr.vmem [resolvable:$true] %s2034_s24 }
 0x16d   : > { %1380 = vperm.xlu2 %2302, %v2185_v32  }
 0x174   : > { %1686 = vperm.xlu1 %2301, %v2207_v33   ;;  %1393 = vperm.xlu0 %2303, %v2186_v36  }
 0x175   : > { %1419 = vperm.xlu2 %2302, %v2188_v35  }
 0x177   : > { %v833_v41 = vpop.permute.xlu2 %832 }
 0x17c   : > { %1725 = vperm.xlu1 %2301, %v2210_v19   ;;  %1469 = vperm.xlu0 %2303, %v2191_v40  }
 0x17d   : > { %1456 = vperm.xlu2 %2302, %v2190_v39   ;;  %v2155_v39 = vld [vmem:[%s3328_s2 + $0x13] ss:$8 sm:$0x3] }
 0x17f   : > { %v901_v50 = vpop.permute.xlu2 %900 }
 0x184   : > { %1537 = vperm.xlu0 %2303, %v2196_v45  }
 0x185   : > { %1495 = vperm.xlu2 %2302, %v2193_v46  }
 0x187   : > { %v2936_v55 = vpop.permute.xlu2 %968 }
 0x18c   : > { %1605 = vperm.xlu0 %2303, %v2201_v27  }
 0x18d   : > { %1524 = vperm.xlu2 %2302, %v2195_v53   ;;  %v979_v53 = vperm.slane %v2155_v39, 1 }
 0x18e   : > { %v835_v57 = vpop.permute.xlu0 %834 }
 0x18f   : > { %v837_v38 = vsel %vm836_vm8, %v833_v41, %v835_v57  ;;  %v838_v58 = vsel %vm836_vm8, %v835_v57, %v833_v41 }
 0x190   : > { %v846_v63 = vmul.f32 %v842_v48, %v838_v58  ;;  %v847_v4 = vmul.f32 %v843_v56, %v837_v38  ;;  %v2965_v48 = vpop.permute.xlu1 %1134  ;;  %v1037_v38 = vpop.permute.xlu2 %1036 }
 0x192   : > { %v855_v34 = vperm.slane %v846_v63, 0  ;;  %v856_v13 = vperm.slane %v847_v4, 0  ;;  %v868_v15 = vperm.slane %v846_v63, 1  ;;  %v869_v16 = vperm.slane %v847_v4, 1 }
 0x193   : > { %v881_v5 = vperm.slane %v846_v63, 2  ;;  %v882_v23 = vperm.slane %v847_v4, 2  ;;  %v894_v31 = vperm.slane %v846_v63, 3  ;;  %v895_v32 = vperm.slane %v847_v4, 3  ;;  %v2200_v63 = vld [vmem:[%s3327_s1 + $0x140] sm:$0xf] }
 0x194   : > { %v857_v18 = vmul.f32 %v855_v34, %v2849_v21  ;;  %v858_v28 = vmul.f32 %v856_v13, %v2849_v21  ;;  %v870_v14 = vmul.f32 %v868_v15, %v2764_v26  ;;  %v871_v29 = vmul.f32 %v869_v16, %v2764_v26  ;;  %1673 = vperm.xlu0 %2303, %v2206_v11  }
 0x195   : > { %1563 = vperm.xlu2 %2302, %v2198_v22   ;;  %v883_v35 = vmul.f32 %v881_v5, %v2793_v8  ;;  %v884_v19 = vmul.f32 %v882_v23, %v2793_v8  ;;  %v978_v8 = vperm.slane %v2155_v39, 0  ;;  %v896_v56 = vmul.f32 %v894_v31, %v2865_v52 }
 0x196   : > { %v872_v33 = vadd.f32 %v870_v14, %v857_v18  ;;  %v873_v36 = vadd.f32 %v871_v29, %v858_v28  ;;  %v903_v40 = vpop.permute.xlu0 %902  ;;  %v897_v57 = vmul.f32 %v895_v32, %v2865_v52 }
 0x197   : > { %v905_v21 = vsel %vm904_vm9, %v901_v50, %v903_v40  ;;  %v906_v26 = vsel %vm904_vm9, %v903_v40, %v901_v50 }
 0x198   : > { %v885_v41 = vadd.f32 %v883_v35, %v872_v33  ;;  %v886_v45 = vadd.f32 %v884_v19, %v873_v36  ;;  %v914_v46 = vmul.f32 %v910_v20, %v906_v26  ;;  %v915_v27 = vmul.f32 %v911_v24, %v905_v21  ;;  %v2990_v40 = vpop.permute.xlu1 %1158 }
 0x19a   : > { %v923_v50 = vperm.slane %v914_v46, 0  ;;  %v924_v58 = vperm.slane %v915_v27, 0  ;;  %v936_v4 = vperm.slane %v914_v46, 1  ;;  %v937_v9 = vperm.slane %v915_v27, 1 }
 0x19b   : > { %v949_v11 = vperm.slane %v914_v46, 2  ;;  %v950_v34 = vperm.slane %v915_v27, 2  ;;  %v898_v13 = vadd.f32 %v896_v56, %v885_v41  ;;  %v899_v15 = vadd.f32 %v897_v57, %v886_v45  ;;  %v2160_v41 = vld [vmem:[%s3328_s2 + $0x14] ss:$8 sm:$0x3] }
 0x19c   : > { %v925_v16 = vmul.f32 %v923_v50, %v2874_v60  ;;  %v926_v22 = vmul.f32 %v924_v58, %v2874_v60  ;;  %1712 = vperm.xlu0 %2303, %v2209_v43   ;;  %v962_v5 = vperm.slane %v914_v46, 3  ;;  %v963_v52 = vperm.slane %v915_v27, 3 }
 0x19d   : > { %1592 = vperm.xlu2 %2302, %v2200_v63   ;;  %v938_v24 = vmul.f32 %v936_v4, %v2771_v49  ;;  %v939_v18 = vmul.f32 %v937_v9, %v2771_v49  ;;  %v951_v14 = vmul.f32 %v949_v11, %v2812_v6  ;;  %v952_v29 = vmul.f32 %v950_v34, %v2812_v6  ;;  %v2203_v6 = vld [vmem:[%s3327_s1 + $0x14c] sm:$0xf] }
 0x19e   : > { %v927_v23 = vadd.f32 %v925_v16, %v898_v13  ;;  %v928_v20 = vadd.f32 %v926_v22, %v899_v15  ;;  %v971_v28 = vpop.permute.xlu0 %970  ;;  %v964_v19 = vmul.f32 %v962_v5, %v2885_v30  ;;  %v965_v49 = vmul.f32 %v963_v52, %v2885_v30 }
 0x19f   : > { %v973_v31 = vsel %vm972_vm10, %v2936_v55, %v971_v28  ;;  %v974_v60 = vsel %vm972_vm10, %v971_v28, %v2936_v55  ;;  %v1046_v63 = vperm.slane %v2160_v41, 0  ;;  %v1047_v4 = vperm.slane %v2160_v41, 1 }
 0x1a0   : > { %v940_v32 = vadd.f32 %v938_v24, %v927_v23  ;;  %v941_v33 = vadd.f32 %v939_v18, %v928_v20  ;;  %v982_v36 = vmul.f32 %v978_v8, %v974_v60  ;;  %v983_v35 = vmul.f32 %v979_v53, %v973_v31  ;;  %v2995_v53 = vpop.permute.xlu2 %1176 }
 0x1a2   : > { %v953_v39 = vadd.f32 %v951_v14, %v940_v32  ;;  %v954_v21 = vadd.f32 %v952_v29, %v941_v33  ;;  %v991_v26 = vperm.slane %v982_v36, 0  ;;  %v992_v55 = vperm.slane %v983_v35, 0  ;;  %v2205_v29 = vld [vmem:[%s3327_s1 + $0x150] sm:$0xf]  ;;  %v3012_v33 = vpop.permute.xlu1 %1202 }
 0x1a3   : > { %v1004_v45 = vperm.slane %v982_v36, 1  ;;  %v1005_v46 = vperm.slane %v983_v35, 1  ;;  %v1017_v27 = vperm.slane %v982_v36, 2  ;;  %v1018_v30 = vperm.slane %v983_v35, 2 }
 0x1a4   : > { %v966_v43 = vadd.f32 %v964_v19, %v953_v39  ;;  %v967_v8 = vadd.f32 %v965_v49, %v954_v21  ;;  %v993_v56 = vmul.f32 %v991_v26, %v2900_v37  ;;  %v994_v57 = vmul.f32 %v992_v55, %v2900_v37 }
 0x1a5   : > { %v1006_v50 = vmul.f32 %v1004_v45, %v2776_v42  ;;  %v1007_v58 = vmul.f32 %v1005_v46, %v2776_v42  ;;  %1631 = vperm.xlu2 %2302, %v2203_v6   ;;  %v1030_v34 = vperm.slane %v982_v36, 3  ;;  %v1031_v13 = vperm.slane %v983_v35, 3 }
 0x1a6   : > { %v995_v9 = vadd.f32 %v993_v56, %v966_v43  ;;  %v996_v11 = vadd.f32 %v994_v57, %v967_v8  ;;  %v1039_v15 = vpop.permute.xlu0 %1038  ;;  %v1019_v52 = vmul.f32 %v1017_v27, %v2816_v7  ;;  %v1020_v42 = vmul.f32 %v1018_v30, %v2816_v7 }
 0x1a7   : > { %v1041_v16 = vsel %vm1040_vm11, %v1037_v38, %v1039_v15  ;;  %v1042_v22 = vsel %vm1040_vm11, %v1039_v15, %v1037_v38  ;;  %v1032_v28 = vmul.f32 %v1030_v34, %v2914_v51  ;;  %v1033_v14 = vmul.f32 %v1031_v13, %v2914_v51  ;;  %v2169_v51 = vld [vmem:[%s3328_s2 + $0x16] ss:$8 sm:$0x3] }
 0x1a8   : > { %v1008_v5 = vadd.f32 %v1006_v50, %v995_v9  ;;  %v1009_v37 = vadd.f32 %v1007_v58, %v996_v11  ;;  %v1050_v23 = vmul.f32 %v1046_v63, %v1042_v22  ;;  %v1051_v20 = vmul.f32 %v1047_v4, %v1041_v16  ;;  %v3019_v39 = vpop.permute.xlu2 %1215  ;;  %v2208_v63 = vld [vmem:[%s3327_s1 + $0x15c] sm:$0xf] }
 0x1a9   : > { %v1111_v27 = vperm.slane %v2789_v62, 0  ;;  %v1166_v30 = vperm.slane %v2169_v51, 0  ;;  %v1167_v43 = vperm.slane %v2169_v51, 1  ;;  %v1124_v15 = vperm.slane %v2789_v62, 1 }
 0x1aa   : > { %v1021_v24 = vadd.f32 %v1019_v52, %v1008_v5  ;;  %v1022_v18 = vadd.f32 %v1020_v42, %v1009_v37  ;;  %v1059_v31 = vperm.slane %v1050_v23, 0  ;;  %v1060_v38 = vperm.slane %v1051_v20, 0  ;;  %v1227_v42 = vpop.permute.xlu1 %1226 }
 0x1ab   : > { %v1072_v60 = vperm.slane %v1050_v23, 1  ;;  %v1073_v32 = vperm.slane %v1051_v20, 1  ;;  %v1085_v49 = vperm.slane %v1050_v23, 2  ;;  %v1086_v6 = vperm.slane %v1051_v20, 2 }
 0x1ac   : > { %v1034_v36 = vadd.f32 %v1032_v28, %v1021_v24  ;;  %v1035_v7 = vadd.f32 %v1033_v14, %v1022_v18  ;;  %v1061_v35 = vmul.f32 %v1059_v31, %v2922_v47  ;;  %v1062_v19 = vmul.f32 %v1060_v38, %v2922_v47  ;;  %v2174_v14 = vld [vmem:[%s3328_s2 + $0x17] ss:$8 sm:$0x3] }
 0x1ad   : > { %1660 = vperm.xlu2 %2302, %v2205_v29   ;;  %v1074_v21 = vmul.f32 %v1072_v60, %v2783_v17  ;;  %v1075_v26 = vmul.f32 %v1073_v32, %v2783_v17  ;;  %v1098_v46 = vperm.slane %v1050_v23, 3  ;;  %v1099_v47 = vperm.slane %v1051_v20, 3 }
 0x1ae   : > { %v1157_v55 = vpop.permute.xlu0 %1156  ;;  %v1063_v41 = vadd.f32 %v1061_v35, %v1034_v36  ;;  %v1064_v45 = vadd.f32 %v1062_v19, %v1035_v7  ;;  %v1087_v57 = vmul.f32 %v1085_v49, %v2824_v10  ;;  %v1088_v50 = vmul.f32 %v1086_v6, %v2824_v10 }
 0x1af   : > { %v1161_v58 = vsel %vm1160_vm12, %v1157_v55, %v2990_v40  ;;  %v1162_v17 = vsel %vm1160_vm12, %v2990_v40, %v1157_v55  ;;  %v1100_v11 = vmul.f32 %v1098_v46, %v2934_v61  ;;  %v1101_v34 = vmul.f32 %v1099_v47, %v2934_v61 }
 0x1b0   : > { %v1076_v8 = vadd.f32 %v1074_v21, %v1063_v41  ;;  %v1077_v56 = vadd.f32 %v1075_v26, %v1064_v45  ;;  %v1113_v13 = vmul.f32 %v1111_v27, %v2787_v54  ;;  %v1170_v22 = vmul.f32 %v1166_v30, %v1161_v58  ;;  %v1245_v28 = vpop.permute.xlu2 %1244 }
 0x1b1   : > { %v1171_v5 = vmul.f32 %v1167_v43, %v1162_v17  ;;  %v1150_v40 = vperm.slane %v2789_v62, 3  ;;  %v1137_v37 = vperm.slane %v2789_v62, 2  ;;  %v1138_v52 = vperm.slane %v2791_v25, 2 }
 0x1b2   : > { %v1089_v4 = vadd.f32 %v1087_v57, %v1076_v8  ;;  %v1090_v9 = vadd.f32 %v1088_v50, %v1077_v56  ;;  %v1126_v20 = vmul.f32 %v1124_v15, %v2832_v44  ;;  %v1179_v29 = vperm.slane %v1170_v22, 0  ;;  %v1271_v30 = vpop.permute.xlu1 %1270 }
 0x1b3   : > { %v1139_v24 = vmul.f32 %v1137_v37, %v2965_v48  ;;  %v1140_v18 = vmul.f32 %v1138_v52, %v2965_v48  ;;  %v1180_v31 = vperm.slane %v1171_v5, 0  ;;  %v1152_v32 = vmul.f32 %v1150_v40, %v2801_v0 }
 0x1b4   : > { %v1102_v16 = vadd.f32 %v1100_v11, %v1089_v4  ;;  %v1103_v10 = vadd.f32 %v1101_v34, %v1090_v9  ;;  %v1234_v36 = vperm.slane %v2174_v14, 0  ;;  %v1235_v7 = vperm.slane %v2174_v14, 1 }
 0x1b5   : > { %1699 = vperm.xlu2 %2302, %v2208_v63   ;;  %v1192_v35 = vperm.slane %v1170_v22, 1  ;;  %v1193_v19 = vperm.slane %v1171_v5, 1  ;;  %v1205_v49 = vperm.slane %v1170_v22, 2  ;;  %v1206_v6 = vperm.slane %v1171_v5, 2 }
 0x1b6   : > { %v1190_v23 = vpop.permute.xlu0 %1189  ;;  %v1115_v61 = vadd.f32 %v1113_v13, %v1102_v16  ;;  %v1116_v54 = vadd.f32 %v2804_v1, %v1103_v10  ;;  %v2211_v1 = vld [vmem:[%s3327_s1 + $0x168] sm:$0xf]  ;;  %v1182_v0 = vmul.f32 %v1180_v31, %v2995_v53  ;;  %v1218_v43 = vperm.slane %v1170_v22, 3 }
 0x1b7   : > { %v1194_v26 = vmul.f32 %v1192_v35, %v1190_v23  ;;  %v1195_v55 = vmul.f32 %v1193_v19, %v1190_v23  ;;  %v1219_v8 = vperm.slane %v1171_v5, 3  ;;  %v1207_v57 = vmul.f32 %v1205_v49, %v3012_v33 }
 0x1b8   : > { %v1128_v38 = vadd.f32 %v1126_v20, %v1115_v61  ;;  %v1129_v60 = vadd.f32 %v2835_v12, %v1116_v54  ;;  %v1181_v12 = vmul.f32 %v1179_v29, %v2995_v53  ;;  %v1208_v53 = vmul.f32 %v1206_v6, %v3012_v33  ;;  %v1284_v17 = vpop.permute.xlu2 %1283  ;;  %v2179_v33 = vld [vmem:[%s3328_s2 + $0x20] ss:$8 sm:$0x3] }
 0x1b9   : > { %v1220_v34 = vmul.f32 %v1218_v43, %v3019_v39  ;;  %v1221_v13 = vmul.f32 %v1219_v8, %v3019_v39  ;;  %v1303_v14 = vperm.slane %v2179_v33, 1 }
 0x1ba   : > { %v1141_v44 = vadd.f32 %v1139_v24, %v1128_v38  ;;  %v1142_v48 = vadd.f32 %v1140_v18, %v1129_v60  ;;  %v1295_v52 = vpop.permute.xlu1 %1294  ;;  %v1302_v18 = vperm.slane %v2179_v33, 0 }
 0x1bc   : > { %v1154_v51 = vadd.f32 %v1152_v32, %v1141_v44  ;;  %v1155_v21 = vadd.f32 %v2807_v2, %v1142_v48 }
 0x1bd   : > { %1738 = vperm.xlu2 %2302, %v2211_v1  }
 0x1be   : > { %v1225_v41 = vpop.permute.xlu0 %1224  ;;  %v1183_v45 = vadd.f32 %v1181_v12, %v1154_v51  ;;  %v1184_v46 = vadd.f32 %v1182_v0, %v1155_v21 }
 0x1bf   : > { %v1229_v47 = vsel %vm1228_vm13, %v1225_v41, %v1227_v42  ;;  %v1230_v27 = vsel %vm1228_vm13, %v1227_v42, %v1225_v41 }
 0x1c0   : > { %v1238_v2 = vmul.f32 %v1234_v36, %v1229_v47  ;;  %v1239_v56 = vmul.f32 %v1235_v7, %v1230_v27  ;;  %v1196_v50 = vadd.f32 %v1194_v26, %v1183_v45  ;;  %v1197_v58 = vadd.f32 %v1195_v55, %v1184_v46  ;;  %v1313_v54 = vpop.permute.xlu2 %1312 }
 0x1c2   : > { %v1247_v63 = vperm.slane %v1238_v2, 0  ;;  %v1248_v4 = vperm.slane %v1239_v56, 0  ;;  %v1209_v9 = vadd.f32 %v1207_v57, %v1196_v50  ;;  %v1210_v11 = vadd.f32 %v1208_v53, %v1197_v58  ;;  %v1339_v51 = vpop.permute.xlu1 %1338 }
 0x1c3   : > { %v1260_v40 = vperm.slane %v1238_v2, 1  ;;  %v1261_v37 = vperm.slane %v1239_v56, 1  ;;  %v1273_v39 = vperm.slane %v1238_v2, 2  ;;  %v1274_v24 = vperm.slane %v1239_v56, 2 }
 0x1c4   : > { %v1222_v16 = vadd.f32 %v1220_v34, %v1209_v9  ;;  %v1223_v10 = vadd.f32 %v1221_v13, %v1210_v11  ;;  %v1249_v22 = vmul.f32 %v1247_v63, %v1245_v28  ;;  %v1250_v5 = vmul.f32 %v1248_v4, %v1245_v28 }
 0x1c5   : > { %v1286_v38 = vperm.slane %v1238_v2, 3  ;;  %v1287_v60 = vperm.slane %v1239_v56, 3  ;;  %v1275_v44 = vmul.f32 %v1273_v39, %v1271_v30  ;;  %v1276_v48 = vmul.f32 %v1274_v24, %v1271_v30  ;;  %v2184_v56 = vld [vmem:[%s3328_s2 + $0x21] ss:$8 sm:$0x3] }
 0x1c6   : > { %v1258_v15 = vpop.permute.xlu0 %1257  ;;  %v1251_v42 = vadd.f32 %v1249_v22, %v1222_v16  ;;  %v1252_v23 = vadd.f32 %v1250_v5, %v1223_v10  ;;  %v1371_v63 = vperm.slane %v2184_v56, 1 }
 0x1c7   : > { %v1262_v20 = vmul.f32 %v1260_v40, %v1258_v15  ;;  %v1263_v61 = vmul.f32 %v1261_v37, %v1258_v15  ;;  %v1288_v21 = vmul.f32 %v1286_v38, %v1284_v17  ;;  %v1289_v12 = vmul.f32 %v1287_v60, %v1284_v17 }
 0x1c8   : > { %v1352_v55 = vpop.permute.xlu2 %1351  ;;  %v1370_v17 = vperm.slane %v2184_v56, 0  ;;  %v2215_v56 = vld [vmem:[%s3327_s1 + $0x174] sm:$0xf] }
 0x1c9   : > { %v1264_v29 = vadd.f32 %v1262_v20, %v1251_v42  ;;  %v1265_v28 = vadd.f32 %v1263_v61, %v1252_v23 }
 0x1ca   : > { %v1363_v4 = vpop.permute.xlu1 %1362 }
 0x1cb   : > { %v1277_v35 = vadd.f32 %v1275_v44, %v1264_v29  ;;  %v1278_v19 = vadd.f32 %v1276_v48, %v1265_v28 }
 0x1cd   : > { %v1290_v47 = vadd.f32 %v1288_v21, %v1277_v35  ;;  %v1291_v27 = vadd.f32 %v1289_v12, %v1278_v19 }
 0x1ce   : > { %v1293_v31 = vpop.permute.xlu0 %1292 }
 0x1cf   : > { %v1297_v32 = vsel %vm1296_vm14, %v1293_v31, %v1295_v52  ;;  %v1298_v1 = vsel %vm1296_vm14, %v1295_v52, %v1293_v31 }
 0x1d0   : > { %v1306_v36 = vmul.f32 %v1302_v18, %v1297_v32  ;;  %v1307_v7 = vmul.f32 %v1303_v14, %v1298_v1  ;;  %v1381_v22 = vpop.permute.xlu2 %1380 }
 0x1d2   : > { %v1315_v49 = vperm.slane %v1306_v36, 0  ;;  %v1316_v6 = vperm.slane %v1307_v7, 0  ;;  %v1328_v41 = vperm.slane %v1306_v36, 1  ;;  %v1329_v45 = vperm.slane %v1307_v7, 1 }
 0x1d3   : > { %v1341_v57 = vperm.slane %v1306_v36, 2  ;;  %v1342_v53 = vperm.slane %v1307_v7, 2  ;;  %v1354_v9 = vperm.slane %v1306_v36, 3  ;;  %v1355_v11 = vperm.slane %v1307_v7, 3  ;;  %v1407_v36 = vpop.permute.xlu1 %1406 }
 0x1d4   : > { %v1317_v0 = vmul.f32 %v1315_v49, %v1313_v54  ;;  %v1318_v26 = vmul.f32 %v1316_v6, %v1313_v54 }
 0x1d5   : > { %v1343_v34 = vmul.f32 %v1341_v57, %v1339_v51  ;;  %v1344_v13 = vmul.f32 %v1342_v53, %v1339_v51  ;;  %v1356_v23 = vmul.f32 %v1354_v9, %v1352_v55  ;;  %v1357_v20 = vmul.f32 %v1355_v11, %v1352_v55  ;;  %v2212_v57 = vld [vmem:[%s3327_s1 + $0x16c] sm:$0xf]  ;;  %v2231_v53 = vld [vmem:[%s3327_s1 + $0x1a8] sm:$0xf]  ;;  %v2226_v11 = vld [vmem:[%s3327_s1 + $0x198] sm:$0xf] }
 0x1d6   : > { %v1326_v46 = vpop.permute.xlu0 %1325  ;;  %v1319_v43 = vadd.f32 %v1317_v0, %v1290_v47  ;;  %v1320_v8 = vadd.f32 %v1318_v26, %v1291_v27 }
 0x1d7   : > { %v1330_v30 = vmul.f32 %v1328_v41, %v1326_v46  ;;  %v1331_v2 = vmul.f32 %v1329_v45, %v1326_v46  ;;  %v827_v41 = vrot.slane %v2791_v25, 4 }
 0x1d8   : > { %v1420_v6 = vpop.permute.xlu2 %1419 }
 0x1d9   : > { %v1332_v50 = vadd.f32 %v1330_v30, %v1319_v43  ;;  %v1333_v58 = vadd.f32 %v1331_v2, %v1320_v8  ;;  %v829_v47 = vsel %vm828_vm0, %v2789_v62, %v827_v41  ;;  %v2216_v8 = vld [vmem:[%s3327_s1 + $0x178] sm:$0xf]  ;;  %v2220_v62 = vld [vmem:[%s3327_s1 + $0x184] sm:$0xf]  ;;  %v2227_v2 = vld [vmem:[%s3327_s1 + $0x19c] sm:$0xf] }
 0x1da   : > { %v831_v25 = vadd.f32 %v829_v47, %v2469_v3  ;;  %v2224_v3 = vld [vmem:[%s3327_s1 + $0x190] sm:$0xf] }
 0x1db   : > { %v1345_v5 = vadd.f32 %v1343_v34, %v1332_v50  ;;  %v1346_v40 = vadd.f32 %v1344_v13, %v1333_v58  ;;  %v2214_v50 = vld [vmem:[%s3327_s1 + $0x170] sm:$0xf]  ;;  %v2219_v58 = vld [vmem:[%s3327_s1 + $0x180] sm:$0xf]  ;;  %v2225_v34 = vld [vmem:[%s3327_s1 + $0x194] sm:$0xf] }
 0x1dd   : > { %v1358_v61 = vadd.f32 %v1356_v23, %v1345_v5  ;;  %v1359_v54 = vadd.f32 %v1357_v20, %v1346_v40 }
 0x1de   : > { %v1361_v15 = vpop.permute.xlu0 %1360 }
 0x1df   : > { %v1365_v16 = vsel %vm1364_vm15, %v1361_v15, %v1363_v4  ;;  %v1366_v10 = vsel %vm1364_vm15, %v1363_v4, %v1361_v15  ;;  %v2221_v4 = vld [vmem:[%s3327_s1 + $0x188] sm:$0xf]  ;;  %v1483_v15 = vpop.permute.xlu1 %1482 }
 0x1e0   : > { %v1374_v37 = vmul.f32 %v1370_v17, %v1365_v16  ;;  %v1375_v33 = vmul.f32 %v1371_v63, %v1366_v10  ;;  %v2217_v17 = vld [vmem:[%s3327_s1 + $0x17c] sm:$0xf]  ;;  %v2222_v63 = vld [vmem:[%s3327_s1 + $0x18c] sm:$0xf]  ;;  %v1457_v9 = vpop.permute.xlu2 %1456  ;;  %v2230_v10 = vld [vmem:[%s3327_s1 + $0x1a4] sm:$0xf] }
 0x1e2   : > { %v1383_v52 = vperm.slane %v1374_v37, 0  ;;  %v1384_v42 = vperm.slane %v1375_v33, 0  ;;  %v1396_v18 = vperm.slane %v1374_v37, 1  ;;  %v1397_v14 = vperm.slane %v1375_v33, 1 }
 0x1e3   : > { %v1409_v29 = vperm.slane %v1374_v37, 2  ;;  %v1410_v28 = vperm.slane %v1375_v33, 2  ;;  %v1422_v32 = vperm.slane %v1374_v37, 3  ;;  %v1423_v1 = vperm.slane %v1375_v33, 3  ;;  %v2232_v33 = vld [vmem:[%s3327_s1 + $0x1ac] sm:$0xf] }
 0x1e4   : > { %v1385_v39 = vmul.f32 %v1383_v52, %v1381_v22  ;;  %v1386_v24 = vmul.f32 %v1384_v42, %v1381_v22  ;;  %v2229_v22 = vld [vmem:[%s3327_s1 + $0x1a0] sm:$0xf] }
 0x1e5   : > { %v1411_v7 = vmul.f32 %v1409_v29, %v1407_v36  ;;  %v1412_v35 = vmul.f32 %v1410_v28, %v1407_v36  ;;  %v1424_v12 = vmul.f32 %v1422_v32, %v1420_v6  ;;  %v1425_v0 = vmul.f32 %v1423_v1, %v1420_v6  ;;  %v2194_v36 = vld [vmem:[%s3328_s2 + $0x23] ss:$8 sm:$0x3] }
 0x1e6   : > { %v1394_v31 = vpop.permute.xlu0 %1393  ;;  %v1387_v38 = vadd.f32 %v1385_v39, %v1358_v61  ;;  %v1388_v60 = vadd.f32 %v1386_v24, %v1359_v54 }
 0x1e7   : > { %v1398_v44 = vmul.f32 %v1396_v18, %v1394_v31  ;;  %v1399_v48 = vmul.f32 %v1397_v14, %v1394_v31  ;;  %v3148_v40 = vpop.permute.xlu1 %1550  ;;  %v2189_v14 = vld [vmem:[%s3328_s2 + $0x22] ss:$8 sm:$0x3] }
 0x1e8   : > { %v3138_v13 = vpop.permute.xlu2 %1495  ;;  %v1446_v29 = vperm.slane %v2189_v14, 0  ;;  %v1447_v28 = vperm.slane %v2189_v14, 1 }
 0x1e9   : > { %v1400_v19 = vadd.f32 %v1398_v44, %v1387_v38  ;;  %v1401_v49 = vadd.f32 %v1399_v48, %v1388_v60 }
 0x1eb   : > { %v1413_v51 = vadd.f32 %v1411_v7, %v1400_v19  ;;  %v1414_v21 = vadd.f32 %v1412_v35, %v1401_v49 }
 0x1ed   : > { %v1426_v26 = vadd.f32 %v1424_v12, %v1413_v51  ;;  %v1427_v55 = vadd.f32 %v1425_v0, %v1414_v21  ;;  %v1514_v21 = vperm.slane %v2194_v36, 0  ;;  %v1515_v12 = vperm.slane %v2194_v36, 1 }
 0x1ee   : > { %v1470_v16 = vpop.permute.xlu0 %1469 }
 0x1ef   : > { %v3072_v45 = vmax.f32 %v1426_v26, 0.0  ;;  %v3074_v46 = vmax.f32 %v1427_v55, 0.0  ;;  %v3157_v42 = vpop.permute.xlu1 %1618 }
 0x1f0   : > { %v3146_v5 = vpop.permute.xlu2 %1524 }
 0x1f1   : > { %1762 = vrot.lane.b32.xlu2 %v3074_v46, %s2385_s27  ;;  %1438 = vrot.lane.b32.xlu1 %v3074_v46, %s2386_s28  ;;  %v1432_v27 = vrot.slane %v3074_v46, 4 }
 0x1f2   : > { %1436 = vrot.lane.b32.xlu0 %v3072_v45, %s2386_s28 }
 0x1f3   : > { %v1433_v43 = vsel %vm828_vm0, %v3072_v45, %v1432_v27 }
 0x1f4   : > { %v3089_v30 = vadd.f32 %v1433_v43, %v831_v25 }
 0x1f6   : > { %v3150_v37 = vpop.permute.xlu0 %1537 }
 0x1f7   : > { %v3163_v61 = vpop.permute.xlu1 %1686 }
 0x1f8   : > { %v3155_v52 = vpop.permute.xlu2 %1563 }
 0x1f9   : > { %1806 = vperm.xlu2 %2302, %v2216_v8   ;;  %1506 = vrot.lane.b32.xlu1 %v3074_v46, %s2387_s4 }
 0x1fa   : > { %1504 = vrot.lane.b32.xlu0 %v3072_v45, %s2387_s4  ;;  %s2239_s4 = sshll.u32 %s2431_s16, 3  ;;  %s2021_s16 = scalar_lea.sflag [#allocation3], %s161_s29 }
 0x1fe   : > { %v3159_v23 = vpop.permute.xlu0 %1605 }
 0x1ff   : > { %v3169_v24 = vpop.permute.xlu1 %1725 }
 0x200   : > { %v3161_v20 = vpop.permute.xlu2 %1592 }
 0x201   : > { %1854 = vperm.xlu2 %2302, %v2220_v62   ;;  %1574 = vrot.lane.b32.xlu1 %v3074_v46, %s2388_s7 }
 0x202   : > { %1572 = vrot.lane.b32.xlu0 %v3072_v45, %s2388_s7  ;;  %s2032_s7 = scalar_lea.hbm %s3329_s3, %s2239_s4 }
 0x206   : > { %v3165_v54 = vpop.permute.xlu0 %1673 }
 0x208   : > { %v3167_v39 = vpop.permute.xlu2 %1631 }
 0x209   : > { %1902 = vperm.xlu2 %2302, %v2224_v3   ;;  %1642 = vrot.lane.b32.xlu1 %v3074_v46, %s2389_s9 }
 0x20a   : > { %1640 = vrot.lane.b32.xlu0 %v3072_v45, %s2389_s9  ;;  %s2036_s9 = sshll.u32 %s2032_s7, 4  ;;  %s2037_s9 = int_to_ptr.hbm [resolvable:$true] %s2036_s9 }
 0x20b   : > { %s2318_s10 = sshra.s32 %s2037_s9, 4  ;;  %s2319_s10 = int_to_ptr.hbm [resolvable:$true] %s2318_s10 }
 0x20c   : > { %p2325_p0 = scmp.lt.s32.totalorder %s2319_s10, %s3329_s3 }
 0x20e   : > { %v3171_v18 = vpop.permute.xlu0 %1712 }
 0x210   : > { %v3177_v38 = vpop.permute.xlu2 %1660 }
 0x211   : > { %1941 = vperm.xlu2 %2302, %v2227_v2   ;;  %1793 = vperm.xlu1 %2301, %v2215_v56   ;;  %v2199_v56 = vld [vmem:[%s3328_s2 + $0x24] ss:$8 sm:$0x3] }
 0x212   : > { %1751 = vperm.xlu0 %2303, %v2212_v57  }
 0x219   : > { %1989 = vperm.xlu2 %2302, %v2231_v53   ;;  %1760 = vrot.lane.b32.xlu1 %v3072_v45, %s2385_s27  ;;  %s2320_s27 = scalar_lea.hbm %s2319_s10, 8 }
 0x21a   : > { %1780 = vperm.xlu0 %2303, %v2214_v50   ;;  %v3200_v50 = vpop.permute.xlu2 %1699  ;;  %p2321_p11 = scmp.ne.s32.totalorder %s2319_s10, %s2320_s27  ;;  %p2326_p1 = scmp.lt.s32.totalorder %s2324_s20, %s2320_s27 }
 0x21c   : > { %p2322_p12 = pnand %p2321_p11, %p2448_p5  ;;  %p2327_p2 = por %p2326_p1, %p2325_p0 }
 0x21e   : > { %p2323_p13 = pneg %p2322_p12 }
 0x220   : > { %p2328_p3 = pnand %p2327_p2, %p2323_p13 }
 0x221   : > { %1841 = vperm.xlu1 %2301, %v2219_v58  }
 0x222   : > { %1819 = vperm.xlu0 %2303, %v2217_v17  }
 0x229   : > { %1880 = vperm.xlu1 %2301, %v2222_v63  }
 0x22a   : > { %1867 = vperm.xlu0 %2303, %v2221_v4  }
 0x231   : > { %1928 = vperm.xlu1 %2301, %v2226_v11   ;;  %v1583_v11 = vperm.slane %v2199_v56, 1 }
 0x232   : > { %1915 = vperm.xlu0 %2303, %v2225_v34  }
 0x239   : > { %1976 = vperm.xlu1 %2301, %v2230_v10  }
 0x23a   : > { %1963 = vperm.xlu0 %2303, %v2229_v22  }
 0x242   : > { %2002 = vperm.xlu0 %2303, %v2232_v33  }
 0x263   : > { %v1439_v31 = vpop.permute.xlu1 %1438 }
 0x264   : > { %v1437_v60 = vpop.permute.xlu0 %1436 }
 0x265   : > { %v3179_v32 = vsel %vm1440_vm1, %v1437_v60, %v1439_v31  ;;  %v3181_v1 = vsel %vm1440_vm1, %v1439_v31, %v1437_v60 }
 0x266   : > { %v1450_v44 = vmul.f32 %v1446_v29, %v3181_v1  ;;  %v1451_v48 = vmul.f32 %v1447_v28, %v3179_v32 }
 0x268   : > { %v1459_v7 = vperm.slane %v1450_v44, 0  ;;  %v1460_v35 = vperm.slane %v1451_v48, 0  ;;  %v1472_v19 = vperm.slane %v1450_v44, 1  ;;  %v1473_v49 = vperm.slane %v1451_v48, 1 }
 0x269   : > { %v1485_v6 = vperm.slane %v1450_v44, 2  ;;  %v1486_v51 = vperm.slane %v1451_v48, 2  ;;  %v1498_v47 = vperm.slane %v1450_v44, 3  ;;  %v1499_v27 = vperm.slane %v1451_v48, 3 }
 0x26a   : > { %v1461_v0 = vmul.f32 %v1459_v7, %v1457_v9  ;;  %v1462_v26 = vmul.f32 %v1460_v35, %v1457_v9  ;;  %v1474_v55 = vmul.f32 %v1472_v19, %v1470_v16  ;;  %v1475_v41 = vmul.f32 %v1473_v49, %v1470_v16 }
 0x26b   : > { %v1507_v25 = vpop.permute.xlu1 %1506  ;;  %v1487_v62 = vmul.f32 %v1485_v6, %v1483_v15  ;;  %v1488_v3 = vmul.f32 %v1486_v51, %v1483_v15  ;;  %v1582_v9 = vperm.slane %v2199_v56, 0  ;;  %v1500_v34 = vmul.f32 %v1498_v47, %v3138_v13 }
 0x26c   : > { %v1476_v43 = vadd.f32 %v1474_v55, %v1461_v0  ;;  %v1477_v8 = vadd.f32 %v1475_v41, %v1462_v26  ;;  %v1505_v2 = vpop.permute.xlu0 %1504  ;;  %v1501_v15 = vmul.f32 %v1499_v27, %v3138_v13 }
 0x26d   : > { %v3194_v57 = vsel %vm1508_vm2, %v1505_v2, %v1507_v25  ;;  %v3198_v53 = vsel %vm1508_vm2, %v1507_v25, %v1505_v2 }
 0x26e   : > { %v1489_v58 = vadd.f32 %v1487_v62, %v1476_v43  ;;  %v1490_v17 = vadd.f32 %v1488_v3, %v1477_v8  ;;  %v1518_v63 = vmul.f32 %v1514_v21, %v3198_v53  ;;  %v1519_v4 = vmul.f32 %v1515_v12, %v3194_v57  ;;  %v2204_v62 = vld [vmem:[%s3328_s2 + $0x25] ss:$8 sm:$0x3] }
 0x270   : > { %v1527_v16 = vperm.slane %v1518_v63, 0  ;;  %v1528_v10 = vperm.slane %v1519_v4, 0  ;;  %v1540_v22 = vperm.slane %v1518_v63, 1  ;;  %v1541_v33 = vperm.slane %v1519_v4, 1 }
 0x271   : > { %v1553_v14 = vperm.slane %v1518_v63, 2  ;;  %v1554_v29 = vperm.slane %v1519_v4, 2  ;;  %v1502_v28 = vadd.f32 %v1500_v34, %v1489_v58  ;;  %v1503_v31 = vadd.f32 %v1501_v15, %v1490_v17 }
 0x272   : > { %v1529_v60 = vmul.f32 %v1527_v16, %v3146_v5  ;;  %v1530_v44 = vmul.f32 %v1528_v10, %v3146_v5  ;;  %v1566_v48 = vperm.slane %v1518_v63, 3  ;;  %v1567_v36 = vperm.slane %v1519_v4, 3 }
 0x273   : > { %v1575_v7 = vpop.permute.xlu1 %1574  ;;  %v1542_v49 = vmul.f32 %v1540_v22, %v3150_v37  ;;  %v1543_v13 = vmul.f32 %v1541_v33, %v3150_v37  ;;  %v1555_v51 = vmul.f32 %v1553_v14, %v3148_v40  ;;  %v1556_v21 = vmul.f32 %v1554_v29, %v3148_v40  ;;  %v3226_v40 = vpop.permute.xlu2 %1738 }
 0x274   : > { %v1531_v35 = vadd.f32 %v1529_v60, %v1502_v28  ;;  %v1532_v19 = vadd.f32 %v1530_v44, %v1503_v31  ;;  %v1573_v6 = vpop.permute.xlu0 %1572  ;;  %v1568_v37 = vmul.f32 %v1566_v48, %v3155_v52  ;;  %v1569_v47 = vmul.f32 %v1567_v36, %v3155_v52 }
 0x275   : > { %v3215_v12 = vsel %vm1576_vm3, %v1573_v6, %v1575_v7  ;;  %v3219_v5 = vsel %vm1576_vm3, %v1575_v7, %v1573_v6  ;;  %v1650_v15 = vperm.slane %v2204_v62, 0  ;;  %v1651_v16 = vperm.slane %v2204_v62, 1 }
 0x276   : > { %v1544_v0 = vadd.f32 %v1542_v49, %v1531_v35  ;;  %v1545_v26 = vadd.f32 %v1543_v13, %v1532_v19  ;;  %v1586_v55 = vmul.f32 %v1582_v9, %v3219_v5  ;;  %v1587_v41 = vmul.f32 %v1583_v11, %v3215_v12 }
 0x278   : > { %v1557_v27 = vadd.f32 %v1555_v51, %v1544_v0  ;;  %v1558_v25 = vadd.f32 %v1556_v21, %v1545_v26  ;;  %v1595_v43 = vperm.slane %v1586_v55, 0  ;;  %v1596_v8 = vperm.slane %v1587_v41, 0 }
 0x279   : > { %v1608_v3 = vperm.slane %v1586_v55, 1  ;;  %v1609_v2 = vperm.slane %v1587_v41, 1  ;;  %v1621_v56 = vperm.slane %v1586_v55, 2  ;;  %v1622_v58 = vperm.slane %v1587_v41, 2 }
 0x27a   : > { %v1570_v17 = vadd.f32 %v1568_v37, %v1557_v27  ;;  %v1571_v63 = vadd.f32 %v1569_v47, %v1558_v25  ;;  %v1597_v52 = vmul.f32 %v1595_v43, %v3161_v20  ;;  %v1598_v4 = vmul.f32 %v1596_v8, %v3161_v20 }
 0x27b   : > { %v1610_v9 = vmul.f32 %v1608_v3, %v3159_v23  ;;  %v1611_v11 = vmul.f32 %v1609_v2, %v3159_v23  ;;  %v1643_v34 = vpop.permute.xlu1 %1642  ;;  %v1634_v33 = vperm.slane %v1586_v55, 3  ;;  %v1635_v14 = vperm.slane %v1587_v41, 3  ;;  %v1763_v7 = vpop.permute.xlu2 %1762 }
 0x27c   : > { %v1599_v10 = vadd.f32 %v1597_v52, %v1570_v17  ;;  %v1600_v22 = vadd.f32 %v1598_v4, %v1571_v63  ;;  %v1641_v29 = vpop.permute.xlu0 %1640  ;;  %v1623_v44 = vmul.f32 %v1621_v56, %v3157_v42  ;;  %v1624_v23 = vmul.f32 %v1622_v58, %v3157_v42  ;;  %v2213_v56 = vld [vmem:[%s3328_s2 + $0x27] ss:$8 sm:$0x3] }
 0x27d   : > { %v1645_v28 = vsel %vm1644_vm4, %v1641_v29, %v1643_v34  ;;  %v1646_v31 = vsel %vm1644_vm4, %v1643_v34, %v1641_v29  ;;  %v1636_v49 = vmul.f32 %v1634_v33, %v3167_v39  ;;  %v1637_v13 = vmul.f32 %v1635_v14, %v3167_v39 }
 0x27e   : > { %v1612_v60 = vadd.f32 %v1610_v9, %v1599_v10  ;;  %v1613_v20 = vadd.f32 %v1611_v11, %v1600_v22  ;;  %v1654_v48 = vmul.f32 %v1650_v15, %v1646_v31  ;;  %v1655_v36 = vmul.f32 %v1651_v16, %v1645_v28 }
 0x27f   : > { %v1728_v58 = vperm.slane %v3072_v45, 1  ;;  %v1715_v17 = vperm.slane %v3072_v45, 0  ;;  %v1716_v11 = vperm.slane %v3074_v46, 0  ;;  %v1770_v34 = vperm.slane %v2213_v56, 0 }
 0x280   : > { %v1625_v35 = vadd.f32 %v1623_v44, %v1612_v60  ;;  %v1626_v19 = vadd.f32 %v1624_v23, %v1613_v20  ;;  %v1663_v6 = vperm.slane %v1654_v48, 0  ;;  %v1664_v51 = vperm.slane %v1655_v36, 0 }
 0x281   : > { %v1676_v21 = vperm.slane %v1654_v48, 1  ;;  %v1677_v0 = vperm.slane %v1655_v36, 1  ;;  %v1689_v42 = vperm.slane %v1654_v48, 2  ;;  %v1690_v47 = vperm.slane %v1655_v36, 2 }
 0x282   : > { %v1638_v26 = vadd.f32 %v1636_v49, %v1625_v35  ;;  %v1639_v55 = vadd.f32 %v1637_v13, %v1626_v19  ;;  %v1665_v41 = vmul.f32 %v1663_v6, %v3177_v38  ;;  %v1666_v37 = vmul.f32 %v1664_v51, %v3177_v38 }
 0x283   : > { %v3245_v27 = vpop.permute.xlu1 %1793  ;;  %v1678_v25 = vmul.f32 %v1676_v21, %v3165_v54  ;;  %v1702_v43 = vperm.slane %v1654_v48, 3  ;;  %v1679_v3 = vmul.f32 %v1677_v0, %v3165_v54  ;;  %v1703_v2 = vperm.slane %v1655_v36, 3  ;;  %v1807_v29 = vpop.permute.xlu2 %1806 }
 0x284   : > { %v1752_v8 = vpop.permute.xlu0 %1751  ;;  %v1667_v62 = vadd.f32 %v1665_v41, %v1638_v26  ;;  %v1668_v39 = vadd.f32 %v1666_v37, %v1639_v55  ;;  %v1729_v38 = vperm.slane %v3074_v46, 1  ;;  %v1691_v4 = vmul.f32 %v1689_v42, %v3163_v61 }
 0x285   : > { %v1692_v9 = vmul.f32 %v1690_v47, %v3163_v61  ;;  %v1704_v54 = vmul.f32 %v1702_v43, %v3200_v50  ;;  %v1705_v15 = vmul.f32 %v1703_v2, %v3200_v50  ;;  %v1771_v22 = vperm.slane %v2213_v56, 1  ;;  %v2218_v50 = vld [vmem:[%s3328_s2 + $0x30] ss:$8 sm:$0x3] }
 0x286   : > { %v1680_v63 = vadd.f32 %v1678_v25, %v1667_v62  ;;  %v1681_v52 = vadd.f32 %v1679_v3, %v1668_v39  ;;  %v1741_v33 = vperm.slane %v3072_v45, 2  ;;  %v1742_v14 = vperm.slane %v3074_v46, 2 }
 0x287   : > { %v1755_v28 = vperm.slane %v3074_v46, 3  ;;  %v1754_v61 = vperm.slane %v3072_v45, 3  ;;  %v1717_v31 = vmul.f32 %v1715_v17, %v3171_v18  ;;  %v1718_v60 = vmul.f32 %v1716_v11, %v3171_v18 }
 0x288   : > { %v1693_v16 = vadd.f32 %v1691_v4, %v1680_v63  ;;  %v1694_v10 = vadd.f32 %v1692_v9, %v1681_v52  ;;  %v1730_v48 = vmul.f32 %v1728_v58, %v3169_v24  ;;  %v1731_v36 = vmul.f32 %v1729_v38, %v3169_v24 }
 0x289   : > { %v1743_v6 = vmul.f32 %v1741_v33, %v3226_v40  ;;  %v1744_v51 = vmul.f32 %v1742_v14, %v3226_v40  ;;  %v1831_v21 = vperm.slane %v2218_v50, 0  ;;  %v1832_v0 = vperm.slane %v2218_v50, 1  ;;  %v2223_v40 = vld [vmem:[%s3328_s2 + $0x31] ss:$8 sm:$0x3] }
 0x28a   : > { %v1706_v20 = vadd.f32 %v1704_v54, %v1693_v16  ;;  %v1707_v44 = vadd.f32 %v1705_v15, %v1694_v10  ;;  %v1756_v37 = vmul.f32 %v1754_v61, %v1752_v8  ;;  %v1757_v42 = vmul.f32 %v1755_v28, %v1752_v8 }
 0x28b   : > { %v1761_v23 = vpop.permute.xlu1 %1760  ;;  %v1855_v38 = vpop.permute.xlu2 %1854  ;;  %v1835_v17 = vmul.f32 %v1831_v21, %v3179_v32  ;;  %v1836_v8 = vmul.f32 %v1832_v0, %v3181_v1  ;;  %v1892_v54 = vperm.slane %v2223_v40, 0 }
 0x28c   : > { %v1765_v46 = vsel %vm1764_vm5, %v1761_v23, %v1763_v7  ;;  %v1766_v45 = vsel %vm1764_vm5, %v1763_v7, %v1761_v23  ;;  %v1781_v35 = vpop.permute.xlu0 %1780  ;;  %v1719_v19 = vadd.f32 %v1717_v31, %v1706_v20  ;;  %v1720_v18 = vadd.f32 %v1718_v60, %v1707_v44 }
 0x28d   : > { %v1774_v49 = vmul.f32 %v1770_v34, %v1765_v46  ;;  %v1775_v13 = vmul.f32 %v1771_v22, %v1766_v45  ;;  %v1893_v34 = vperm.slane %v2223_v40, 1  ;;  %v1844_v28 = vperm.slane %v1835_v17, 0 }
 0x28e   : > { %v1732_v26 = vadd.f32 %v1730_v48, %v1719_v19  ;;  %v1733_v55 = vadd.f32 %v1731_v36, %v1720_v18  ;;  %v1845_v61 = vperm.slane %v1836_v8, 0  ;;  %v1857_v32 = vperm.slane %v1835_v17, 1 }
 0x28f   : > { %v1783_v24 = vperm.slane %v1774_v49, 0  ;;  %v1784_v41 = vperm.slane %v1775_v13, 0  ;;  %v1796_v47 = vperm.slane %v1774_v49, 1  ;;  %v1797_v59 = vperm.slane %v1775_v13, 1 }
 0x290   : > { %v1745_v7 = vadd.f32 %v1743_v6, %v1732_v26  ;;  %v1746_v25 = vadd.f32 %v1744_v51, %v1733_v55  ;;  %v1809_v39 = vperm.slane %v1774_v49, 2  ;;  %v1810_v3 = vperm.slane %v1775_v13, 2 }
 0x291   : > { %v1785_v43 = vmul.f32 %v1783_v24, %v1781_v35  ;;  %v1786_v62 = vmul.f32 %v1784_v41, %v1781_v35  ;;  %v1798_v9 = vmul.f32 %v1796_v47, %v3245_v27  ;;  %v1799_v11 = vmul.f32 %v1797_v59, %v3245_v27 }
 0x292   : > { %v1758_v2 = vadd.f32 %v1756_v37, %v1745_v7  ;;  %v1759_v56 = vadd.f32 %v1757_v42, %v1746_v25  ;;  %v1811_v15 = vmul.f32 %v1809_v39, %v1807_v29  ;;  %v1812_v16 = vmul.f32 %v1810_v3, %v1807_v29 }
 0x293   : > { %v1842_v58 = vpop.permute.xlu1 %1841  ;;  %v1822_v33 = vperm.slane %v1774_v49, 3  ;;  %v1823_v14 = vperm.slane %v1775_v13, 3  ;;  %v1858_v31 = vperm.slane %v1836_v8, 1  ;;  %v1896_v44 = vmul.f32 %v1892_v54, %v3194_v57  ;;  %v1903_v0 = vpop.permute.xlu2 %1902  ;;  %v2228_v57 = vld [vmem:[%s3328_s2 + $0x32] ss:$8 sm:$0x3] }
 0x294   : > { %v1820_v63 = vpop.permute.xlu0 %1819  ;;  %v1787_v52 = vadd.f32 %v1785_v43, %v1758_v2  ;;  %v1788_v4 = vadd.f32 %v1786_v62, %v1759_v56  ;;  %v1897_v27 = vmul.f32 %v1893_v34, %v3198_v53  ;;  %v1870_v23 = vperm.slane %v1835_v17, 2 }
 0x295   : > { %v1824_v50 = vmul.f32 %v1822_v33, %v1820_v63  ;;  %v1825_v20 = vmul.f32 %v1823_v14, %v1820_v63  ;;  %v1871_v48 = vperm.slane %v1836_v8, 2  ;;  %v1846_v36 = vmul.f32 %v1844_v28, %v1842_v58 }
 0x296   : > { %v1800_v10 = vadd.f32 %v1798_v9, %v1787_v52  ;;  %v1801_v22 = vadd.f32 %v1799_v11, %v1788_v4  ;;  %v1847_v29 = vmul.f32 %v1845_v61, %v1842_v58  ;;  %v1859_v18 = vmul.f32 %v1857_v32, %v1855_v38 }
 0x297   : > { %v1860_v49 = vmul.f32 %v1858_v31, %v1855_v38  ;;  %v1883_v26 = vperm.slane %v1835_v17, 3  ;;  %v1884_v55 = vperm.slane %v1836_v8, 3  ;;  %v1905_v41 = vperm.slane %v1896_v44, 0 }
 0x298   : > { %v1813_v1 = vadd.f32 %v1811_v15, %v1800_v10  ;;  %v1814_v60 = vadd.f32 %v1812_v16, %v1801_v22  ;;  %v1906_v37 = vperm.slane %v1897_v27, 0  ;;  %v1953_v25 = vperm.slane %v2228_v57, 0 }
 0x299   : > { %v1954_v43 = vperm.slane %v2228_v57, 1  ;;  %v1918_v62 = vperm.slane %v1896_v44, 1  ;;  %v1919_v39 = vperm.slane %v1897_v27, 1  ;;  %v1907_v56 = vmul.f32 %v1905_v41, %v1903_v0 }
 0x29a   : > { %v1826_v46 = vadd.f32 %v1824_v50, %v1813_v1  ;;  %v1827_v45 = vadd.f32 %v1825_v20, %v1814_v60  ;;  %v1908_v58 = vmul.f32 %v1906_v37, %v1903_v0  ;;  %v1931_v38 = vperm.slane %v1896_v44, 2 }
 0x29b   : > { %v1881_v35 = vpop.permute.xlu1 %1880  ;;  %v1932_v17 = vperm.slane %v1897_v27, 2  ;;  %v1944_v11 = vperm.slane %v1896_v44, 3  ;;  %v1945_v54 = vperm.slane %v1897_v27, 3  ;;  %v1957_v34 = vmul.f32 %v1953_v25, %v3215_v12  ;;  %v1942_v14 = vpop.permute.xlu2 %1941 }
 0x29c   : > { %v1868_v19 = vpop.permute.xlu0 %1867  ;;  %v1848_v13 = vadd.f32 %v1846_v36, %v1826_v46  ;;  %v1849_v6 = vadd.f32 %v1847_v29, %v1827_v45  ;;  %v1885_v42 = vmul.f32 %v1883_v26, %v1881_v35  ;;  %v1886_v47 = vmul.f32 %v1884_v55, %v1881_v35 }
 0x29d   : > { %v1872_v51 = vmul.f32 %v1870_v23, %v1868_v19  ;;  %v1873_v21 = vmul.f32 %v1871_v48, %v1868_v19  ;;  %v1958_v15 = vmul.f32 %v1954_v43, %v3219_v5  ;;  %v1946_v32 = vmul.f32 %v1944_v11, %v1942_v14 }
 0x29e   : > { %v1861_v53 = vadd.f32 %v1859_v18, %v1848_v13  ;;  %v1862_v24 = vadd.f32 %v1860_v49, %v1849_v6  ;;  %v1947_v31 = vmul.f32 %v1945_v54, %v1942_v14  ;;  %v1966_v1 = vperm.slane %v1957_v34, 0 }
 0x29f   : > { %v1967_v60 = vperm.slane %v1958_v15, 0  ;;  %v1979_v20 = vperm.slane %v1957_v34, 1  ;;  %v1980_v44 = vperm.slane %v1958_v15, 1  ;;  %v1992_v36 = vperm.slane %v1957_v34, 2 }
 0x2a0   : > { %v1874_v59 = vadd.f32 %v1872_v51, %v1861_v53  ;;  %v1875_v7 = vadd.f32 %v1873_v21, %v1862_v24  ;;  %v1993_v29 = vperm.slane %v1958_v15, 2  ;;  %v2005_v21 = vperm.slane %v1957_v34, 3 }
 0x2a1   : > { %v2006_v0 = vperm.slane %v1958_v15, 3 }
 0x2a2   : > { %v1887_v3 = vadd.f32 %v1885_v42, %v1874_v59  ;;  %v1888_v40 = vadd.f32 %v1886_v47, %v1875_v7 }
 0x2a3   : > { %v1929_v2 = vpop.permute.xlu1 %1928  ;;  %v1990_v13 = vpop.permute.xlu2 %1989 }
 0x2a4   : > { %v1916_v8 = vpop.permute.xlu0 %1915  ;;  %v1909_v63 = vadd.f32 %v1907_v56, %v1887_v3  ;;  %v1910_v52 = vadd.f32 %v1908_v58, %v1888_v40  ;;  %v1933_v16 = vmul.f32 %v1931_v38, %v1929_v2  ;;  %v1934_v10 = vmul.f32 %v1932_v17, %v1929_v2 }
 0x2a5   : > { %v1920_v4 = vmul.f32 %v1918_v62, %v1916_v8  ;;  %v1921_v9 = vmul.f32 %v1919_v39, %v1916_v8  ;;  %v1994_v6 = vmul.f32 %v1992_v36, %v1990_v13  ;;  %v1995_v51 = vmul.f32 %v1993_v29, %v1990_v13 }
 0x2a7   : > { %v1922_v22 = vadd.f32 %v1920_v4, %v1909_v63  ;;  %v1923_v33 = vadd.f32 %v1921_v9, %v1910_v52 }
 0x2a9   : > { %v1935_v28 = vadd.f32 %v1933_v16, %v1922_v22  ;;  %v1936_v61 = vadd.f32 %v1934_v10, %v1923_v33 }
 0x2ab   : > { %v1977_v50 = vpop.permute.xlu1 %1976  ;;  %v1948_v23 = vadd.f32 %v1946_v32, %v1935_v28  ;;  %v1949_v12 = vadd.f32 %v1947_v31, %v1936_v61 }
 0x2ac   : > { %v1964_v27 = vpop.permute.xlu0 %1963  ;;  %v1981_v46 = vmul.f32 %v1979_v20, %v1977_v50  ;;  %v1982_v45 = vmul.f32 %v1980_v44, %v1977_v50 }
 0x2ad   : > { %v1968_v48 = vmul.f32 %v1966_v1, %v1964_v27  ;;  %v1969_v5 = vmul.f32 %v1967_v60, %v1964_v27 }
 0x2af   : > { %v1970_v35 = vadd.f32 %v1968_v48, %v1948_v23  ;;  %v1971_v19 = vadd.f32 %v1969_v5, %v1949_v12 }
 0x2b1   : > { %v1983_v18 = vadd.f32 %v1981_v46, %v1970_v35  ;;  %v1984_v49 = vadd.f32 %v1982_v45, %v1971_v19 }
 0x2b3   : > { %v1996_v55 = vadd.f32 %v1994_v6, %v1983_v18  ;;  %v1997_v57 = vadd.f32 %v1995_v51, %v1984_v49 }
 0x2b4   : > { %v2003_v26 = vpop.permute.xlu0 %2002 }
 0x2b5   : > { %v2007_v53 = vmul.f32 %v2005_v21, %v2003_v26  ;;  %v2008_v24 = vmul.f32 %v2006_v0, %v2003_v26 }
 0x2b7   : > { %v2009_v41 = vadd.f32 %v2007_v53, %v1996_v55  ;;  %v2010_v37 = vadd.f32 %v2008_v24, %v1997_v57 }
 0x2b9   : > { %v2012_v42 = vmax.f32 %v2010_v37, 0.0  ;;  %v2011_v47 = vmax.f32 %v2009_v41, 0.0 }
 0x2bb   : > { %v2015_v59 = vrot.slane %v2012_v42, 4 }
 0x2bd   : > { %v2016_v7 = vsel %vm828_vm0, %v2011_v47, %v2015_v59 }
 0x2be   : > { %v2018_v25 = vadd.f32 %v2016_v7, %v3089_v30 }
 0x2c0   : > { %2019 = vst [vmem:[%s163_s8] sm:$0xff] %v2018_v25 }
 0x2c1   : > { %2331 = shalt.err (!%p2328_p3)
}
 0x2c2   : > { %2240 = dma.vmem_to_hbm [thread:$0]  (%p2448_p5), %s2035_s24, 128, %s2037_s9, %s2021_s16  }
 0x2c3 PF: > { %p2246_p4 = scmp.ge.s32.totalorder %s2366_s15, 2  ;;  %s2048_s25 = sand.u32 1, %s2354_s12  }
 0x2c4   : > { %s2049_s28 = scalar_lea.sflag [#allocation3], %s2048_s25 }
 0x2c5   : > { %p2243_p7 = pnand %p2246_p4, %p2452_p6 }
 0x2c7   : > { %p2244_p8 = pneg %p2243_p7 }
 0x2c9   : > { %2349 = dma.done.wait (%p2244_p8), %s2049_s28, 128  }
 0x2ca   : > { %2351 = vsyncadd (%p2244_p8), %s2049_s28, 4294967168  ;;  %p13_p9 = scmp.ge.s32.totalorder %s2435_s18, 4   ;;  %s3332_s12 = smov %s2358_s13 }
 0x2cb   : > { %s3333_s13 = smov %s2362_s14  ;;  %s3334_s14 = smov %s2446_s21 }
 0x2cc   : > { %s3335_s15 = smov %s2435_s18  ;;  %15 = sbr.rel (!%p13_p9) target bundleno = 3 (0x3), region = 197 }
 0x2d1   :  { %2055 = vsyncpa [#allocation3], 1 }
 0x2d2   :  { %2057 = vsyncpa [#allocation3 + $0x1], 1 }

</bundles_post_ra>
